<compile_context>
chip_gen: v5e
topology: v5e:2x2
jax: 0.10.0
libtpu: 0.0.40
codegen_flags: <defaults>
</compile_context>

<pallas_src>
import jax
import jax.numpy as jnp
from jax.experimental import pallas as pl
from jax.experimental.pallas import tpu as pltpu


# ------------------------------------------------------------------
# Kernel bodies
# ------------------------------------------------------------------
def _fused_loss_kernel(x_ref, w_up_ref, b_up_ref, w_cat_ref, b_cat_ref,
                       w_diff_ref, b_diff_ref, lab_ref, z_ref, part_ref):
    # Activations: cast in-kernel (hidden under the MXU), one full-width dot.
    x = x_ref[0].astype(jnp.bfloat16)                                  # (Hb, 256)
    y = jnp.dot(x, w_up_ref[...], preferred_element_type=jnp.float32)
    y = y + b_up_ref[...]                                              # (Hb, 1024) f32

    # Block-diagonal cls projection -> exact interleaved logits (Hb, 2q).
    z = jnp.dot(y, w_cat_ref[...], preferred_element_type=jnp.float32)
    z = z + b_cat_ref[...]
    z_ref[0] = z                                                       # 8 KiB/step

    # Logit difference (l1 - l0) via block-diagonal difference weights (f32).
    d = jnp.dot(y, w_diff_ref[...], preferred_element_type=jnp.float32)
    d = d + b_diff_ref[...]                                            # (Hb, q)

    lab = lab_ref[0]                                                   # (Hb, q) int32
    valid = lab != -100
    t = jnp.where(lab == 1, -d, d)                                     # CE = softplus(t)
    # NOTE: log(1+exp(-|t|)) is numerically fine here (|t| small); the tail
    # term is negligible vs max(t,0) whenever log1p would matter.
    per = jnp.maximum(t, 0.0) + jnp.log(1.0 + jnp.exp(-jnp.abs(t)))
    loss_mat = jnp.where(valid, per, 0.0)
    cnt_mat = valid.astype(jnp.float32)

    # Full in-kernel reduction (lane reduce then sublane reduce) -> (1, 1).
    loss_11 = jnp.sum(jnp.sum(loss_mat, axis=1, keepdims=True), axis=0, keepdims=True)
    cnt_11 = jnp.sum(jnp.sum(cnt_mat, axis=1, keepdims=True), axis=0, keepdims=True)
    part_ref[0, :, 0:1] = loss_11
    part_ref[0, :, 1:2] = cnt_11


def _fused_logits_kernel(x_ref, w_up_ref, b_up_ref, w_cat_ref, b_cat_ref, z_ref):
    # Inference path: no loss math, no labels.
    x = x_ref[0].astype(jnp.bfloat16)
    y = jnp.dot(x, w_up_ref[...], preferred_element_type=jnp.float32) + b_up_ref[...]
    z = jnp.dot(y, w_cat_ref[...], preferred_element_type=jnp.float32) + b_cat_ref[...]
    z_ref[0] = z


# ------------------------------------------------------------------
# pallas_call wrappers
# ------------------------------------------------------------------
def _fused_call(x_f32, w_up_bf16, b_up, w_cat, b_cat, w_diff, b_diff,
                labels3, row_split):
    B, H, S = x_f32.shape
    q2 = w_cat.shape[1]                  # 2 * q
    q = q2 // 2
    Hb = H // row_split

    # Grid-invariant operands use constant index_maps, so Pallas only DMAs
    # them once (kept double-buffered; VMEM footprint ~2 MiB total, far below
    # every generation's limit, so no need for pl.Buffered(1)).
    common_in_specs = [
        pl.BlockSpec((1, Hb, S), lambda b, r: (b, r, 0)),    # activations (f32)
        pl.BlockSpec((S, 1024), lambda b, r: (0, 0)),        # W_up resident
        pl.BlockSpec((1, 1024), lambda b, r: (0, 0)),        # b_up resident
        pl.BlockSpec((1024, q2), lambda b, r: (0, 0)),       # W_cat resident
        pl.BlockSpec((1, q2), lambda b, r: (0, 0)),          # b_cat resident
    ]
    z_spec = pl.BlockSpec((1, Hb, q2), lambda b, r: (b, r, 0))
    z_shape = jax.ShapeDtypeStruct((B, H, q2), jnp.float32)
    cparams = pltpu.CompilerParams(dimension_semantics=("parallel", "parallel"))

    if labels3 is None:
        z = pl.pallas_call(
            _fused_logits_kernel,
            out_shape=z_shape,
            grid_spec=pltpu.PrefetchScalarGridSpec(
                num_scalar_prefetch=0,
                grid=(B, row_split),
                in_specs=common_in_specs,
                out_specs=z_spec,
            ),
            compiler_params=cparams,
        )(x_f32, w_up_bf16, b_up, w_cat, b_cat)
        return z, None

    part_shape = jax.ShapeDtypeStruct((B * row_split, 1, 2), jnp.float32)
    part_spec = pl.BlockSpec((1, 1, 2), lambda b, r: (b * row_split + r, 0, 0))
    z, part = pl.pallas_call(
        _fused_loss_kernel,
        out_shape=(z_shape, part_shape),
        grid_spec=pltpu.PrefetchScalarGridSpec(
            num_scalar_prefetch=0,
            grid=(B, row_split),
            in_specs=common_in_specs + [
                pl.BlockSpec((1024, q), lambda b, r: (0, 0)),   # W_diff resident
                pl.BlockSpec((1, q), lambda b, r: (0, 0)),      # b_diff resident
                pl.BlockSpec((1, Hb, q), lambda b, r: (b, r, 0)),  # labels
            ],
            out_specs=(z_spec, part_spec),
        ),
        compiler_params=cparams,
    )(x_f32, w_up_bf16, b_up, w_cat, b_cat, w_diff, b_diff, labels3)
    return z, part


# ------------------------------------------------------------------
# Module forward (RobertaMLP_char.forward)
# ------------------------------------------------------------------
def roberta_mlp_char_forward(last_hidden_state, params, labels=None):
    # TODO(synk): the RoBERTa backbone (self.model) is not implemented in Pallas;
    # its output `last_hidden_state` (B, S=256, hidden) is taken as the input.
    B, S, H = last_hidden_state.shape
    assert S == 256, "self.up = nn.Linear(256, 1024) requires seq_len == 256"
    assert 1024 % H == 0 and H % 8 == 0, "fused kernel assumes hidden_size | 1024"
    q = 1024 // H
    row_split = 2 if (H % 16 == 0) else 1   # keep both v7x TensorCores busy
    assert (H // row_split) % 8 == 0

    # x = torch.reshape(x, (B, H, S))  -- pure row-major reshape (metadata only).
    # Stays f32; the bf16 cast happens inside the kernel.
    x = jnp.reshape(last_hidden_state, (B, H, S))

    w_up = params["w_up_t"].astype(jnp.bfloat16)                        # (256, 1024)
    b_up = jnp.reshape(params["b_up"], (1, 1024)).astype(jnp.float32)

    w_cls = params["w_cls_t"].astype(jnp.float32)                       # (H, 2)
    b_cls = jnp.reshape(params["b_cls"], (2,)).astype(jnp.float32)
    eye_q = jnp.eye(q, dtype=jnp.float32)
    # Block-diagonal, interleaved logits weights: W_cat[k*H+j, 2k+c] = w_cls[j, c]
    w_cat = jnp.einsum("kl,jc->kjlc", eye_q, w_cls).reshape(q * H, 2 * q)
    b_cat = jnp.tile(b_cls.reshape(1, 2), (1, q))                        # (1, 2q)
    # Block-diagonal difference weights (l1 - l0) for the loss path.
    w_diff = jnp.einsum("kl,j->kjl", eye_q, w_cls[:, 1] - w_cls[:, 0]).reshape(q * H, q)
    b_diff = jnp.full((1, q), b_cls[1] - b_cls[0], jnp.float32)

    if labels is None:
        z, _ = _fused_call(x, w_up, b_up, w_cat, b_cat, None, None, None, row_split)
        # Exact row-major reshape: (B, H, 2q) -> (B, 1024, 2), no slicing.
        return jnp.reshape(z, (B, 1024, 2))

    labels3 = jnp.reshape(labels, (B, H, q)).astype(jnp.int32)
    z, part = _fused_call(x, w_up, b_up, w_cat, b_cat, w_diff, b_diff,
                          labels3, row_split)
    logits = jnp.reshape(z, (B, 1024, 2))
    # NOTE: NaN if a batch has zero valid labels — same behavior as PyTorch CE.
    loss = jnp.sum(part[:, 0, 0]) / jnp.sum(part[:, 0, 1])
    return logits, loss


# ------------------------------------------------------------------
# Pure-JAX f32 reference (for correctness check)
# ------------------------------------------------------------------
def reference_forward(last_hidden_state, params, labels):
    B, S, H = last_hidden_state.shape
    x = jnp.reshape(last_hidden_state, (B, H, S))
    y = x @ params["w_up_t"] + jnp.reshape(params["b_up"], (1024,))
    y = jnp.reshape(y, (B, 1024, H))
    logits = y @ params["w_cls_t"] + jnp.reshape(params["b_cls"], (2,))
    lf = logits.reshape(-1, 2)
    lab = labels.reshape(-1)
    valid = lab != -100
    lse = jax.scipy.special.logsumexp(lf, axis=-1)
    picked = jnp.where(lab == 1, lf[:, 1], lf[:, 0])
    per = jnp.where(valid, lse - picked, 0.0)
    loss = per.sum() / valid.sum().astype(jnp.float32)
    return logits, loss


if __name__ == "__main__":
    B, S, H = 2, 256, 128          # batch, seq (fixed by Linear(256, ...)), hidden_size
    key = jax.random.PRNGKey(0)
    k1, k2, k3, k4, k5, k6, k7 = jax.random.split(key, 7)

    last_hidden_state = jax.random.normal(k1, (B, S, H), jnp.float32)
    params = {
        "w_up_t":  0.02 * jax.random.normal(k2, (256, 1024), jnp.float32),  # up.weight.T
        "b_up":    0.02 * jax.random.normal(k3, (1, 1024), jnp.float32),    # up.bias
        "w_cls_t": 0.02 * jax.random.normal(k4, (H, 2), jnp.float32),       # cls.weight.T
        "b_cls":   0.02 * jax.random.normal(k5, (1, 2), jnp.float32),       # cls.bias
    }
    labels = jax.random.randint(k6, (B, 1024), 0, 2, jnp.int32)
    labels = jnp.where(jax.random.uniform(k7, (B, 1024)) < 0.1, -100, labels)

    # Training path (logits + loss)
    logits, loss = roberta_mlp_char_forward(last_hidden_state, params, labels)
    jax.block_until_ready((logits, loss))

    # Inference path (logits only, no loss math / no NaN division)
    logits_inf = roberta_mlp_char_forward(last_hidden_state, params)
    jax.block_until_ready(logits_inf)

    ref_logits, ref_loss = reference_forward(last_hidden_state, params, labels)
    assert logits.shape == (B, 1024, 2)
    assert logits_inf.shape == (B, 1024, 2)
    assert jnp.allclose(logits, ref_logits, atol=1e-2, rtol=1e-2)
    assert jnp.allclose(logits_inf, ref_logits, atol=1e-2, rtol=1e-2)
    assert jnp.allclose(loss, ref_loss, atol=2e-3, rtol=2e-3)
    print("KERNEL_OK")
</pallas_src>

<mosaic_0001>
module attributes {stable_mosaic.version = 11 : i64} {
  func.func @_fused_loss_kernel(%arg0: i32, %arg1: i32, %arg2: memref<1x64x256xf32, #tpu.memory_space<vmem>>, %arg3: memref<256x1024xbf16, #tpu.memory_space<vmem>>, %arg4: memref<1x1024xf32, #tpu.memory_space<vmem>>, %arg5: memref<1024x16xf32, #tpu.memory_space<vmem>>, %arg6: memref<1x16xf32, #tpu.memory_space<vmem>>, %arg7: memref<1024x8xf32, #tpu.memory_space<vmem>>, %arg8: memref<1x8xf32, #tpu.memory_space<vmem>>, %arg9: memref<1x64x8xi32, #tpu.memory_space<vmem>>, %arg10: memref<1x64x16xf32, #tpu.memory_space<vmem>>, %arg11: memref<1x1x2xf32, #tpu.memory_space<vmem>>) attributes {dimension_semantics = [#tpu.dimension_semantics<parallel>, #tpu.dimension_semantics<parallel>], iteration_bounds = array<i64: 2, 2>, scalar_prefetch = 0 : i64, scratch_operands = 0 : i64, tpu.core_type = #tpu.core_type<tc>, window_params = [{transform_indices = @transform_0, window_bounds = array<i64: 1, 64, 256>}, {pipeline_mode = #tpu.pipeline_mode<synchronous>, transform_indices = @transform_1, window_bounds = array<i64: 256, 1024>}, {pipeline_mode = #tpu.pipeline_mode<synchronous>, transform_indices = @transform_2, window_bounds = array<i64: 1, 1024>}, {pipeline_mode = #tpu.pipeline_mode<synchronous>, transform_indices = @transform_3, window_bounds = array<i64: 1024, 16>}, {pipeline_mode = #tpu.pipeline_mode<synchronous>, transform_indices = @transform_4, window_bounds = array<i64: 1, 16>}, {pipeline_mode = #tpu.pipeline_mode<synchronous>, transform_indices = @transform_5, window_bounds = array<i64: 1024, 8>}, {pipeline_mode = #tpu.pipeline_mode<synchronous>, transform_indices = @transform_6, window_bounds = array<i64: 1, 8>}, {transform_indices = @transform_7, window_bounds = array<i64: 1, 64, 8>}, {transform_indices = @transform_8, window_bounds = array<i64: 1, 64, 16>}, {transform_indices = @transform_9, window_bounds = array<i64: 1, 1, 2>}]} {
    %c0 = arith.constant 0 : index
    %c0_0 = arith.constant 0 : index
    %c0_1 = arith.constant 0 : index
    %0 = vector.load %arg2[%c0, %c0_0, %c0_1] : memref<1x64x256xf32, #tpu.memory_space<vmem>>, vector<1x64x256xf32>
    %1 = vector.shape_cast %0 : vector<1x64x256xf32> to vector<64x256xf32>
    %2 = arith.truncf %1 : vector<64x256xf32> to vector<64x256xbf16>
    %c0_2 = arith.constant 0 : index
    %c0_3 = arith.constant 0 : index
    %3 = vector.load %arg3[%c0_2, %c0_3] : memref<256x1024xbf16, #tpu.memory_space<vmem>>, vector<256x1024xbf16>
    %cst = arith.constant dense<0.000000e+00> : vector<64x1024xf32>
    %4 = tpu.matmul %2, %3, %cst {dimension_numbers = #tpu.dot_dimension_numbers<[1], [0], [0], [1], [0, 0, 1, 1], [], []>} : vector<64x256xbf16>, vector<256x1024xbf16>, vector<64x1024xf32> -> vector<64x1024xf32>
    %c0_4 = arith.constant 0 : index
    %c0_5 = arith.constant 0 : index
    %5 = vector.load %arg4[%c0_4, %c0_5] : memref<1x1024xf32, #tpu.memory_space<vmem>>, vector<1x1024xf32>
    %6 = vector.broadcast %5 : vector<1x1024xf32> to vector<64x1024xf32>
    %7 = arith.addf %4, %6 : vector<64x1024xf32>
    %c0_6 = arith.constant 0 : index
    %c0_7 = arith.constant 0 : index
    %8 = vector.load %arg5[%c0_6, %c0_7] : memref<1024x16xf32, #tpu.memory_space<vmem>>, vector<1024x16xf32>
    %cst_8 = arith.constant dense<0.000000e+00> : vector<64x16xf32>
    %9 = tpu.matmul %7, %8, %cst_8 {dimension_numbers = #tpu.dot_dimension_numbers<[1], [0], [0], [1], [0, 0, 1, 1], [], []>} : vector<64x1024xf32>, vector<1024x16xf32>, vector<64x16xf32> -> vector<64x16xf32>
    %c0_9 = arith.constant 0 : index
    %c0_10 = arith.constant 0 : index
    %10 = vector.load %arg6[%c0_9, %c0_10] : memref<1x16xf32, #tpu.memory_space<vmem>>, vector<1x16xf32>
    %11 = vector.broadcast %10 : vector<1x16xf32> to vector<64x16xf32>
    %12 = arith.addf %9, %11 : vector<64x16xf32>
    %c0_11 = arith.constant 0 : index
    %c0_12 = arith.constant 0 : index
    %c0_13 = arith.constant 0 : index
    %13 = vector.load %arg10[%c0_11, %c0_12, %c0_13] : memref<1x64x16xf32, #tpu.memory_space<vmem>>, vector<1x64x16xf32>
    %14 = vector.shape_cast %13 : vector<1x64x16xf32> to vector<64x16xf32>
    %15 = vector.shape_cast %12 : vector<64x16xf32> to vector<1x64x16xf32>
    tpu.vector_store %arg10[%c0_11, %c0_12, %c0_13], %15 {strides = array<i32>} : memref<1x64x16xf32, #tpu.memory_space<vmem>>, vector<1x64x16xf32>,
    %c0_14 = arith.constant 0 : index
    %c0_15 = arith.constant 0 : index
    %16 = vector.load %arg7[%c0_14, %c0_15] : memref<1024x8xf32, #tpu.memory_space<vmem>>, vector<1024x8xf32>
    %cst_16 = arith.constant dense<0.000000e+00> : vector<64x8xf32>
    %17 = tpu.matmul %7, %16, %cst_16 {dimension_numbers = #tpu.dot_dimension_numbers<[1], [0], [0], [1], [0, 0, 1, 1], [], []>} : vector<64x1024xf32>, vector<1024x8xf32>, vector<64x8xf32> -> vector<64x8xf32>
    %c0_17 = arith.constant 0 : index
    %c0_18 = arith.constant 0 : index
    %18 = vector.load %arg8[%c0_17, %c0_18] : memref<1x8xf32, #tpu.memory_space<vmem>>, vector<1x8xf32>
    %19 = vector.broadcast %18 : vector<1x8xf32> to vector<64x8xf32>
    %20 = arith.addf %17, %19 : vector<64x8xf32>
    %c0_19 = arith.constant 0 : index
    %c0_20 = arith.constant 0 : index
    %c0_21 = arith.constant 0 : index
    %21 = vector.load %arg9[%c0_19, %c0_20, %c0_21] : memref<1x64x8xi32, #tpu.memory_space<vmem>>, vector<1x64x8xi32>
    %22 = vector.shape_cast %21 : vector<1x64x8xi32> to vector<64x8xi32>
    %c-100_i32 = arith.constant -100 : i32
    %23 = vector.broadcast %c-100_i32 : i32 to vector<64x8xi32>
    %24 = arith.cmpi ne, %22, %23 : vector<64x8xi32>
    %c1_i32 = arith.constant 1 : i32
    %25 = vector.broadcast %c1_i32 : i32 to vector<64x8xi32>
    %26 = arith.cmpi eq, %22, %25 : vector<64x8xi32>
    %cst_22 = arith.constant 0.000000e+00 : f32
    %27 = vector.broadcast %cst_22 : f32 to vector<64x8xf32>
    %28 = arith.subf %27, %20 : vector<64x8xf32>
    %29 = arith.select %26, %28, %20 : vector<64x8xi1>, vector<64x8xf32>
    %cst_23 = arith.constant 0.000000e+00 : f32
    %30 = vector.broadcast %cst_23 : f32 to vector<64x8xf32>
    %31 = arith.maximumf %29, %30 : vector<64x8xf32>
    %32 = math.absf %29 : vector<64x8xf32>
    %cst_24 = arith.constant 0.000000e+00 : f32
    %33 = vector.broadcast %cst_24 : f32 to vector<64x8xf32>
    %34 = arith.subf %33, %32 : vector<64x8xf32>
    %35 = math.exp %34 : vector<64x8xf32>
    %cst_25 = arith.constant 1.000000e+00 : f32
    %36 = vector.broadcast %cst_25 : f32 to vector<64x8xf32>
    %37 = arith.addf %36, %35 : vector<64x8xf32>
    %38 = math.log %37 : vector<64x8xf32>
    %39 = arith.addf %31, %38 : vector<64x8xf32>
    %cst_26 = arith.constant 0.000000e+00 : f32
    %40 = vector.broadcast %cst_26 : f32 to vector<64x8xf32>
    %41 = arith.select %24, %39, %40 : vector<64x8xi1>, vector<64x8xf32>
    %42 = arith.extui %24 : vector<64x8xi1> to vector<64x8xi32>
    %43 = arith.sitofp %42 : vector<64x8xi32> to vector<64x8xf32>
    %cst_27 = arith.constant dense<0.000000e+00> : vector<64xf32>
    %44 = vector.multi_reduction <add>, %41, %cst_27 [1] : vector<64x8xf32> to vector<64xf32>
    %45 = vector.shape_cast %44 : vector<64xf32> to vector<64x1xf32>
    %cst_28 = arith.constant dense<0.000000e+00> : vector<1xf32>
    %46 = vector.multi_reduction <add>, %45, %cst_28 [0] : vector<64x1xf32> to vector<1xf32>
    %47 = vector.shape_cast %46 : vector<1xf32> to vector<1x1xf32>
    %cst_29 = arith.constant dense<0.000000e+00> : vector<64xf32>
    %48 = vector.multi_reduction <add>, %43, %cst_29 [1] : vector<64x8xf32> to vector<64xf32>
    %49 = vector.shape_cast %48 : vector<64xf32> to vector<64x1xf32>
    %cst_30 = arith.constant dense<0.000000e+00> : vector<1xf32>
    %50 = vector.multi_reduction <add>, %49, %cst_30 [0] : vector<64x1xf32> to vector<1xf32>
    %51 = vector.shape_cast %50 : vector<1xf32> to vector<1x1xf32>
    %c0_31 = arith.constant 0 : index
    %c0_32 = arith.constant 0 : index
    %c0_33 = arith.constant 0 : index
    %52 = vector.load %arg11[%c0_31, %c0_32, %c0_33] : memref<1x1x2xf32, #tpu.memory_space<vmem>>, vector<1x1x1xf32>
    %53 = vector.shape_cast %52 : vector<1x1x1xf32> to vector<1x1xf32>
    %54 = vector.shape_cast %47 : vector<1x1xf32> to vector<1x1x1xf32>
    tpu.vector_store %arg11[%c0_31, %c0_32, %c0_33], %54 {strides = array<i32>} : memref<1x1x2xf32, #tpu.memory_space<vmem>>, vector<1x1x1xf32>,
    %c0_34 = arith.constant 0 : index
    %c0_35 = arith.constant 0 : index
    %c1 = arith.constant 1 : index
    %55 = vector.load %arg11[%c0_34, %c0_35, %c1] : memref<1x1x2xf32, #tpu.memory_space<vmem>>, vector<1x1x1xf32>
    %56 = vector.shape_cast %55 : vector<1x1x1xf32> to vector<1x1xf32>
    %57 = vector.shape_cast %51 : vector<1x1xf32> to vector<1x1x1xf32>
    tpu.vector_store %arg11[%c0_34, %c0_35, %c1], %57 {strides = array<i32>} : memref<1x1x2xf32, #tpu.memory_space<vmem>>, vector<1x1x1xf32>,
    return
  }
  func.func @transform_0(%arg0: i32, %arg1: i32) -> (i32, i32, i32) {
    %c0_i32 = arith.constant 0 : i32
    %c0_i32_0 = arith.constant 0 : i32
    return %arg0, %arg1, %c0_i32 : i32, i32, i32
  }
  func.func @transform_1(%arg0: i32, %arg1: i32) -> (i32, i32) {
    %c0_i32 = arith.constant 0 : i32
    %c0_i32_0 = arith.constant 0 : i32
    %c0_i32_1 = arith.constant 0 : i32
    return %c0_i32, %c0_i32_0 : i32, i32
  }
  func.func @transform_2(%arg0: i32, %arg1: i32) -> (i32, i32) {
    %c0_i32 = arith.constant 0 : i32
    %c0_i32_0 = arith.constant 0 : i32
    %c0_i32_1 = arith.constant 0 : i32
    return %c0_i32, %c0_i32_0 : i32, i32
  }
  func.func @transform_3(%arg0: i32, %arg1: i32) -> (i32, i32) {
    %c0_i32 = arith.constant 0 : i32
    %c0_i32_0 = arith.constant 0 : i32
    %c0_i32_1 = arith.constant 0 : i32
    return %c0_i32, %c0_i32_0 : i32, i32
  }
  func.func @transform_4(%arg0: i32, %arg1: i32) -> (i32, i32) {
    %c0_i32 = arith.constant 0 : i32
    %c0_i32_0 = arith.constant 0 : i32
    %c0_i32_1 = arith.constant 0 : i32
    return %c0_i32, %c0_i32_0 : i32, i32
  }
  func.func @transform_5(%arg0: i32, %arg1: i32) -> (i32, i32) {
    %c0_i32 = arith.constant 0 : i32
    %c0_i32_0 = arith.constant 0 : i32
    %c0_i32_1 = arith.constant 0 : i32
    return %c0_i32, %c0_i32_0 : i32, i32
  }
  func.func @transform_6(%arg0: i32, %arg1: i32) -> (i32, i32) {
    %c0_i32 = arith.constant 0 : i32
    %c0_i32_0 = arith.constant 0 : i32
    %c0_i32_1 = arith.constant 0 : i32
    return %c0_i32, %c0_i32_0 : i32, i32
  }
  func.func @transform_7(%arg0: i32, %arg1: i32) -> (i32, i32, i32) {
    %c0_i32 = arith.constant 0 : i32
    %c0_i32_0 = arith.constant 0 : i32
    return %arg0, %arg1, %c0_i32 : i32, i32, i32
  }
  func.func @transform_8(%arg0: i32, %arg1: i32) -> (i32, i32, i32) {
    %c0_i32 = arith.constant 0 : i32
    %c0_i32_0 = arith.constant 0 : i32
    return %arg0, %arg1, %c0_i32 : i32, i32, i32
  }
  func.func @transform_9(%arg0: i32, %arg1: i32) -> (i32, i32, i32) {
    %c2_i32 = arith.constant 2 : i32
    %0 = arith.muli %arg0, %c2_i32 : i32
    %1 = arith.addi %0, %arg1 : i32
    %c0_i32 = arith.constant 0 : i32
    %c0_i32_0 = arith.constant 0 : i32
    %c0_i32_1 = arith.constant 0 : i32
    return %1, %c0_i32, %c0_i32_0 : i32, i32, i32
  }
}

</mosaic_0001>

<bundles_post_ra>
// kernel: tpu_custom_call.1
= control target key start
LH: loop header
LB: loop body
LE: loop exit
PB: predicated region body
PF: predicated region fallthrough
CT: control target
= control target key end

     0   :  { %s3825_s30 = smov 0   ;;  %s3827_s10 = smov 0   ;;  %s6401_s0 = inlined_call_operand.vmem [shape: f32[2,128,256], index: 0, kind: input, shape index: {}]   ;;  %s6402_s1 = inlined_call_operand.vmem [shape: bf16[256,1024], index: 1, kind: input, shape index: {}]   ;;  %s6403_s2 = inlined_call_operand.vmem [shape: f32[1,1024], index: 2, kind: input, shape index: {}]   ;;  %s6404_s3 = inlined_call_operand.vmem [shape: f32[1024,16], index: 3, kind: input, shape index: {}]   ;;  %s6405_s4 = inlined_call_operand.vmem [shape: f32[1,16], index: 4, kind: input, shape index: {}]   ;;  %s6406_s5 = inlined_call_operand.vmem [shape: f32[1024,8], index: 5, kind: input, shape index: {}]   ;;  %s6407_s6 = inlined_call_operand.vmem [shape: f32[1,8], index: 6, kind: input, shape index: {}]   ;;  %s6408_s7 = inlined_call_operand.vmem [shape: s32[2,128,8], index: 7, kind: input, shape index: {}]   ;;  %s6409_s8 = inlined_call_operand.vmem [shape: f32[2,128,16], index: 8, kind: output, shape index: {0}]   ;;  %s6410_s9 = inlined_call_operand.vmem [shape: f32[4,1,2], index: 9, kind: output, shape index: {1}]  }
   0x1   :  { %s3829_s11 = smov 0   ;;  %s3831_s12 = smov 0  }
   0x2   :  { %s3833_s13 = smov 0  }
   0x3 LB: > { %s29_s14 = sadd.s32 1, %s3764_s11  ;;  %s32_s15 = sadd.s32 1, %s3768_s12  ;;  %s3772_s13 = sphi %s3833_s13, %s20_s13   ;;  %s3768_s12 = sphi %s3831_s12, %s6489_s12   ;;  %s3764_s11 = sphi %s3829_s11, %s6488_s11   ;;  %s3760_s10 = sphi %s3827_s10, %s6487_s10   ;;  %s3756_s30 = sphi %s3825_s30, %s6486_s30  }
   0x4   : > { %p30_p0 = scmp.ge.s32.totalorder %s29_s14, 2  ;;  %p2996_p1 = scmp.ge.s32.totalorder %s3772_s13, 1 }
   0x5   : > { %p333_p2 = scmp.lt.s32.totalorder %s3772_s13, 5 }
   0x6   : > { %s6491_s14 = smov (%p30_p0, %s29_s14), 0  ;;  %s6493_s15 = smov (!%p30_p0, %s32_s15), %s3768_s12 }
   0x7   : > { %p334_p3 = pnand %p2996_p1, %p333_p2  ;;  %p34_p4 = scmp.ge.s32.totalorder %s6493_s15, 2 }
   0x9   : > { %s6495_s15 = smov (%p34_p4, %s6493_s15), 0  ;;  %337 = sbr.rel (%p334_p3) target bundleno = 858 (0x35a), region = 52 }
   0xa   : > { %6434 = sst [smem:[#allocation2_spill]] %s6495_s15 }
   0xe   : > { %v3234_v0 = vld [vmem:[%s6402_s1 + $0x1c0] sm:$0xf]  ;;  %v3586_v5 = vld [vmem:[%s6402_s1 + $0x1c4] sm:$0xf]  ;;  %s2997_s16 = sshll.u32 %s3756_s30, 3  ;;  %p393_p5 = scmp.lt.s32.totalorder %s3760_s10, 1 }
   0xf   : > { %v3590_v1 = vld [vmem:[%s6402_s1 + $0x1dc] sm:$0xf0]  ;;  %v3236_v6 = vld [vmem:[%s6402_s1 + $0x1e0] sm:$0xf0]  ;;  %p395_p6 = scmp.lt.s32.totalorder %s2997_s16, 15  ;;  %vm2164_vm0 = vcmask 130048  }
  0x10   : > { %v3490_v2 = vld [vmem:[%s6402_s1 + $0x3c0] sm:$0xf]  ;;  %v3235_v3 = vor.u32 %v3590_v1, %v3234_v0  ;;  %v3239_v8 = vor.u32 %v3586_v5, %v3236_v6  ;;  %v3650_v9 = vld [vmem:[%s6402_s1 + $0x3c4] sm:$0xf]  ;;  %s4042_s25 = scalar_select %p393_p5, %s3760_s10, 1  ;;  %vm2769_vm2 = vcmask 64512  }
  0x11   : > { %v3654_v4 = vld [vmem:[%s6402_s1 + $0x3dc] sm:$0xf0]  ;;  %v3492_v10 = vld [vmem:[%s6402_s1 + $0x3e0] sm:$0xf0]  ;;  %s6497_s16 = smov (!%p395_p6, %s2997_s16), 15  ;;  %s3007_s29 = sshll.u32 %s3760_s10, 1 }
  0x12   : > { %v3491_v7 = vor.u32 %v3654_v4, %v3490_v2  ;;  %v3202_v11 = vld [vmem:[%s6402_s1 + $0x180] sm:$0xf]  ;;  %1240 = vmatpush.bf16.msra.mxu0 %v3235_v3  ;;  %v3495_v12 = vor.u32 %v3650_v9, %v3492_v10  ;;  %1298 = vmatpush.bf16.msra.mxu2 %v3239_v8  ;;  %v3578_v18 = vld [vmem:[%s6402_s1 + $0x184] sm:$0xf]  ;;  %s2999_s21 = sshll.u32 %s4042_s25, 5  ;;  %s2998_s22 = sshll.u32 %s6497_s16, 1 }
  0x13   : > { %v3582_v13 = vld [vmem:[%s6402_s1 + $0x19c] sm:$0xf0]  ;;  %v3204_v19 = vld [vmem:[%s6402_s1 + $0x1a0] sm:$0xf0]  ;;  %s399_s28 = sadd.s32 %s2999_s21, %s2998_s22  ;;  %s3002_s19 = sshll.u32 %s4042_s25, 4 }
  0x14   : > { %v3458_v14 = vld [vmem:[%s6402_s1 + $0x380] sm:$0xf]  ;;  %1269 = vmatpush.bf16.msra.mxu1 %v3491_v7  ;;  %v3203_v16 = vor.u32 %v3582_v13, %v3202_v11  ;;  %v3642_v20 = vld [vmem:[%s6402_s1 + $0x384] sm:$0xf]  ;;  %1327 = vmatpush.bf16.msra.mxu3 %v3495_v12  ;;  %v3207_v21 = vor.u32 %v3578_v18, %v3204_v19  ;;  %s3000_s23 = sshll.u32 %s399_s28, 3  ;;  %s424_s28 = sadd.s32 %s3756_s30, %s3007_s29 }
  0x15   : > { %v3646_v15 = vld [vmem:[%s6402_s1 + $0x39c] sm:$0xf0]  ;;  %v3460_v22 = vld [vmem:[%s6402_s1 + $0x3a0] sm:$0xf0]  ;;  %s4084_s15 = scalar_lea.vmem %s6401_s0, %s3000_s23  ;;  %p425_p7 = scmp.lt.s32.totalorder %s424_s28, 3 }
  0x16   : > { %v3459_v17 = vor.u32 %v3646_v15, %v3458_v14  ;;  %v3170_v23 = vld [vmem:[%s6402_s1 + $0x140] sm:$0xf]  ;;  %v3463_v25 = vor.u32 %v3642_v20, %v3460_v22  ;;  %v3570_v28 = vld [vmem:[%s6402_s1 + $0x144] sm:$0xf]  ;;  %1241 = vmatpush.bf16.msra.mxu0 %v3203_v16  ;;  %1299 = vmatpush.bf16.msra.mxu2 %v3207_v21 }
  0x17   : > { %v3574_v24 = vld [vmem:[%s6402_s1 + $0x15c] sm:$0xf0]  ;;  %v3172_v30 = vld [vmem:[%s6402_s1 + $0x160] sm:$0xf0]  ;;  %s6499_s28 = smov (!%p425_p7, %s424_s28), 3 }
  0x18   : > { %v3426_v26 = vld [vmem:[%s6402_s1 + $0x340] sm:$0xf]  ;;  %v3171_v29 = vor.u32 %v3574_v24, %v3170_v23  ;;  %v3634_v31 = vld [vmem:[%s6402_s1 + $0x344] sm:$0xf]  ;;  %1270 = vmatpush.bf16.msra.mxu1 %v3459_v17  ;;  %v3175_v34 = vor.u32 %v3570_v28, %v3172_v30  ;;  %1328 = vmatpush.bf16.msra.mxu3 %v3463_v25  ;;  %v3587_v28 = vld [vmem:[%s6402_s1 + $0x1cc] sm:$0xf]  ;;  %s427_s18 = scalar_lea.vmem %s6410_s9, %s6499_s28 }
  0x19   : > { %v3638_v27 = vld [vmem:[%s6402_s1 + $0x35c] sm:$0xf0]  ;;  %v3428_v32 = vld [vmem:[%s6402_s1 + $0x360] sm:$0xf0] }
  0x1a   : > { %v3427_v33 = vor.u32 %v3638_v27, %v3426_v26  ;;  %v3138_v35 = vld [vmem:[%s6402_s1 + $0x100] sm:$0xf]  ;;  %v3431_v38 = vor.u32 %v3634_v31, %v3428_v32  ;;  %v3562_v40 = vld [vmem:[%s6402_s1 + $0x104] sm:$0xf]  ;;  %1242 = vmatpush.bf16.msra.mxu0 %v3171_v29  ;;  %1300 = vmatpush.bf16.msra.mxu2 %v3175_v34  ;;  %v3244_v29 = vld [vmem:[%s6402_s1 + $0x1e8] sm:$0xf0] }
  0x1b   : > { %v3566_v36 = vld [vmem:[%s6402_s1 + $0x11c] sm:$0xf0]  ;;  %v3140_v41 = vld [vmem:[%s6402_s1 + $0x120] sm:$0xf0]  ;;  %v3651_v31 = vld [vmem:[%s6402_s1 + $0x3cc] sm:$0xf] }
  0x1c   : > { %v3394_v37 = vld [vmem:[%s6402_s1 + $0x300] sm:$0xf]  ;;  %v3626_v42 = vld [vmem:[%s6402_s1 + $0x304] sm:$0xf]  ;;  %v3139_v44 = vor.u32 %v3566_v36, %v3138_v35  ;;  %1271 = vmatpush.bf16.msra.mxu1 %v3427_v33  ;;  %v3143_v46 = vor.u32 %v3562_v40, %v3140_v41  ;;  %1329 = vmatpush.bf16.msra.mxu3 %v3431_v38  ;;  %v3500_v32 = vld [vmem:[%s6402_s1 + $0x3e8] sm:$0xf0] }
  0x1d   : > { %v3630_v39 = vld [vmem:[%s6402_s1 + $0x31c] sm:$0xf0]  ;;  %v3396_v43 = vld [vmem:[%s6402_s1 + $0x320] sm:$0xf0]  ;;  %v3242_v33 = vld [vmem:[%s6402_s1 + $0x1c8] sm:$0xf] }
  0x1e   : > { %v3395_v45 = vor.u32 %v3630_v39, %v3394_v37  ;;  %v3106_v47 = vld [vmem:[%s6402_s1 + $0xc0] sm:$0xf]  ;;  %v3399_v50 = vor.u32 %v3626_v42, %v3396_v43  ;;  %v3554_v52 = vld [vmem:[%s6402_s1 + $0xc4] sm:$0xf]  ;;  %1243 = vmatpush.bf16.msra.mxu0 %v3139_v44  ;;  %1301 = vmatpush.bf16.msra.mxu2 %v3143_v46  ;;  %v3591_v36 = vld [vmem:[%s6402_s1 + $0x1e4] sm:$0xf0]  ;;  %v3247_v39 = vor.u32 %v3587_v28, %v3244_v29 }
  0x1f   : > { %v3558_v48 = vld [vmem:[%s6402_s1 + $0xdc] sm:$0xf0]  ;;  %v3108_v53 = vld [vmem:[%s6402_s1 + $0xe0] sm:$0xf0]  ;;  %v3498_v37 = vld [vmem:[%s6402_s1 + $0x3c8] sm:$0xf]  ;;  %v3503_v46 = vor.u32 %v3651_v31, %v3500_v32 }
  0x20   : > { %v3362_v49 = vld [vmem:[%s6402_s1 + $0x2c0] sm:$0xf]  ;;  %v3618_v54 = vld [vmem:[%s6402_s1 + $0x2c4] sm:$0xf]  ;;  %v3107_v56 = vor.u32 %v3558_v48, %v3106_v47  ;;  %1272 = vmatpush.bf16.msra.mxu1 %v3395_v45  ;;  %v3111_v58 = vor.u32 %v3554_v52, %v3108_v53  ;;  %1330 = vmatpush.bf16.msra.mxu3 %v3399_v50  ;;  %v3655_v40 = vld [vmem:[%s6402_s1 + $0x3e4] sm:$0xf0]  ;;  %v3243_v52 = vor.u32 %v3591_v36, %v3242_v33 }
  0x21   : > { %v3622_v51 = vld [vmem:[%s6402_s1 + $0x2dc] sm:$0xf0]  ;;  %v3364_v55 = vld [vmem:[%s6402_s1 + $0x2e0] sm:$0xf0]  ;;  %v3579_v41 = vld [vmem:[%s6402_s1 + $0x18c] sm:$0xf]  ;;  %v3499_v53 = vor.u32 %v3655_v40, %v3498_v37 }
  0x22   : > { %v3363_v57 = vor.u32 %v3622_v51, %v3362_v49  ;;  %v3074_v59 = vld [vmem:[%s6402_s1 + $0x80] sm:$0xf]  ;;  %v3367_v62 = vor.u32 %v3618_v54, %v3364_v55  ;;  %v3546_v0 = vld [vmem:[%s6402_s1 + $0x84] sm:$0xf]  ;;  %1244 = vmatpush.bf16.msra.mxu0 %v3107_v56  ;;  %1302 = vmatpush.bf16.msra.mxu2 %v3111_v58  ;;  %v3212_v42 = vld [vmem:[%s6402_s1 + $0x1a8] sm:$0xf0] }
  0x23   : > { %v3550_v60 = vld [vmem:[%s6402_s1 + $0x9c] sm:$0xf0]  ;;  %v3076_v1 = vld [vmem:[%s6402_s1 + $0xa0] sm:$0xf0]  ;;  %v432_v44 = vld [vmem:[%s4084_s15 + $0x10] sm:$0xff]  ;;  %v3215_v54 = vor.u32 %v3579_v41, %v3212_v42 }
  0x24   : > { %v3330_v61 = vld [vmem:[%s6402_s1 + $0x280] sm:$0xf]  ;;  %v3610_v2 = vld [vmem:[%s6402_s1 + $0x284] sm:$0xf]  ;;  %v3075_v4 = vor.u32 %v3550_v60, %v3074_v59  ;;  %1273 = vmatpush.bf16.msra.mxu1 %v3363_v57  ;;  %v3079_v9 = vor.u32 %v3546_v0, %v3076_v1  ;;  %1331 = vmatpush.bf16.msra.mxu3 %v3367_v62  ;;  %v431_v45 = vld [vmem:[%s4084_s15 + $0x8] sm:$0xff] }
  0x25   : > { %v3614_v63 = vld [vmem:[%s6402_s1 + $0x29c] sm:$0xf0]  ;;  %v3332_v3 = vld [vmem:[%s6402_s1 + $0x2a0] sm:$0xf0]  ;;  %v433_v48 = vld [vmem:[%s4084_s15 + $0x18] sm:$0xff] }
  0x26   : > { %v3042_v5 = vld [vmem:[%s6402_s1 + $0x40] sm:$0xf]  ;;  %v3331_v8 = vor.u32 %v3614_v63, %v3330_v61  ;;  %v3538_v11 = vld [vmem:[%s6402_s1 + $0x44] sm:$0xf]  ;;  %v3335_v13 = vor.u32 %v3610_v2, %v3332_v3  ;;  %1245 = vmatpush.bf16.msra.mxu0 %v3075_v4  ;;  %1303 = vmatpush.bf16.msra.mxu2 %v3079_v9  ;;  %v3643_v49 = vld [vmem:[%s6402_s1 + $0x38c] sm:$0xf]  ;;  %v4107_v51 = vpack.c.bf16 %v433_v48, %v431_v45 }
  0x27   : > { %v3542_v6 = vld [vmem:[%s6402_s1 + $0x5c] sm:$0xf0]  ;;  %v3044_v12 = vld [vmem:[%s6402_s1 + $0x60] sm:$0xf0]  ;;  %v3468_v50 = vld [vmem:[%s6402_s1 + $0x3a8] sm:$0xf0] }
  0x28   : > { %v3298_v7 = vld [vmem:[%s6402_s1 + $0x240] sm:$0xf]  ;;  %v3602_v14 = vld [vmem:[%s6402_s1 + $0x244] sm:$0xf]  ;;  %v3043_v18 = vor.u32 %v3542_v6, %v3042_v5  ;;  %1274 = vmatpush.bf16.msra.mxu1 %v3331_v8  ;;  %v3047_v22 = vor.u32 %v3538_v11, %v3044_v12  ;;  %1332 = vmatpush.bf16.msra.mxu3 %v3335_v13  ;;  %v3210_v55 = vld [vmem:[%s6402_s1 + $0x188] sm:$0xf]  ;;  %v3471_v58 = vor.u32 %v3643_v49, %v3468_v50 }
  0x29   : > { %v3606_v10 = vld [vmem:[%s6402_s1 + $0x25c] sm:$0xf0]  ;;  %v3300_v15 = vld [vmem:[%s6402_s1 + $0x260] sm:$0xf0]  ;;  %v3583_v56 = vld [vmem:[%s6402_s1 + $0x1a4] sm:$0xf0] }
  0x2a   : > { %v3010_v16 = vld [vmem:[%s6402_s1] sm:$0xf]  ;;  %v3299_v21 = vor.u32 %v3606_v10, %v3298_v7  ;;  %v3530_v23 = vld [vmem:[%s6402_s1 + $0x4] sm:$0xf]  ;;  %v3303_v25 = vor.u32 %v3602_v14, %v3300_v15  ;;  %1246 = vmatpush.bf16.msra.mxu0 %v3043_v18  ;;  %1304 = vmatpush.bf16.msra.mxu2 %v3047_v22  ;;  %v3466_v57 = vld [vmem:[%s6402_s1 + $0x388] sm:$0xf]  ;;  %v3211_v0 = vor.u32 %v3583_v56, %v3210_v55 }
  0x2b   : > { %v3534_v17 = vld [vmem:[%s6402_s1 + $0x1c] sm:$0xf0]  ;;  %v3012_v24 = vld [vmem:[%s6402_s1 + $0x20] sm:$0xf0]  ;;  %v3647_v59 = vld [vmem:[%s6402_s1 + $0x3a4] sm:$0xf0] }
  0x2c   : > { %v3266_v19 = vld [vmem:[%s6402_s1 + $0x200] sm:$0xf]  ;;  %v3594_v26 = vld [vmem:[%s6402_s1 + $0x204] sm:$0xf]  ;;  %v3011_v30 = vor.u32 %v3534_v17, %v3010_v16  ;;  %1275 = vmatpush.bf16.msra.mxu1 %v3299_v21  ;;  %v3015_v35 = vor.u32 %v3530_v23, %v3012_v24  ;;  %1333 = vmatpush.bf16.msra.mxu3 %v3303_v25  ;;  %v3571_v60 = vld [vmem:[%s6402_s1 + $0x14c] sm:$0xf]  ;;  %v3467_v1 = vor.u32 %v3647_v59, %v3466_v57 }
  0x2d   : > { %v3598_v20 = vld [vmem:[%s6402_s1 + $0x21c] sm:$0xf0]  ;;  %v3268_v27 = vld [vmem:[%s6402_s1 + $0x220] sm:$0xf0]  ;;  %v3180_v61 = vld [vmem:[%s6402_s1 + $0x168] sm:$0xf0] }
  0x2e   : > { %v3267_v34 = vor.u32 %v3598_v20, %v3266_v19  ;;  %v3271_v38 = vor.u32 %v3594_v26, %v3268_v27  ;;  %v430_v43 = vld [vmem:[%s4084_s15] sm:$0xff]  ;;  %1247 = vmatpush.bf16.msra.mxu0 %v3011_v30  ;;  %1305 = vmatpush.bf16.msra.mxu2 %v3015_v35  ;;  %v3635_v62 = vld [vmem:[%s6402_s1 + $0x34c] sm:$0xf]  ;;  %v3183_v2 = vor.u32 %v3571_v60, %v3180_v61  ;;  %v3178_v3 = vld [vmem:[%s6402_s1 + $0x148] sm:$0xf] }
  0x2f   : > { %v4098_v47 = vpack.c.bf16 %v432_v44, %v430_v43  ;;  %v3436_v63 = vld [vmem:[%s6402_s1 + $0x368] sm:$0xf0]  ;;  %v3575_v4 = vld [vmem:[%s6402_s1 + $0x164] sm:$0xf0]  ;;  %v434_v13 = vld [vmem:[%s4084_s15 + $0x20] sm:$0xff] }
  0x30   : > { %1276 = vmatpush.bf16.msra.mxu1 %v3267_v34  ;;  %1334 = vmatpush.bf16.msra.mxu3 %v3271_v38  ;;  %v3434_v5 = vld [vmem:[%s6402_s1 + $0x348] sm:$0xf]  ;;  %v3439_v6 = vor.u32 %v3635_v62, %v3436_v63  ;;  %v3563_v8 = vld [vmem:[%s6402_s1 + $0x10c] sm:$0xf]  ;;  %v3179_v12 = vor.u32 %v3575_v4, %v3178_v3  ;;  %v436_v14 = vld [vmem:[%s4084_s15 + $0x30] sm:$0xff] }
  0x31   : > { %1248 = vmatmul.bf16.vlgmr.msra.gmra.mxu0 %v4098_v47  ;;  %1306 = vmatmul.bf16.vlgmr.msra.gmra.mxu2 %v4098_v47  ;;  %v3639_v7 = vld [vmem:[%s6402_s1 + $0x364] sm:$0xf0]  ;;  %v3148_v9 = vld [vmem:[%s6402_s1 + $0x128] sm:$0xf0]  ;;  %v437_v27 = vld [vmem:[%s4084_s15 + $0x38] sm:$0xff]  ;;  %v4198_v34 = vpack.c.bf16 %v436_v14, %v434_v13 }
  0x32   : > { %1414 = vmatpush.bf16.msrb.mxu2 %v3247_v39  ;;  %1356 = vmatpush.bf16.msrb.mxu0 %v3243_v52  ;;  %v3627_v10 = vld [vmem:[%s6402_s1 + $0x30c] sm:$0xf]  ;;  %v3435_v15 = vor.u32 %v3639_v7, %v3434_v5  ;;  %v3151_v16 = vor.u32 %v3563_v8, %v3148_v9  ;;  %v3146_v17 = vld [vmem:[%s6402_s1 + $0x108] sm:$0xf]  ;;  %v440_v13 = vld [vmem:[%s4084_s15 + $0x50] sm:$0xff] }
  0x33   : > { %1277 = vmatmul.bf16.vlgmr.msra.gmra.mxu1 %v4107_v51  ;;  %1335 = vmatmul.bf16.vlgmr.msra.gmra.mxu3 %v4107_v51  ;;  %v3404_v11 = vld [vmem:[%s6402_s1 + $0x328] sm:$0xf0]  ;;  %v3567_v18 = vld [vmem:[%s6402_s1 + $0x124] sm:$0xf0] }
  0x34   : > { %1443 = vmatpush.bf16.msrb.mxu3 %v3503_v46  ;;  %1385 = vmatpush.bf16.msrb.mxu1 %v3499_v53  ;;  %v3402_v19 = vld [vmem:[%s6402_s1 + $0x308] sm:$0xf]  ;;  %v3407_v20 = vor.u32 %v3627_v10, %v3404_v11  ;;  %v3555_v22 = vld [vmem:[%s6402_s1 + $0xcc] sm:$0xf]  ;;  %v3147_v28 = vor.u32 %v3567_v18, %v3146_v17 }
  0x35   : > { %v3631_v21 = vld [vmem:[%s6402_s1 + $0x324] sm:$0xf0]  ;;  %v3116_v23 = vld [vmem:[%s6402_s1 + $0xe8] sm:$0xf0] }
  0x36   : > { %1415 = vmatpush.bf16.msrb.mxu2 %v3215_v54  ;;  %1357 = vmatpush.bf16.msrb.mxu0 %v3211_v0  ;;  %v435_v24 = vld [vmem:[%s4084_s15 + $0x28] sm:$0xff]  ;;  %v3403_v29 = vor.u32 %v3631_v21, %v3402_v19  ;;  %v3119_v30 = vor.u32 %v3555_v22, %v3116_v23  ;;  %v3252_v21 = vld [vmem:[%s6402_s1 + $0x1f0] sm:$0xf0] }
  0x37   : > { %v3619_v25 = vld [vmem:[%s6402_s1 + $0x2cc] sm:$0xf]  ;;  %v3114_v31 = vld [vmem:[%s6402_s1 + $0xc8] sm:$0xf]  ;;  %v4209_v39 = vpack.c.bf16 %v437_v27, %v435_v24  ;;  %v3652_v22 = vld [vmem:[%s6402_s1 + $0x3d4] sm:$0xf] }
  0x38   : > { %1444 = vmatpush.bf16.msrb.mxu3 %v3471_v58  ;;  %1386 = vmatpush.bf16.msrb.mxu1 %v3467_v1  ;;  %v3372_v26 = vld [vmem:[%s6402_s1 + $0x2e8] sm:$0xf0]  ;;  %v3559_v32 = vld [vmem:[%s6402_s1 + $0xe4] sm:$0xf0]  ;;  %v3508_v24 = vld [vmem:[%s6402_s1 + $0x3f0] sm:$0xf0] }
  0x39   : > { %v3370_v33 = vld [vmem:[%s6402_s1 + $0x2c8] sm:$0xf]  ;;  %v3375_v35 = vor.u32 %v3619_v25, %v3372_v26  ;;  %v3547_v37 = vld [vmem:[%s6402_s1 + $0x8c] sm:$0xf]  ;;  %v3115_v42 = vor.u32 %v3559_v32, %v3114_v31  ;;  %v3250_v25 = vld [vmem:[%s6402_s1 + $0x1d0] sm:$0xf]  ;;  %v3511_v27 = vor.u32 %v3652_v22, %v3508_v24 }
  0x3a   : > { %1416 = vmatpush.bf16.msrb.mxu2 %v3183_v2  ;;  %1358 = vmatpush.bf16.msrb.mxu0 %v3179_v12  ;;  %v3623_v36 = vld [vmem:[%s6402_s1 + $0x2e4] sm:$0xf0]  ;;  %v3084_v38 = vld [vmem:[%s6402_s1 + $0xa8] sm:$0xf0]  ;;  %v438_v12 = vld [vmem:[%s4084_s15 + $0x40] sm:$0xff] }
  0x3b   : > { %v3611_v40 = vld [vmem:[%s6402_s1 + $0x28c] sm:$0xf]  ;;  %v3371_v43 = vor.u32 %v3623_v36, %v3370_v33  ;;  %v3087_v44 = vor.u32 %v3547_v37, %v3084_v38  ;;  %v3082_v45 = vld [vmem:[%s6402_s1 + $0x88] sm:$0xf]  ;;  %v4285_v18 = vpack.c.bf16 %v440_v13, %v438_v12  ;;  %v3592_v26 = vld [vmem:[%s6402_s1 + $0x1ec] sm:$0xf0] }
  0x3c   : > { %1445 = vmatpush.bf16.msrb.mxu3 %v3439_v6  ;;  %1387 = vmatpush.bf16.msrb.mxu1 %v3435_v15  ;;  %v3340_v41 = vld [vmem:[%s6402_s1 + $0x2a8] sm:$0xf0]  ;;  %v3551_v46 = vld [vmem:[%s6402_s1 + $0xa4] sm:$0xf0]  ;;  %v441_v15 = vld [vmem:[%s4084_s15 + $0x58] sm:$0xff] }
  0x3d   : > { %v3343_v48 = vor.u32 %v3611_v40, %v3340_v41  ;;  %v3338_v49 = vld [vmem:[%s6402_s1 + $0x288] sm:$0xf]  ;;  %v3083_v52 = vor.u32 %v3551_v46, %v3082_v45  ;;  %v3539_v53 = vld [vmem:[%s6402_s1 + $0x4c] sm:$0xf]  ;;  %v3580_v31 = vld [vmem:[%s6402_s1 + $0x194] sm:$0xf] }
  0x3e   : > { %1417 = vmatpush.bf16.msrb.mxu2 %v3151_v16  ;;  %1359 = vmatpush.bf16.msrb.mxu0 %v3147_v28  ;;  %v3615_v50 = vld [vmem:[%s6402_s1 + $0x2a4] sm:$0xf0]  ;;  %v3052_v54 = vld [vmem:[%s6402_s1 + $0x68] sm:$0xf0]  ;;  %v3251_v28 = vor.u32 %v3592_v26, %v3250_v25  ;;  %v3220_v33 = vld [vmem:[%s6402_s1 + $0x1b0] sm:$0xf0] }
  0x3f   : > { %v3603_v55 = vld [vmem:[%s6402_s1 + $0x24c] sm:$0xf]  ;;  %v3339_v56 = vor.u32 %v3615_v50, %v3338_v49  ;;  %v3055_v57 = vor.u32 %v3539_v53, %v3052_v54  ;;  %v3050_v59 = vld [vmem:[%s6402_s1 + $0x48] sm:$0xf]  ;;  %v3476_v36 = vld [vmem:[%s6402_s1 + $0x3b0] sm:$0xf0]  ;;  %v3223_v37 = vor.u32 %v3580_v31, %v3220_v33 }
  0x40   : > { %1446 = vmatpush.bf16.msrb.mxu3 %v3407_v20  ;;  %1388 = vmatpush.bf16.msrb.mxu1 %v3403_v29  ;;  %v3308_v58 = vld [vmem:[%s6402_s1 + $0x268] sm:$0xf0]  ;;  %v3543_v60 = vld [vmem:[%s6402_s1 + $0x64] sm:$0xf0]  ;;  %v3588_v20 = vld [vmem:[%s6402_s1 + $0x1d4] sm:$0xf] }
  0x41   : > { %1253 = vmatmul.bf16.gmra.mxu0 %v4198_v34  ;;  %1311 = vmatmul.bf16.gmra.mxu2 %v4198_v34  ;;  %v3311_v61 = vor.u32 %v3603_v55, %v3308_v58  ;;  %v3306_v62 = vld [vmem:[%s6402_s1 + $0x248] sm:$0xf]  ;;  %v3531_v0 = vld [vmem:[%s6402_s1 + $0xc] sm:$0xf]  ;;  %v3051_v4 = vor.u32 %v3543_v60, %v3050_v59  ;;  %v3255_v23 = vor.u32 %v3588_v20, %v3252_v21  ;;  %v3506_v29 = vld [vmem:[%s6402_s1 + $0x3d0] sm:$0xf] }
  0x42   : > { %1418 = vmatpush.bf16.msrb.mxu2 %v3119_v30  ;;  %1360 = vmatpush.bf16.msrb.mxu0 %v3115_v42  ;;  %v3607_v63 = vld [vmem:[%s6402_s1 + $0x264] sm:$0xf0]  ;;  %v3020_v1 = vld [vmem:[%s6402_s1 + $0x28] sm:$0xf0]  ;;  %v3656_v30 = vld [vmem:[%s6402_s1 + $0x3ec] sm:$0xf0] }
  0x43   : > { %1282 = vmatmul.bf16.gmra.mxu1 %v4209_v39  ;;  %1340 = vmatmul.bf16.gmra.mxu3 %v4209_v39  ;;  %v3595_v2 = vld [vmem:[%s6402_s1 + $0x20c] sm:$0xf]  ;;  %v3307_v5 = vor.u32 %v3607_v63, %v3306_v62  ;;  %v3023_v6 = vor.u32 %v3531_v0, %v3020_v1  ;;  %v3018_v7 = vld [vmem:[%s6402_s1 + $0x8] sm:$0xf]  ;;  %v3507_v32 = vor.u32 %v3656_v30, %v3506_v29  ;;  %v3218_v40 = vld [vmem:[%s6402_s1 + $0x190] sm:$0xf] }
  0x44   : > { %1447 = vmatpush.bf16.msrb.mxu3 %v3375_v35  ;;  %1389 = vmatpush.bf16.msrb.mxu1 %v3371_v43  ;;  %v3276_v3 = vld [vmem:[%s6402_s1 + $0x228] sm:$0xf0]  ;;  %v3535_v8 = vld [vmem:[%s6402_s1 + $0x24] sm:$0xf0]  ;;  %v3644_v35 = vld [vmem:[%s6402_s1 + $0x394] sm:$0xf] }
  0x45   : > { %v3279_v9 = vor.u32 %v3595_v2, %v3276_v3  ;;  %v3274_v10 = vld [vmem:[%s6402_s1 + $0x208] sm:$0xf]  ;;  %v3019_v16 = vor.u32 %v3535_v8, %v3018_v7  ;;  %v3479_v38 = vor.u32 %v3644_v35, %v3476_v36  ;;  %v3584_v41 = vld [vmem:[%s6402_s1 + $0x1ac] sm:$0xf0]  ;;  %v442_v46 = vld [vmem:[%s4084_s15 + $0x60] sm:$0xff] }
  0x46   : > { %1419 = vmatpush.bf16.msrb.mxu2 %v3087_v44  ;;  %1361 = vmatpush.bf16.msrb.mxu0 %v3083_v52  ;;  %v3599_v11 = vld [vmem:[%s6402_s1 + $0x224] sm:$0xf0]  ;;  %v3474_v42 = vld [vmem:[%s6402_s1 + $0x390] sm:$0xf]  ;;  %v3219_v43 = vor.u32 %v3584_v41, %v3218_v40  ;;  %v445_v50 = vld [vmem:[%s4084_s15 + $0x78] sm:$0xff] }
  0x47   : > { %v439_v14 = vld [vmem:[%s4084_s15 + $0x48] sm:$0xff]  ;;  %v3275_v17 = vor.u32 %v3599_v11, %v3274_v10  ;;  %v3648_v44 = vld [vmem:[%s6402_s1 + $0x3ac] sm:$0xf0]  ;;  %v3572_v54 = vld [vmem:[%s6402_s1 + $0x154] sm:$0xf] }
  0x48   : > { %1448 = vmatpush.bf16.msrb.mxu3 %v3343_v48  ;;  %1390 = vmatpush.bf16.msrb.mxu1 %v3339_v56  ;;  %v4287_v19 = vpack.c.bf16 %v441_v15, %v439_v14  ;;  %v3475_v45 = vor.u32 %v3648_v44, %v3474_v42  ;;  %v444_v48 = vld [vmem:[%s4084_s15 + $0x70] sm:$0xff]  ;;  %v443_v49 = vld [vmem:[%s4084_s15 + $0x68] sm:$0xff]  ;;  %s6095_s15 = sadd.s32 %s3002_s19, %s6497_s16 }
  0x49   : > { %v4345_v52 = vpack.c.bf16 %v444_v48, %v442_v46  ;;  %v4347_v53 = vpack.c.bf16 %v445_v50, %v443_v49  ;;  %v3188_v55 = vld [vmem:[%s6402_s1 + $0x170] sm:$0xf0]  ;;  %v3186_v59 = vld [vmem:[%s6402_s1 + $0x150] sm:$0xf]  ;;  %s3003_s25 = sshll.u32 %s6095_s15, 3 }
  0x4a   : > { %1420 = vmatpush.bf16.msrb.mxu2 %v3055_v57  ;;  %1362 = vmatpush.bf16.msrb.mxu0 %v3051_v4  ;;  %v3636_v56 = vld [vmem:[%s6402_s1 + $0x354] sm:$0xf]  ;;  %v3191_v57 = vor.u32 %v3572_v54, %v3188_v55  ;;  %v3576_v60 = vld [vmem:[%s6402_s1 + $0x16c] sm:$0xf0]  ;;  %s6111_s24 = scalar_lea.vmem %s6409_s8, %s3003_s25  ;;  %s6237_s27 = scalar_lea.vmem %s6408_s7, %s3003_s25 }
  0x4b   : > { %v3444_v58 = vld [vmem:[%s6402_s1 + $0x370] sm:$0xf0]  ;;  %v3187_v62 = vor.u32 %v3576_v60, %v3186_v59  ;;  %v3442_v63 = vld [vmem:[%s6402_s1 + $0x350] sm:$0xf] }
  0x4c   : > { %1449 = vmatpush.bf16.msrb.mxu3 %v3311_v61  ;;  %1391 = vmatpush.bf16.msrb.mxu1 %v3307_v5  ;;  %v3447_v61 = vor.u32 %v3636_v56, %v3444_v58  ;;  %v3640_v0 = vld [vmem:[%s6402_s1 + $0x36c] sm:$0xf0]  ;;  %v3564_v1 = vld [vmem:[%s6402_s1 + $0x114] sm:$0xf] }
  0x4d   : > { %v3443_v2 = vor.u32 %v3640_v0, %v3442_v63  ;;  %v3156_v3 = vld [vmem:[%s6402_s1 + $0x130] sm:$0xf0]  ;;  %v3154_v8 = vld [vmem:[%s6402_s1 + $0x110] sm:$0xf] }
  0x4e   : > { %1421 = vmatpush.bf16.msrb.mxu2 %v3023_v6  ;;  %1363 = vmatpush.bf16.msrb.mxu0 %v3019_v16  ;;  %v3628_v4 = vld [vmem:[%s6402_s1 + $0x314] sm:$0xf]  ;;  %v3159_v6 = vor.u32 %v3564_v1, %v3156_v3  ;;  %v3410_v10 = vld [vmem:[%s6402_s1 + $0x310] sm:$0xf] }
  0x4f   : > { %v3412_v5 = vld [vmem:[%s6402_s1 + $0x330] sm:$0xf0]  ;;  %v3632_v12 = vld [vmem:[%s6402_s1 + $0x32c] sm:$0xf0] }
  0x50   : > { %1450 = vmatpush.bf16.msrb.mxu3 %v3279_v9  ;;  %1392 = vmatpush.bf16.msrb.mxu1 %v3275_v17  ;;  %v3415_v7 = vor.u32 %v3628_v4, %v3412_v5  ;;  %v3568_v9 = vld [vmem:[%s6402_s1 + $0x12c] sm:$0xf0]  ;;  %v3411_v13 = vor.u32 %v3632_v12, %v3410_v10  ;;  %v3556_v14 = vld [vmem:[%s6402_s1 + $0xd4] sm:$0xf]  ;;  %v3516_v10 = vld [vmem:[%s6402_s1 + $0x3f8] sm:$0xf0] }
  0x51   : > { %1258 = vmatmul.bf16.gmra.mxu0 %v4285_v18  ;;  %1316 = vmatmul.bf16.gmra.mxu2 %v4285_v18  ;;  %v3155_v11 = vor.u32 %v3568_v9, %v3154_v8  ;;  %v3124_v15 = vld [vmem:[%s6402_s1 + $0xf0] sm:$0xf0]  ;;  %v3122_v21 = vld [vmem:[%s6402_s1 + $0xd0] sm:$0xf]  ;;  %v3653_v8 = vld [vmem:[%s6402_s1 + $0x3dc] sm:$0xf] }
  0x52   : > { %1530 = vmatpush.bf16.msra.mxu2 %v3255_v23  ;;  %1472 = vmatpush.bf16.msra.mxu0 %v3251_v28  ;;  %v3620_v16 = vld [vmem:[%s6402_s1 + $0x2d4] sm:$0xf]  ;;  %v3127_v17 = vor.u32 %v3556_v14, %v3124_v15  ;;  %v3560_v22 = vld [vmem:[%s6402_s1 + $0xec] sm:$0xf0]  ;;  %v3258_v12 = vld [vmem:[%s6402_s1 + $0x1d8] sm:$0xf] }
  0x53   : > { %1287 = vmatmul.bf16.gmra.mxu1 %v4287_v19  ;;  %1345 = vmatmul.bf16.gmra.mxu3 %v4287_v19  ;;  %v3380_v20 = vld [vmem:[%s6402_s1 + $0x2f0] sm:$0xf0]  ;;  %v3123_v24 = vor.u32 %v3560_v22, %v3122_v21  ;;  %v3378_v25 = vld [vmem:[%s6402_s1 + $0x2d0] sm:$0xf]  ;;  %v3514_v15 = vld [vmem:[%s6402_s1 + $0x3d8] sm:$0xf] }
  0x54   : > { %1559 = vmatpush.bf16.msra.mxu3 %v3511_v27  ;;  %1501 = vmatpush.bf16.msra.mxu1 %v3507_v32  ;;  %v3383_v23 = vor.u32 %v3620_v16, %v3380_v20  ;;  %v3624_v26 = vld [vmem:[%s6402_s1 + $0x2ec] sm:$0xf0]  ;;  %v3548_v27 = vld [vmem:[%s6402_s1 + $0x94] sm:$0xf]  ;;  %v3657_v16 = vld [vmem:[%s6402_s1 + $0x3f4] sm:$0xf0] }
  0x55   : > { %v3379_v28 = vor.u32 %v3624_v26, %v3378_v25  ;;  %v3092_v29 = vld [vmem:[%s6402_s1 + $0xb0] sm:$0xf0]  ;;  %v3090_v35 = vld [vmem:[%s6402_s1 + $0x90] sm:$0xf]  ;;  %v3515_v20 = vor.u32 %v3657_v16, %v3514_v15  ;;  %v3228_v21 = vld [vmem:[%s6402_s1 + $0x1b8] sm:$0xf0] }
  0x56   : > { %1531 = vmatpush.bf16.msra.mxu2 %v3223_v37  ;;  %1473 = vmatpush.bf16.msra.mxu0 %v3219_v43  ;;  %v3612_v30 = vld [vmem:[%s6402_s1 + $0x294] sm:$0xf]  ;;  %v3095_v32 = vor.u32 %v3548_v27, %v3092_v29  ;;  %v3552_v36 = vld [vmem:[%s6402_s1 + $0xac] sm:$0xf0]  ;;  %v3645_v22 = vld [vmem:[%s6402_s1 + $0x39c] sm:$0xf] }
  0x57   : > { %v3348_v31 = vld [vmem:[%s6402_s1 + $0x2b0] sm:$0xf0]  ;;  %v3346_v37 = vld [vmem:[%s6402_s1 + $0x290] sm:$0xf]  ;;  %v3226_v26 = vld [vmem:[%s6402_s1 + $0x198] sm:$0xf] }
  0x58   : > { %1560 = vmatpush.bf16.msra.mxu3 %v3479_v38  ;;  %1502 = vmatpush.bf16.msra.mxu1 %v3475_v45  ;;  %v3351_v33 = vor.u32 %v3612_v30, %v3348_v31  ;;  %v3091_v38 = vor.u32 %v3552_v36, %v3090_v35  ;;  %v3616_v40 = vld [vmem:[%s6402_s1 + $0x2ac] sm:$0xf0]  ;;  %v3540_v42 = vld [vmem:[%s6402_s1 + $0x54] sm:$0xf]  ;;  %v3585_v27 = vld [vmem:[%s6402_s1 + $0x1b4] sm:$0xf0] }
  0x59   : > { %v3347_v41 = vor.u32 %v3616_v40, %v3346_v37  ;;  %v3060_v43 = vld [vmem:[%s6402_s1 + $0x70] sm:$0xf0]  ;;  %v3058_v48 = vld [vmem:[%s6402_s1 + $0x50] sm:$0xf]  ;;  %v3482_v29 = vld [vmem:[%s6402_s1 + $0x398] sm:$0xf] }
  0x5a   : > { %1532 = vmatpush.bf16.msra.mxu2 %v3191_v57  ;;  %1474 = vmatpush.bf16.msra.mxu0 %v3187_v62  ;;  %v3604_v44 = vld [vmem:[%s6402_s1 + $0x254] sm:$0xf]  ;;  %v3063_v45 = vor.u32 %v3540_v42, %v3060_v43  ;;  %v3544_v49 = vld [vmem:[%s6402_s1 + $0x6c] sm:$0xf0]  ;;  %v3649_v30 = vld [vmem:[%s6402_s1 + $0x3b4] sm:$0xf0] }
  0x5b   : > { %v3316_v46 = vld [vmem:[%s6402_s1 + $0x270] sm:$0xf0]  ;;  %v3059_v54 = vor.u32 %v3544_v49, %v3058_v48  ;;  %v3314_v55 = vld [vmem:[%s6402_s1 + $0x250] sm:$0xf]  ;;  %v3483_v31 = vor.u32 %v3649_v30, %v3482_v29  ;;  %v3637_v35 = vld [vmem:[%s6402_s1 + $0x35c] sm:$0xf] }
  0x5c   : > { %1561 = vmatpush.bf16.msra.mxu3 %v3447_v61  ;;  %1503 = vmatpush.bf16.msra.mxu1 %v3443_v2  ;;  %v3319_v50 = vor.u32 %v3604_v44, %v3316_v46  ;;  %v3608_v56 = vld [vmem:[%s6402_s1 + $0x26c] sm:$0xf0]  ;;  %v3532_v57 = vld [vmem:[%s6402_s1 + $0x14] sm:$0xf]  ;;  %v3452_v37 = vld [vmem:[%s6402_s1 + $0x378] sm:$0xf0] }
  0x5d   : > { %v3315_v58 = vor.u32 %v3608_v56, %v3314_v55  ;;  %v3028_v59 = vld [vmem:[%s6402_s1 + $0x30] sm:$0xf0]  ;;  %v3026_v0 = vld [vmem:[%s6402_s1 + $0x10] sm:$0xf]  ;;  %v4576_v40 = vld [vmem:[%s6403_s2] sm:$0xff] }
  0x5e   : > { %1533 = vmatpush.bf16.msra.mxu2 %v3159_v6  ;;  %1475 = vmatpush.bf16.msra.mxu0 %v3155_v11  ;;  %v3596_v60 = vld [vmem:[%s6402_s1 + $0x214] sm:$0xf]  ;;  %v3031_v62 = vor.u32 %v3532_v57, %v3028_v59  ;;  %v3536_v1 = vld [vmem:[%s6402_s1 + $0x2c] sm:$0xf0]  ;;  %v3589_v6 = vld [vmem:[%s6402_s1 + $0x1dc] sm:$0xf]  ;;  %v3519_v11 = vor.u32 %v3653_v8, %v3516_v10 }
  0x5f   : > { %v3284_v61 = vld [vmem:[%s6402_s1 + $0x230] sm:$0xf0]  ;;  %v3027_v2 = vor.u32 %v3536_v1, %v3026_v0  ;;  %v3282_v3 = vld [vmem:[%s6402_s1 + $0x210] sm:$0xf]  ;;  %v3577_v42 = vld [vmem:[%s6402_s1 + $0x174] sm:$0xf0] }
  0x60   : > { %1562 = vmatpush.bf16.msra.mxu3 %v3415_v7  ;;  %1504 = vmatpush.bf16.msra.mxu1 %v3411_v13  ;;  %v3287_v63 = vor.u32 %v3596_v60, %v3284_v61  ;;  %v3600_v4 = vld [vmem:[%s6402_s1 + $0x22c] sm:$0xf0]  ;;  %v3260_v7 = vld [vmem:[%s6402_s1 + $0x1f8] sm:$0xf0]  ;;  %v3593_v13 = vld [vmem:[%s6402_s1 + $0x1f4] sm:$0xf0] }
  0x61   : > { %1263 = vmatmul.bf16.gmra.mxu0 %v4345_v52  ;;  %1321 = vmatmul.bf16.gmra.mxu2 %v4345_v52  ;;  %v3283_v5 = vor.u32 %v3600_v4, %v3282_v3  ;;  %v3263_v9 = vor.u32 %v3589_v6, %v3260_v7  ;;  %v3259_v14 = vor.u32 %v3593_v13, %v3258_v12  ;;  %v3450_v44 = vld [vmem:[%s6402_s1 + $0x358] sm:$0xf]  ;;  %v3565_v46 = vld [vmem:[%s6402_s1 + $0x11c] sm:$0xf]  ;;  %v4603_v55 = vperm.slane %v4576_v40, 0 }
  0x62   : > { %1534 = vmatpush.bf16.msra.mxu2 %v3127_v17  ;;  %1476 = vmatpush.bf16.msra.mxu0 %v3123_v24  ;;  %v3581_v17 = vld [vmem:[%s6402_s1 + $0x19c] sm:$0xf]  ;;  %v3162_v61 = vld [vmem:[%s6402_s1 + $0x118] sm:$0xf]  ;;  %v4624_v3 = vperm.slane %v4576_v40, 1 }
  0x63   : > { %1292 = vmatmul.bf16.gmra.mxu1 %v4347_v53  ;;  %1350 = vmatmul.bf16.gmra.mxu3 %v4347_v53  ;;  %v3231_v24 = vor.u32 %v3581_v17, %v3228_v21  ;;  %v3164_v49 = vld [vmem:[%s6402_s1 + $0x138] sm:$0xf0]  ;;  %v3418_v1 = vld [vmem:[%s6402_s1 + $0x318] sm:$0xf] }
  0x64   : > { %1563 = vmatpush.bf16.msra.mxu3 %v3383_v23  ;;  %1505 = vmatpush.bf16.msra.mxu1 %v3379_v28  ;;  %v3484_v23 = vld [vmem:[%s6402_s1 + $0x3b8] sm:$0xf0]  ;;  %v3227_v28 = vor.u32 %v3585_v27, %v3226_v26  ;;  %v3167_v56 = vor.u32 %v3565_v46, %v3164_v49  ;;  %v3561_v21 = vld [vmem:[%s6402_s1 + $0xf4] sm:$0xf0] }
  0x65   : > { %v3487_v25 = vor.u32 %v3645_v22, %v3484_v23  ;;  %v3132_v6 = vld [vmem:[%s6402_s1 + $0xf8] sm:$0xf0]  ;;  %v3617_v49 = vld [vmem:[%s6402_s1 + $0x2b4] sm:$0xf0] }
  0x66   : > { %1535 = vmatpush.bf16.msra.mxu2 %v3095_v32  ;;  %1477 = vmatpush.bf16.msra.mxu0 %v3091_v38  ;;  %v3573_v32 = vld [vmem:[%s6402_s1 + $0x15c] sm:$0xf]  ;;  %v3455_v38 = vor.u32 %v3637_v35, %v3452_v37 }
  0x67   : > { %v3621_v7 = vld [vmem:[%s6402_s1 + $0x2dc] sm:$0xf] }
  0x68   : > { %1564 = vmatpush.bf16.msra.mxu3 %v3351_v33  ;;  %1506 = vmatpush.bf16.msra.mxu1 %v3347_v41  ;;  %v3196_v33 = vld [vmem:[%s6402_s1 + $0x178] sm:$0xf0]  ;;  %v3194_v41 = vld [vmem:[%s6402_s1 + $0x158] sm:$0xf] }
  0x69   : > { %v3199_v36 = vor.u32 %v3573_v32, %v3196_v33  ;;  %v3195_v43 = vor.u32 %v3577_v42, %v3194_v41  ;;  %v3549_v26 = vld [vmem:[%s6402_s1 + $0x9c] sm:$0xf] }
  0x6a   : > { %1536 = vmatpush.bf16.msra.mxu2 %v3063_v45  ;;  %1478 = vmatpush.bf16.msra.mxu0 %v3059_v54  ;;  %v3641_v45 = vld [vmem:[%s6402_s1 + $0x374] sm:$0xf0]  ;;  %v3420_v54 = vld [vmem:[%s6402_s1 + $0x338] sm:$0xf0] }
  0x6b   : > { %v3451_v48 = vor.u32 %v3641_v45, %v3450_v44  ;;  %v3613_v29 = vld [vmem:[%s6402_s1 + $0x29c] sm:$0xf]  ;;  %v3553_v44 = vld [vmem:[%s6402_s1 + $0xb4] sm:$0xf0] }
  0x6c   : > { %1565 = vmatpush.bf16.msra.mxu3 %v3319_v50  ;;  %1507 = vmatpush.bf16.msra.mxu1 %v3315_v58  ;;  %v3629_v50 = vld [vmem:[%s6402_s1 + $0x31c] sm:$0xf] }
  0x6d   : > { %v3423_v57 = vor.u32 %v3629_v50, %v3420_v54  ;;  %v3356_v30 = vld [vmem:[%s6402_s1 + $0x2b8] sm:$0xf0] }
  0x6e   : > { %1537 = vmatpush.bf16.msra.mxu2 %v3031_v62  ;;  %1479 = vmatpush.bf16.msra.mxu0 %v3027_v2  ;;  %v3569_v62 = vld [vmem:[%s6402_s1 + $0x134] sm:$0xf0]  ;;  %v3359_v32 = vor.u32 %v3613_v29, %v3356_v30  ;;  %v3541_v54 = vld [vmem:[%s6402_s1 + $0x5c] sm:$0xf] }
  0x6f   : > { %v3163_v0 = vor.u32 %v3569_v62, %v3162_v61  ;;  %v3633_v2 = vld [vmem:[%s6402_s1 + $0x334] sm:$0xf0] }
  0x70   : > { %1566 = vmatpush.bf16.msra.mxu3 %v3287_v63  ;;  %1508 = vmatpush.bf16.msra.mxu1 %v3283_v5  ;;  %v3419_v4 = vor.u32 %v3633_v2, %v3418_v1  ;;  %v3557_v5 = vld [vmem:[%s6402_s1 + $0xdc] sm:$0xf] }
  0x71   : > { %1364 = vmatmul.bf16.vlgmr.msrb.gmra.mxu0 %v4098_v47  ;;  %1422 = vmatmul.bf16.vlgmr.msrb.gmra.mxu2 %v4098_v47  ;;  %v3135_v8 = vor.u32 %v3557_v5, %v3132_v6  ;;  %v3066_v6 = vld [vmem:[%s6402_s1 + $0x58] sm:$0xf] }
  0x72   : > { %1646 = vmatpush.bf16.msrb.mxu2 %v3263_v9  ;;  %1588 = vmatpush.bf16.msrb.mxu0 %v3259_v14  ;;  %v3388_v9 = vld [vmem:[%s6402_s1 + $0x2f8] sm:$0xf0] }
  0x73   : > { %1393 = vmatmul.bf16.vlgmr.msrb.gmra.mxu1 %v4107_v51  ;;  %1451 = vmatmul.bf16.vlgmr.msrb.gmra.mxu3 %v4107_v51 }
  0x74   : > { %1675 = vmatpush.bf16.msrb.mxu3 %v3519_v11  ;;  %1617 = vmatpush.bf16.msrb.mxu1 %v3515_v20  ;;  %v3391_v11 = vor.u32 %v3621_v7, %v3388_v9  ;;  %v3130_v20 = vld [vmem:[%s6402_s1 + $0xd8] sm:$0xf] }
  0x75   : > { %v3131_v23 = vor.u32 %v3561_v21, %v3130_v20  ;;  %v3545_v7 = vld [vmem:[%s6402_s1 + $0x74] sm:$0xf0] }
  0x76   : > { %1647 = vmatpush.bf16.msrb.mxu2 %v3231_v24  ;;  %1589 = vmatpush.bf16.msrb.mxu0 %v3227_v28  ;;  %v3386_v24 = vld [vmem:[%s6402_s1 + $0x2d8] sm:$0xf]  ;;  %v3100_v28 = vld [vmem:[%s6402_s1 + $0xb8] sm:$0xf0]  ;;  %v3067_v9 = vor.u32 %v3545_v7, %v3066_v6  ;;  %v1718_v6 = vld [vmem:[%s6404_s3 + $0x70] sm:$0xff] }
  0x77   : > { %v1766_v7 = vld [vmem:[%s6404_s3 + $0x1f0] sm:$0xff] }
  0x78   : > { %1676 = vmatpush.bf16.msrb.mxu3 %v3487_v25  ;;  %1618 = vmatpush.bf16.msrb.mxu1 %v3483_v31  ;;  %v3625_v25 = vld [vmem:[%s6402_s1 + $0x2f4] sm:$0xf0]  ;;  %v3103_v31 = vor.u32 %v3549_v26, %v3100_v28 }
  0x79   : > { %v3387_v27 = vor.u32 %v3625_v25, %v3386_v24  ;;  %v3034_v24 = vld [vmem:[%s6402_s1 + $0x18] sm:$0xf] }
  0x7a   : > { %1648 = vmatpush.bf16.msrb.mxu2 %v3199_v36  ;;  %1590 = vmatpush.bf16.msrb.mxu0 %v3195_v43  ;;  %v3098_v43 = vld [vmem:[%s6402_s1 + $0x98] sm:$0xf] }
  0x7b   : > { %v3099_v46 = vor.u32 %v3553_v44, %v3098_v43  ;;  %v3537_v25 = vld [vmem:[%s6402_s1 + $0x34] sm:$0xf0] }
  0x7c   : > { %1677 = vmatpush.bf16.msrb.mxu3 %v3455_v38  ;;  %1619 = vmatpush.bf16.msrb.mxu1 %v3451_v48  ;;  %v3354_v48 = vld [vmem:[%s6402_s1 + $0x298] sm:$0xf]  ;;  %v3035_v30 = vor.u32 %v3537_v25, %v3034_v24 }
  0x7d   : > { %v3355_v50 = vor.u32 %v3617_v49, %v3354_v48  ;;  %v3290_v26 = vld [vmem:[%s6402_s1 + $0x218] sm:$0xf] }
  0x7e   : > { %1649 = vmatpush.bf16.msrb.mxu2 %v3167_v56  ;;  %1591 = vmatpush.bf16.msrb.mxu0 %v3163_v0  ;;  %v3068_v56 = vld [vmem:[%s6402_s1 + $0x78] sm:$0xf0] }
  0x80   : > { %1678 = vmatpush.bf16.msrb.mxu3 %v3423_v57  ;;  %1620 = vmatpush.bf16.msrb.mxu1 %v3419_v4  ;;  %v3605_v57 = vld [vmem:[%s6402_s1 + $0x25c] sm:$0xf] }
  0x81   : > { %1369 = vmatmul.bf16.gmra.mxu0 %v4198_v34  ;;  %1427 = vmatmul.bf16.gmra.mxu2 %v4198_v34 }
  0x82   : > { %1650 = vmatpush.bf16.msrb.mxu2 %v3135_v8  ;;  %1592 = vmatpush.bf16.msrb.mxu0 %v3131_v23 }
  0x83   : > { %1398 = vmatmul.bf16.gmra.mxu1 %v4209_v39  ;;  %1456 = vmatmul.bf16.gmra.mxu3 %v4209_v39 }
  0x84   : > { %1679 = vmatpush.bf16.msrb.mxu3 %v3391_v11  ;;  %1621 = vmatpush.bf16.msrb.mxu1 %v3387_v27  ;;  %v3609_v11 = vld [vmem:[%s6402_s1 + $0x274] sm:$0xf0] }
  0x86   : > { %1651 = vmatpush.bf16.msrb.mxu2 %v3103_v31  ;;  %1593 = vmatpush.bf16.msrb.mxu0 %v3099_v46  ;;  %v3601_v31 = vld [vmem:[%s6402_s1 + $0x234] sm:$0xf0] }
  0x88   : > { %1680 = vmatpush.bf16.msrb.mxu3 %v3359_v32  ;;  %1622 = vmatpush.bf16.msrb.mxu1 %v3355_v50 }
  0x8a   : > { %1594 = vmatpush.bf16.msrb.mxu0 %v3067_v9 }
  0x8e   : > { %1595 = vmatpush.bf16.msrb.mxu0 %v3035_v30  ;;  %v1732_v30 = vld [vmem:[%s6404_s3 + $0xe0] sm:$0xff] }
  0x91   : > { %1374 = vmatmul.bf16.gmra.mxu0 %v4285_v18  ;;  %1432 = vmatmul.bf16.gmra.mxu2 %v4285_v18 }
  0x93   : > { %1403 = vmatmul.bf16.gmra.mxu1 %v4287_v19  ;;  %1461 = vmatmul.bf16.gmra.mxu3 %v4287_v19 }
  0xa1   : > { %1379 = vmatmul.bf16.gmra.mxu0 %v4345_v52  ;;  %1437 = vmatmul.bf16.gmra.mxu2 %v4345_v52 }
  0xa3   : > { %1408 = vmatmul.bf16.gmra.mxu1 %v4347_v53  ;;  %1466 = vmatmul.bf16.gmra.mxu3 %v4347_v53 }
  0xae   : > { %v1249_v58 = vpop.f32.mrf.mxu0 }
  0xaf   : > { %v1250_v59 = vadd.f32 %v1249_v58, %v4603_v55  ;;  %v3071_v58 = vor.u32 %v3541_v54, %v3068_v56  ;;  %v1751_v54 = vld [vmem:[%s6404_s3 + $0x178] sm:$0xff] }
  0xb0   : > { %v1278_v60 = vpop.f32.mrf.mxu1  ;;  %v1719_v56 = vld [vmem:[%s6404_s3 + $0x78] sm:$0xff] }
  0xb1   : > { %v4612_v63 = vadd.f32 %v1278_v60, %v1250_v59  ;;  %1480 = vmatmul.bf16.vlgmr.msra.gmra.mxu0 %v4098_v47  ;;  %1538 = vmatmul.bf16.vlgmr.msra.gmra.mxu2 %v4098_v47  ;;  %v3324_v59 = vld [vmem:[%s6402_s1 + $0x278] sm:$0xf0] }
  0xb2   : > { %v3327_v61 = vor.u32 %v3605_v57, %v3324_v59  ;;  %1652 = vmatpush.bf16.msrb.mxu2 %v3071_v58  ;;  %v1767_v57 = vld [vmem:[%s6404_s3 + $0x1f8] sm:$0xff]  ;;  %1836 = vmatpush.msra.mxu0 %v1719_v56  ;;  %v1750_v59 = vld [vmem:[%s6404_s3 + $0x170] sm:$0xff] }
  0xb3   : > { %1509 = vmatmul.bf16.vlgmr.msra.gmra.mxu1 %v4107_v51  ;;  %1567 = vmatmul.bf16.vlgmr.msra.gmra.mxu3 %v4107_v51  ;;  %v1735_v58 = vld [vmem:[%s6404_s3 + $0xf8] sm:$0xff]  ;;  %v1762_v56 = vld [vmem:[%s6404_s3 + $0x1d0] sm:$0xff] }
  0xb4   : > { %v1307_v10 = vpop.f32.mrf.mxu2  ;;  %1681 = vmatpush.bf16.msrb.mxu3 %v3327_v61  ;;  %1837 = vmatpush.msra.mxu0 %v1718_v6  ;;  %v1728_v6 = vld [vmem:[%s6404_s3 + $0xc0] sm:$0xff] }
  0xb5   : > { %v1308_v12 = vadd.f32 %v1307_v10, %v4624_v3  ;;  %v3322_v10 = vld [vmem:[%s6402_s1 + $0x258] sm:$0xf] }
  0xb6   : > { %v1336_v13 = vpop.f32.mrf.mxu3  ;;  %v1251_v14 = vpop.f32.mrf.mxu0 }
  0xb7   : > { %v1252_v15 = vadd.f32 %v1251_v14, %v4603_v55  ;;  %v4641_v17 = vadd.f32 %v1336_v13, %v1308_v12  ;;  %v3533_v12 = vld [vmem:[%s6402_s1 + $0x1c] sm:$0xf]  ;;  %v3323_v13 = vor.u32 %v3609_v11, %v3322_v10  ;;  %v1734_v10 = vld [vmem:[%s6404_s3 + $0xf0] sm:$0xff]  ;;  %v1749_v11 = vld [vmem:[%s6404_s3 + $0x168] sm:$0xff] }
  0xb8   : > { %v1280_v16 = vpop.f32.mrf.mxu1  ;;  %v3036_v14 = vld [vmem:[%s6402_s1 + $0x38] sm:$0xf0] }
  0xb9   : > { %v4649_v22 = vadd.f32 %v1280_v16, %v1252_v15  ;;  %v3597_v15 = vld [vmem:[%s6402_s1 + $0x21c] sm:$0xf]  ;;  %v3039_v20 = vor.u32 %v3533_v12, %v3036_v14  ;;  %1623 = vmatpush.bf16.msrb.mxu1 %v3323_v13  ;;  %v1717_v12 = vld [vmem:[%s6404_s3 + $0x68] sm:$0xff] }
  0xba   : > { %v3292_v16 = vld [vmem:[%s6402_s1 + $0x238] sm:$0xf0]  ;;  %v1765_v13 = vld [vmem:[%s6404_s3 + $0x1e8] sm:$0xff]  ;;  %1838 = vmatpush.msra.mxu0 %v1717_v12 }
  0xbb   : > { %v3295_v21 = vor.u32 %v3597_v15, %v3292_v16  ;;  %1653 = vmatpush.bf16.msrb.mxu2 %v3039_v20  ;;  %v1733_v14 = vld [vmem:[%s6404_s3 + $0xe8] sm:$0xff]  ;;  %v1748_v15 = vld [vmem:[%s6404_s3 + $0x160] sm:$0xff]  ;;  %v1727_v12 = vld [vmem:[%s6404_s3 + $0xb8] sm:$0xff] }
  0xbc   : > { %v1309_v33 = vpop.f32.mrf.mxu2 }
  0xbd   : > { %v1310_v35 = vadd.f32 %v1309_v33, %v4624_v3  ;;  %1682 = vmatpush.bf16.msrb.mxu3 %v3295_v21 }
  0xbe   : > { %v1338_v36 = vpop.f32.mrf.mxu3  ;;  %v1254_v37 = vpop.f32.mrf.mxu0 }
  0xbf   : > { %v1255_v38 = vadd.f32 %v1254_v37, %v4603_v55  ;;  %v4671_v42 = vadd.f32 %v1338_v36, %v1310_v35  ;;  %v3291_v35 = vor.u32 %v3601_v31, %v3290_v26  ;;  %1918 = vmatpush.msra.mxu2 %v1751_v54  ;;  %v1715_v31 = vld [vmem:[%s6404_s3 + $0x58] sm:$0xff]  ;;  %v1714_v54 = vld [vmem:[%s6404_s3 + $0x50] sm:$0xff] }
  0xc0   : > { %v1283_v41 = vpop.f32.mrf.mxu1 }
  0xc1   : > { %v4679_v45 = vadd.f32 %v1283_v41, %v1255_v38  ;;  %1485 = vmatmul.bf16.gmra.mxu0 %v4198_v34  ;;  %1543 = vmatmul.bf16.gmra.mxu2 %v4198_v34 }
  0xc2   : > { %1624 = vmatpush.bf16.msrb.mxu1 %v3291_v35  ;;  %1959 = vmatpush.msra.mxu3 %v1767_v57  ;;  %v1746_v35 = vld [vmem:[%s6404_s3 + $0x150] sm:$0xff]  ;;  %v1745_v57 = vld [vmem:[%s6404_s3 + $0x148] sm:$0xff] }
  0xc3   : > { %1514 = vmatmul.bf16.gmra.mxu1 %v4209_v39  ;;  %1572 = vmatmul.bf16.gmra.mxu3 %v4209_v39 }
  0xc4   : > { %v1312_v60 = vpop.f32.mrf.mxu2  ;;  %1919 = vmatpush.msra.mxu2 %v1750_v59  ;;  %1960 = vmatpush.msra.mxu3 %v1766_v7  ;;  %v1761_v59 = vld [vmem:[%s6404_s3 + $0x1c8] sm:$0xff]  ;;  %v1743_v7 = vld [vmem:[%s6404_s3 + $0x138] sm:$0xff] }
  0xc5   : > { %v1313_v62 = vadd.f32 %v1312_v60, %v4624_v3 }
  0xc6   : > { %v1341_v0 = vpop.f32.mrf.mxu3  ;;  %v1256_v1 = vpop.f32.mrf.mxu0  ;;  %1877 = vmatpush.msra.mxu1 %v1735_v58  ;;  %1920 = vmatpush.msra.mxu2 %v1749_v11  ;;  %v1713_v58 = vld [vmem:[%s6404_s3 + $0x48] sm:$0xff]  ;;  %v1759_v11 = vld [vmem:[%s6404_s3 + $0x1b8] sm:$0xff] }
  0xc7   : > { %v1257_v2 = vadd.f32 %v1256_v1, %v4603_v55  ;;  %v4705_v5 = vadd.f32 %v1341_v0, %v1313_v62  ;;  %1961 = vmatpush.msra.mxu3 %v1765_v13  ;;  %v1742_v13 = vld [vmem:[%s6404_s3 + $0x130] sm:$0xff] }
  0xc8   : > { %v1285_v4 = vpop.f32.mrf.mxu1  ;;  %1878 = vmatpush.msra.mxu1 %v1734_v10  ;;  %1921 = vmatpush.msra.mxu2 %v1748_v15  ;;  %v1711_v10 = vld [vmem:[%s6404_s3 + $0x38] sm:$0xff] }
  0xc9   : > { %v4713_v8 = vadd.f32 %v1285_v4, %v1257_v2 }
  0xca   : > { %1879 = vmatpush.msra.mxu1 %v1733_v14 }
  0xcc   : > { %v1314_v23 = vpop.f32.mrf.mxu2  ;;  %1880 = vmatpush.msra.mxu1 %v1732_v30  ;;  %v1725_v30 = vld [vmem:[%s6404_s3 + $0xa8] sm:$0xff] }
  0xcd   : > { %v1315_v27 = vadd.f32 %v1314_v23, %v4624_v3 }
  0xce   : > { %v1343_v28 = vpop.f32.mrf.mxu3  ;;  %v1259_v29 = vpop.f32.mrf.mxu0 }
  0xcf   : > { %v1260_v32 = vadd.f32 %v1259_v29, %v4603_v55  ;;  %v4747_v36 = vadd.f32 %v1343_v28, %v1315_v27  ;;  %v1716_v27 = vld [vmem:[%s6404_s3 + $0x60] sm:$0xff] }
  0xd0   : > { %v1288_v33 = vpop.f32.mrf.mxu1  ;;  %v1764_v28 = vld [vmem:[%s6404_s3 + $0x1e0] sm:$0xff]  ;;  %1839 = vmatpush.msra.mxu0 %v1716_v27  ;;  %v1709_v27 = vld [vmem:[%s6404_s3 + $0x28] sm:$0xff] }
  0xd1   : > { %6435 = vst [vmem:[#allocation3_spill] sm:$0xff] %v4747_v36  ;;  %v4749_v37 = vadd.f32 %v1288_v33, %v1260_v32  ;;  %1490 = vmatmul.bf16.gmra.mxu0 %v4285_v18  ;;  %1548 = vmatmul.bf16.gmra.mxu2 %v4285_v18  ;;  %v1763_v32 = vld [vmem:[%s6404_s3 + $0x1d8] sm:$0xff] }
  0xd2   : > { %1962 = vmatpush.msra.mxu3 %v1764_v28  ;;  %v1731_v33 = vld [vmem:[%s6404_s3 + $0xd8] sm:$0xff]  ;;  %1840 = vmatpush.msra.mxu0 %v1715_v31  ;;  %v1757_v28 = vld [vmem:[%s6404_s3 + $0x1a8] sm:$0xff] }
  0xd3   : > { %1519 = vmatmul.bf16.gmra.mxu1 %v4287_v19  ;;  %1577 = vmatmul.bf16.gmra.mxu3 %v4287_v19 }
  0xd4   : > { %v1317_v38 = vpop.f32.mrf.mxu2  ;;  %1963 = vmatpush.msra.mxu3 %v1763_v32  ;;  %1881 = vmatpush.msra.mxu1 %v1731_v33  ;;  %v1708_v33 = vld [vmem:[%s6404_s3 + $0x20] sm:$0xff] }
  0xd5   : > { %v1318_v41 = vadd.f32 %v1317_v38, %v4624_v3  ;;  %1841 = vmatpush.msra.mxu0 %v1714_v54  ;;  %v1755_v54 = vld [vmem:[%s6404_s3 + $0x198] sm:$0xff] }
  0xd6   : > { %v1346_v43 = vpop.f32.mrf.mxu3  ;;  %v1261_v44 = vpop.f32.mrf.mxu0  ;;  %1964 = vmatpush.msra.mxu3 %v1762_v56  ;;  %v1723_v56 = vld [vmem:[%s6404_s3 + $0x98] sm:$0xff] }
  0xd7   : > { %v1262_v46 = vadd.f32 %v1261_v44, %v4603_v55  ;;  %v4757_v49 = vadd.f32 %v1346_v43, %v1318_v41  ;;  %1842 = vmatpush.msra.mxu0 %v1713_v58  ;;  %v1706_v58 = vld [vmem:[%s6404_s3 + $0x10] sm:$0xff] }
  0xd8   : > { %v1290_v48 = vpop.f32.mrf.mxu1  ;;  %1965 = vmatpush.msra.mxu3 %v1761_v59  ;;  %v1722_v59 = vld [vmem:[%s6404_s3 + $0x90] sm:$0xff] }
  0xd9   : > { %6436 = vst [vmem:[#allocation4_spill] sm:$0xff] %v4757_v49  ;;  %v4759_v50 = vadd.f32 %v1290_v48, %v1262_v46 }
  0xdc   : > { %v1319_v60 = vpop.f32.mrf.mxu2 }
  0xdd   : > { %v1320_v61 = vadd.f32 %v1319_v60, %v4624_v3  ;;  %v1729_v60 = vld [vmem:[%s6404_s3 + $0xc8] sm:$0xff] }
  0xde   : > { %v1348_v62 = vpop.f32.mrf.mxu3  ;;  %v1264_v0 = vpop.f32.mrf.mxu0 }
  0xdf   : > { %v1265_v1 = vadd.f32 %v1264_v0, %v4603_v55  ;;  %v4778_v4 = vadd.f32 %v1348_v62, %v1320_v61 }
  0xe0   : > { %v1293_v2 = vpop.f32.mrf.mxu1 }
  0xe1   : > { %v4786_v9 = vadd.f32 %v1293_v2, %v1265_v1  ;;  %1495 = vmatmul.bf16.gmra.mxu0 %v4345_v52  ;;  %1553 = vmatmul.bf16.gmra.mxu2 %v4345_v52  ;;  %v1712_v1 = vld [vmem:[%s6404_s3 + $0x40] sm:$0xff] }
  0xe2   : > { %v1760_v2 = vld [vmem:[%s6404_s3 + $0x1c0] sm:$0xff]  ;;  %1843 = vmatpush.msra.mxu0 %v1712_v1 }
  0xe3   : > { %6437 = vst [vmem:[#allocation5_spill] sm:$0xff] %v4786_v9  ;;  %1524 = vmatmul.bf16.gmra.mxu1 %v4347_v53  ;;  %1582 = vmatmul.bf16.gmra.mxu3 %v4347_v53 }
  0xe4   : > { %v1322_v16 = vpop.f32.mrf.mxu2  ;;  %1966 = vmatpush.msra.mxu3 %v1760_v2  ;;  %1844 = vmatpush.msra.mxu0 %v1711_v10  ;;  %v1737_v10 = vld [vmem:[%s6404_s3 + $0x108] sm:$0xff] }
  0xe5   : > { %v1323_v20 = vadd.f32 %v1322_v16, %v4624_v3 }
  0xe6   : > { %v1351_v21 = vpop.f32.mrf.mxu3  ;;  %v1266_v23 = vpop.f32.mrf.mxu0  ;;  %1967 = vmatpush.msra.mxu3 %v1759_v11  ;;  %v1753_v11 = vld [vmem:[%s6404_s3 + $0x188] sm:$0xff] }
  0xe7   : > { %v1267_v24 = vadd.f32 %v1266_v23, %v4603_v55  ;;  %v4812_v26 = vadd.f32 %v1351_v21, %v1323_v20  ;;  %v1747_v55 = vld [vmem:[%s6404_s3 + $0x158] sm:$0xff]  ;;  %v1710_v21 = vld [vmem:[%s6404_s3 + $0x30] sm:$0xff] }
  0xe8   : > { %v1295_v25 = vpop.f32.mrf.mxu1  ;;  %1922 = vmatpush.msra.mxu2 %v1747_v55  ;;  %v1758_v23 = vld [vmem:[%s6404_s3 + $0x1b0] sm:$0xff]  ;;  %1845 = vmatpush.msra.mxu0 %v1710_v21  ;;  %v1736_v21 = vld [vmem:[%s6404_s3 + $0x100] sm:$0xff] }
  0xe9   : > { %6438 = vst [vmem:[#allocation6_spill] sm:$0xff] %v4812_v26  ;;  %v4820_v29 = vadd.f32 %v1295_v25, %v1267_v24  ;;  %1968 = vmatpush.msra.mxu3 %v1758_v23  ;;  %v1726_v24 = vld [vmem:[%s6404_s3 + $0xb0] sm:$0xff]  ;;  %v1741_v25 = vld [vmem:[%s6404_s3 + $0x128] sm:$0xff]  ;;  %v1752_v23 = vld [vmem:[%s6404_s3 + $0x180] sm:$0xff] }
  0xea   : > { %1923 = vmatpush.msra.mxu2 %v1746_v35  ;;  %1846 = vmatpush.msra.mxu0 %v1709_v27  ;;  %v1756_v35 = vld [vmem:[%s6404_s3 + $0x1a0] sm:$0xff] }
  0xeb   : > { %6439 = vst [vmem:[#allocation7_spill] sm:$0xff] %v4820_v29  ;;  %1969 = vmatpush.msra.mxu3 %v1757_v28  ;;  %v1783_v28 = vld [vmem:[%s6404_s3 + $0x278] sm:$0xff] }
  0xec   : > { %v1324_v38 = vpop.f32.mrf.mxu2  ;;  %1924 = vmatpush.msra.mxu2 %v1745_v57  ;;  %1847 = vmatpush.msra.mxu0 %v1708_v33  ;;  %v1814_v33 = vld [vmem:[%s6404_s3 + $0x370] sm:$0xff] }
  0xed   : > { %v1325_v41 = vadd.f32 %v1324_v38, %v4624_v3  ;;  %v1730_v3 = vld [vmem:[%s6404_s3 + $0xd0] sm:$0xff]  ;;  %1970 = vmatpush.msra.mxu3 %v1756_v35  ;;  %v1724_v38 = vld [vmem:[%s6404_s3 + $0xa0] sm:$0xff] }
  0xee   : > { %v1353_v43 = vpop.f32.mrf.mxu3  ;;  %v4841_v44 = vpop.f32.mrf.mxu0  ;;  %1882 = vmatpush.msra.mxu1 %v1730_v3  ;;  %v1738_v3 = vld [vmem:[%s6404_s3 + $0x110] sm:$0xff] }
  0xef   : > { %v4845_v48 = vadd.f32 %v1353_v43, %v1325_v41  ;;  %v1739_v41 = vld [vmem:[%s6404_s3 + $0x118] sm:$0xff]  ;;  %1971 = vmatpush.msra.mxu3 %v1755_v54  ;;  %v1782_v54 = vld [vmem:[%s6404_s3 + $0x270] sm:$0xff] }
  0xf0   : > { %v4843_v46 = vpop.f32.mrf.mxu1  ;;  %1883 = vmatpush.msra.mxu1 %v1729_v60  ;;  %v1707_v43 = vld [vmem:[%s6404_s3 + $0x18] sm:$0xff]  ;;  %v1754_v60 = vld [vmem:[%s6404_s3 + $0x190] sm:$0xff] }
  0xf1   : > { %6440 = vst [vmem:[#allocation8_spill] sm:$0xff] %v4845_v48  ;;  %1596 = vmatmul.bf16.vlgmr.msrb.gmra.mxu0 %v4098_v47  ;;  %1654 = vmatmul.bf16.vlgmr.msrb.gmra.mxu2 %v4098_v47  ;;  %v1744_v47 = vld [vmem:[%s6404_s3 + $0x140] sm:$0xff] }
  0xf2   : > { %1925 = vmatpush.msra.mxu2 %v1744_v47  ;;  %1884 = vmatpush.msra.mxu1 %v1728_v6  ;;  %v1705_v6 = vld [vmem:[%s6404_s3 + $0x8] sm:$0xff] }
  0xf3   : > { %1625 = vmatmul.bf16.vlgmr.msrb.gmra.mxu1 %v4107_v51  ;;  %1683 = vmatmul.bf16.vlgmr.msrb.gmra.mxu3 %v4107_v51 }
  0xf4   : > { %v4875_v51 = vpop.f32.mrf.mxu2  ;;  %1926 = vmatpush.msra.mxu2 %v1743_v7  ;;  %1885 = vmatpush.msra.mxu1 %v1727_v12  ;;  %v1721_v7 = vld [vmem:[%s6404_s3 + $0x88] sm:$0xff]  ;;  %v1704_v12 = vld [vmem:[%s6404_s3] sm:$0xff] }
  0xf5   : > { %1848 = vmatpush.msra.mxu0 %v1707_v43  ;;  %1972 = vmatpush.msra.mxu3 %v1754_v60  ;;  %v1829_v60 = vld [vmem:[%s6404_s3 + $0x3e8] sm:$0xff] }
  0xf6   : > { %v4877_v61 = vpop.f32.mrf.mxu3  ;;  %v4879_v62 = vpop.f32.mrf.mxu0  ;;  %1927 = vmatpush.msra.mxu2 %v1742_v13  ;;  %1886 = vmatpush.msra.mxu1 %v1726_v24  ;;  %v1720_v13 = vld [vmem:[%s6404_s3 + $0x80] sm:$0xff] }
  0xf7   : > { %1849 = vmatpush.msra.mxu0 %v1706_v58  ;;  %1973 = vmatpush.msra.mxu3 %v1753_v11  ;;  %v1813_v58 = vld [vmem:[%s6404_s3 + $0x368] sm:$0xff] }
  0xf8   : > { %v4881_v0 = vpop.f32.mrf.mxu1  ;;  %1928 = vmatpush.msra.mxu2 %v1741_v25  ;;  %1887 = vmatpush.msra.mxu1 %v1725_v30  ;;  %v1831_v30 = vld [vmem:[%s6404_s3 + $0x3f8] sm:$0xff] }
  0xf9   : > { %1850 = vmatpush.msra.mxu0 %v1705_v6  ;;  %1974 = vmatpush.msra.mxu3 %v1752_v23  ;;  %v1797_v6 = vld [vmem:[%s6404_s3 + $0x2e8] sm:$0xff]  ;;  %v5097_v23 = vperm.slane %v4576_v40, 3 }
  0xfa   : > { %1888 = vmatpush.msra.mxu1 %v1724_v38 }
  0xfb   : > { %1851 = vmatpush.msra.mxu0 %v1704_v12  ;;  %2123 = vmatpush.msrb.mxu3 %v1831_v30  ;;  %v5088_v12 = vperm.slane %v4576_v40, 2  ;;  %v1779_v30 = vld [vmem:[%s6404_s3 + $0x258] sm:$0xff] }
  0xfc   : > { %v4907_v14 = vpop.f32.mrf.mxu2  ;;  %1889 = vmatpush.msra.mxu1 %v1723_v56  ;;  %v1830_v56 = vld [vmem:[%s6404_s3 + $0x3f0] sm:$0xff]  ;;  %v1827_v40 = vld [vmem:[%s6404_s3 + $0x3d8] sm:$0xff] }
  0xfd   : > { %2000 = vmatpush.msrb.mxu0 %v1783_v28  ;;  %2124 = vmatpush.msrb.mxu3 %v1830_v56  ;;  %v1811_v28 = vld [vmem:[%s6404_s3 + $0x358] sm:$0xff]  ;;  %v1424_v56 = vadd.f32 %v4875_v51, %v5097_v23  ;;  %v1826_v51 = vld [vmem:[%s6404_s3 + $0x3d0] sm:$0xff] }
  0xfe   : > { %v4909_v15 = vpop.f32.mrf.mxu3  ;;  %v4911_v16 = vpop.f32.mrf.mxu0  ;;  %1890 = vmatpush.msra.mxu1 %v1722_v59  ;;  %v1781_v59 = vld [vmem:[%s6404_s3 + $0x268] sm:$0xff] }
  0xff   : > { %2001 = vmatpush.msrb.mxu0 %v1782_v54  ;;  %2125 = vmatpush.msrb.mxu3 %v1829_v60  ;;  %v1810_v54 = vld [vmem:[%s6404_s3 + $0x350] sm:$0xff] }
 0x100   : > { %v4913_v20 = vpop.f32.mrf.mxu1  ;;  %1891 = vmatpush.msra.mxu1 %v1721_v7 }
 0x101   : > { %1601 = vmatmul.bf16.gmra.mxu0 %v4198_v34  ;;  %1659 = vmatmul.bf16.gmra.mxu2 %v4198_v34  ;;  %v1740_v34 = vld [vmem:[%s6404_s3 + $0x120] sm:$0xff] }
 0x102   : > { %1929 = vmatpush.msra.mxu2 %v1740_v34  ;;  %1892 = vmatpush.msra.mxu1 %v1720_v13  ;;  %v1799_v34 = vld [vmem:[%s6404_s3 + $0x2f8] sm:$0xff]  ;;  %v1780_v13 = vld [vmem:[%s6404_s3 + $0x260] sm:$0xff] }
 0x103   : > { %1630 = vmatmul.bf16.gmra.mxu1 %v4209_v39  ;;  %1688 = vmatmul.bf16.gmra.mxu3 %v4209_v39 }
 0x104   : > { %v4943_v39 = vpop.f32.mrf.mxu2  ;;  %1930 = vmatpush.msra.mxu2 %v1739_v41  ;;  %2041 = vmatpush.msrb.mxu1 %v1799_v34  ;;  %v1795_v34 = vld [vmem:[%s6404_s3 + $0x2d8] sm:$0xff] }
 0x105   : > { %2002 = vmatpush.msrb.mxu0 %v1781_v59 }
 0x106   : > { %v4945_v55 = vpop.f32.mrf.mxu3  ;;  %v4947_v31 = vpop.f32.mrf.mxu0  ;;  %1931 = vmatpush.msra.mxu2 %v1738_v3  ;;  %v1798_v3 = vld [vmem:[%s6404_s3 + $0x2f0] sm:$0xff] }
 0x107   : > { %2042 = vmatpush.msrb.mxu1 %v1798_v3  ;;  %2003 = vmatpush.msrb.mxu0 %v1780_v13  ;;  %v1794_v13 = vld [vmem:[%s6404_s3 + $0x2d0] sm:$0xff] }
 0x108   : > { %v4949_v32 = vpop.f32.mrf.mxu1  ;;  %1932 = vmatpush.msra.mxu2 %v1737_v10 }
 0x109   : > { %2043 = vmatpush.msrb.mxu1 %v1797_v6  ;;  %2004 = vmatpush.msrb.mxu0 %v1779_v30  ;;  %v1778_v6 = vld [vmem:[%s6404_s3 + $0x250] sm:$0xff]  ;;  %v1808_v30 = vld [vmem:[%s6404_s3 + $0x340] sm:$0xff] }
 0x10a   : > { %1933 = vmatpush.msra.mxu2 %v1736_v21  ;;  %v1828_v21 = vld [vmem:[%s6404_s3 + $0x3e0] sm:$0xff] }
 0x10b   : > { %2126 = vmatpush.msrb.mxu3 %v1828_v21  ;;  %2005 = vmatpush.msrb.mxu0 %v1778_v6  ;;  %v1825_v21 = vld [vmem:[%s6404_s3 + $0x3c8] sm:$0xff]  ;;  %v1776_v6 = vld [vmem:[%s6404_s3 + $0x240] sm:$0xff] }
 0x10c   : > { %v4975_v57 = vpop.f32.mrf.mxu2 }
 0x10d   : > { %2127 = vmatpush.msrb.mxu3 %v1827_v40  ;;  %v1426_v40 = vadd.f32 %v4907_v14, %v5097_v23  ;;  %v1824_v14 = vld [vmem:[%s6404_s3 + $0x3c0] sm:$0xff] }
 0x10e   : > { %v4986_v47 = vpop.f32.mrf.mxu3  ;;  %v4988_v1 = vpop.f32.mrf.mxu0 }
 0x10f   : > { %2128 = vmatpush.msrb.mxu3 %v1826_v51  ;;  %v5185_v51 = vadd.f32 %v4909_v15, %v1426_v40  ;;  %v1775_v15 = vld [vmem:[%s6404_s3 + $0x238] sm:$0xff] }
 0x110   : > { %v4990_v2 = vpop.f32.mrf.mxu1 }
 0x111   : > { %1606 = vmatmul.bf16.gmra.mxu0 %v4285_v18  ;;  %1664 = vmatmul.bf16.gmra.mxu2 %v4285_v18 }
 0x112   : > { %2129 = vmatpush.msrb.mxu3 %v1825_v21  ;;  %v1371_v21 = vadd.f32 %v4911_v16, %v5088_v12 }
 0x113   : > { %1635 = vmatmul.bf16.gmra.mxu1 %v4287_v19  ;;  %1693 = vmatmul.bf16.gmra.mxu3 %v4287_v19  ;;  %v1815_v19 = vld [vmem:[%s6404_s3 + $0x378] sm:$0xff] }
 0x114   : > { %v5020_v24 = vpop.f32.mrf.mxu2  ;;  %2082 = vmatpush.msrb.mxu2 %v1815_v19  ;;  %v1796_v19 = vld [vmem:[%s6404_s3 + $0x2e0] sm:$0xff]  ;;  %2130 = vmatpush.msrb.mxu3 %v1824_v14  ;;  %v5222_v14 = vadd.f32 %v4913_v20, %v1371_v21  ;;  %v1805_v20 = vld [vmem:[%s6404_s3 + $0x328] sm:$0xff]  ;;  %v1373_v21 = vadd.f32 %v4947_v31, %v5088_v12 }
 0x115   : > { %2044 = vmatpush.msrb.mxu1 %v1796_v19  ;;  %v1793_v19 = vld [vmem:[%s6404_s3 + $0x2c8] sm:$0xff] }
 0x116   : > { %v5022_v25 = vpop.f32.mrf.mxu3  ;;  %v5024_v27 = vpop.f32.mrf.mxu0  ;;  %2083 = vmatpush.msrb.mxu2 %v1814_v33  ;;  %v1366_v33 = vadd.f32 %v4841_v44, %v5088_v12 }
 0x117   : > { %2045 = vmatpush.msrb.mxu1 %v1795_v34 }
 0x118   : > { %v5026_v18 = vpop.f32.mrf.mxu1  ;;  %2084 = vmatpush.msrb.mxu2 %v1813_v58  ;;  %v5130_v44 = vadd.f32 %v4843_v46, %v1366_v33  ;;  %v1809_v46 = vld [vmem:[%s6404_s3 + $0x348] sm:$0xff] }
 0x119   : > { %2046 = vmatpush.msrb.mxu1 %v1794_v13  ;;  %v1792_v13 = vld [vmem:[%s6404_s3 + $0x2c0] sm:$0xff] }
 0x11b   : > { %2047 = vmatpush.msrb.mxu1 %v1793_v19  ;;  %v1806_v19 = vld [vmem:[%s6404_s3 + $0x330] sm:$0xff] }
 0x11c   : > { %v5043_v35 = vpop.f32.mrf.mxu2 }
 0x11d   : > { %2048 = vmatpush.msrb.mxu1 %v1792_v13  ;;  %v1774_v13 = vld [vmem:[%s6404_s3 + $0x230] sm:$0xff] }
 0x11e   : > { %v5045_v38 = vpop.f32.mrf.mxu3  ;;  %v5047_v41 = vpop.f32.mrf.mxu0 }
 0x120   : > { %v5049_v43 = vpop.f32.mrf.mxu1 }
 0x121   : > { %1611 = vmatmul.bf16.gmra.mxu0 %v4345_v52  ;;  %1669 = vmatmul.bf16.gmra.mxu2 %v4345_v52  ;;  %v1812_v52 = vld [vmem:[%s6404_s3 + $0x360] sm:$0xff] }
 0x122   : > { %2085 = vmatpush.msrb.mxu2 %v1812_v52  ;;  %v5139_v52 = vadd.f32 %v4877_v61, %v1424_v56  ;;  %v1777_v61 = vld [vmem:[%s6404_s3 + $0x248] sm:$0xff] }
 0x123   : > { %1640 = vmatmul.bf16.gmra.mxu1 %v4347_v53  ;;  %1698 = vmatmul.bf16.gmra.mxu3 %v4347_v53 }
 0x124   : > { %v5079_v53 = vpop.f32.mrf.mxu2  ;;  %2086 = vmatpush.msrb.mxu2 %v1811_v28  ;;  %v1368_v28 = vadd.f32 %v4879_v62, %v5088_v12  ;;  %2006 = vmatpush.msrb.mxu0 %v1777_v61  ;;  %v1791_v61 = vld [vmem:[%s6404_s3 + $0x2b8] sm:$0xff] }
 0x125   : > { %2049 = vmatpush.msrb.mxu1 %v1791_v61  ;;  %v1789_v61 = vld [vmem:[%s6404_s3 + $0x2a8] sm:$0xff] }
 0x126   : > { %v5081_v7 = vpop.f32.mrf.mxu3  ;;  %v5083_v10 = vpop.f32.mrf.mxu0  ;;  %2087 = vmatpush.msrb.mxu2 %v1810_v54  ;;  %v5176_v56 = vadd.f32 %v4881_v0, %v1368_v28  ;;  %v1807_v0 = vld [vmem:[%s6404_s3 + $0x338] sm:$0xff]  ;;  %2007 = vmatpush.msrb.mxu0 %v1776_v6  ;;  %v1429_v28 = vadd.f32 %v4943_v39, %v5097_v23  ;;  %v1822_v39 = vld [vmem:[%s6404_s3 + $0x3b0] sm:$0xff] }
 0x128   : > { %v5085_v11 = vpop.f32.mrf.mxu1  ;;  %2088 = vmatpush.msrb.mxu2 %v1809_v46  ;;  %v1823_v46 = vld [vmem:[%s6404_s3 + $0x3b8] sm:$0xff]  ;;  %2008 = vmatpush.msrb.mxu0 %v1775_v15  ;;  %v1790_v15 = vld [vmem:[%s6404_s3 + $0x2b0] sm:$0xff] }
 0x129   : > { %2131 = vmatpush.msrb.mxu3 %v1823_v46  ;;  %v1821_v46 = vld [vmem:[%s6404_s3 + $0x3a8] sm:$0xff]  ;;  %2050 = vmatpush.msrb.mxu1 %v1790_v15  ;;  %v5268_v15 = vadd.f32 %v4949_v32, %v1373_v21  ;;  %v1803_v32 = vld [vmem:[%s6404_s3 + $0x318] sm:$0xff] }
 0x12a   : > { %2089 = vmatpush.msrb.mxu2 %v1808_v30  ;;  %2009 = vmatpush.msrb.mxu0 %v1774_v13  ;;  %v1787_v21 = vld [vmem:[%s6404_s3 + $0x298] sm:$0xff] }
 0x12b   : > { %2132 = vmatpush.msrb.mxu3 %v1822_v39  ;;  %2051 = vmatpush.msrb.mxu1 %v1789_v61  ;;  %6442 = vst [vmem:[#allocation10_spill] sm:$0xff] %v5268_v15  ;;  %v1819_v61 = vld [vmem:[%s6404_s3 + $0x398] sm:$0xff] }
 0x12c   : > { %v5121_v3 = vpop.f32.mrf.mxu2  ;;  %2090 = vmatpush.msrb.mxu2 %v1807_v0  ;;  %v5231_v0 = vadd.f32 %v4945_v55, %v1429_v28  ;;  %v1773_v55 = vld [vmem:[%s6404_s3 + $0x228] sm:$0xff]  ;;  %v1431_v28 = vadd.f32 %v4975_v57, %v5097_v23  ;;  %v1820_v57 = vld [vmem:[%s6404_s3 + $0x3a0] sm:$0xff] }
 0x12d   : > { %2010 = vmatpush.msrb.mxu0 %v1773_v55  ;;  %2133 = vmatpush.msrb.mxu3 %v1821_v46  ;;  %v1788_v46 = vld [vmem:[%s6404_s3 + $0x2a0] sm:$0xff] }
 0x12e   : > { %v5123_v58 = vpop.f32.mrf.mxu3  ;;  %v5125_v59 = vpop.f32.mrf.mxu0  ;;  %2091 = vmatpush.msrb.mxu2 %v1806_v19  ;;  %6441 = vst [vmem:[#allocation9_spill] sm:$0xff] %v5231_v0  ;;  %v1804_v19 = vld [vmem:[%s6404_s3 + $0x320] sm:$0xff]  ;;  %v5277_v55 = vadd.f32 %v4986_v47, %v1431_v28  ;;  %v1771_v47 = vld [vmem:[%s6404_s3 + $0x218] sm:$0xff]  ;;  %2052 = vmatpush.msrb.mxu1 %v1788_v46  ;;  %v1802_v28 = vld [vmem:[%s6404_s3 + $0x310] sm:$0xff] }
 0x12f   : > { %2134 = vmatpush.msrb.mxu3 %v1820_v57 }
 0x130   : > { %v5127_v60 = vpop.f32.mrf.mxu1  ;;  %2092 = vmatpush.msrb.mxu2 %v1805_v20  ;;  %v1772_v20 = vld [vmem:[%s6404_s3 + $0x220] sm:$0xff]  ;;  %6443 = vst [vmem:[#allocation11_spill] sm:$0xff] %v5277_v55  ;;  %2053 = vmatpush.msrb.mxu1 %v1787_v21  ;;  %v1817_v21 = vld [vmem:[%s6404_s3 + $0x388] sm:$0xff] }
 0x131   : > { %1852 = vmatmul.f32.vlgmr.msra.gmra.mxu0 %v4612_v63  ;;  %1934 = vmatmul.f32.vlgmr.msra.gmra.mxu2 %v5130_v44 }
 0x132   : > { %2093 = vmatpush.msrb.mxu2 %v1804_v19  ;;  %2011 = vmatpush.msrb.mxu0 %v1772_v20  ;;  %v1376_v19 = vadd.f32 %v4988_v1, %v5088_v12  ;;  %v1434_v20 = vadd.f32 %v5020_v24, %v5097_v23  ;;  %v1786_v1 = vld [vmem:[%s6404_s3 + $0x290] sm:$0xff] }
 0x133   : > { %1893 = vmatmul.f32.vlgmr.msra.gmra.mxu1 %v4641_v17  ;;  %1975 = vmatmul.f32.vlgmr.msra.gmra.mxu3 %v5139_v52 }
 0x134   : > { %v5167_v34 = vpop.f32.mrf.mxu2  ;;  %2094 = vmatpush.msrb.mxu2 %v1803_v32  ;;  %2012 = vmatpush.msrb.mxu0 %v1771_v47  ;;  %v5320_v24 = vadd.f32 %v4990_v2, %v1376_v19  ;;  %v1818_v47 = vld [vmem:[%s6404_s3 + $0x390] sm:$0xff]  ;;  %v1785_v2 = vld [vmem:[%s6404_s3 + $0x288] sm:$0xff]  ;;  %v1784_v19 = vld [vmem:[%s6404_s3 + $0x280] sm:$0xff] }
 0x135   : > { %2135 = vmatpush.msrb.mxu3 %v1819_v61  ;;  %2054 = vmatpush.msrb.mxu1 %v1786_v1  ;;  %v1769_v61 = vld [vmem:[%s6404_s3 + $0x208] sm:$0xff]  ;;  %v1436_v1 = vadd.f32 %v5043_v35, %v5097_v23 }
 0x136   : > { %v5169_v33 = vpop.f32.mrf.mxu3  ;;  %v5171_v54 = vpop.f32.mrf.mxu0  ;;  %2095 = vmatpush.msrb.mxu2 %v1802_v28  ;;  %6444 = vst [vmem:[#allocation12_spill] sm:$0xff] %v5320_v24  ;;  %v1800_v28 = vld [vmem:[%s6404_s3 + $0x300] sm:$0xff] }
 0x137   : > { %2136 = vmatpush.msrb.mxu3 %v1818_v47  ;;  %2055 = vmatpush.msrb.mxu1 %v1785_v2  ;;  %v5372_v35 = vadd.f32 %v5045_v38, %v1436_v1  ;;  %v2220_v2 = vld [vmem:[%s6406_s5 + $0x178] sm:$0xff] }
 0x138   : > { %v5173_v62 = vpop.f32.mrf.mxu1  ;;  %v2236_v38 = vld [vmem:[%s6406_s5 + $0x1f8] sm:$0xff] }
 0x139   : > { %1855 = vmatmul.f32.gmra.mxu0 %v4649_v22  ;;  %1937 = vmatmul.f32.gmra.mxu2 %v5176_v56  ;;  %6446 = vst [vmem:[#allocation14_spill] sm:$0xff] %v5372_v35 }
 0x13a   : > { %2137 = vmatpush.msrb.mxu3 %v1817_v21  ;;  %2056 = vmatpush.msrb.mxu1 %v1784_v19  ;;  %v1381_v21 = vadd.f32 %v5047_v41, %v5088_v12  ;;  %v1439_v19 = vadd.f32 %v5079_v53, %v5097_v23  ;;  %v2187_v41 = vld [vmem:[%s6406_s5 + $0x70] sm:$0xff] }
 0x13b   : > { %1896 = vmatmul.f32.gmra.mxu1 %v4671_v42  ;;  %1978 = vmatmul.f32.gmra.mxu3 %v5185_v51  ;;  %v2235_v53 = vld [vmem:[%s6406_s5 + $0x1f0] sm:$0xff] }
 0x13c   : > { %v5213_v30 = vpop.f32.mrf.mxu2 }
 0x13e   : > { %v5215_v40 = vpop.f32.mrf.mxu3  ;;  %v5217_v6 = vpop.f32.mrf.mxu0 }
 0x140   : > { %v5219_v16 = vpop.f32.mrf.mxu1 }
 0x141   : > { %1858 = vmatmul.f32.gmra.mxu0 %v4679_v45  ;;  %1940 = vmatmul.f32.gmra.mxu2 %v5222_v14 }
 0x143   : > { %1899 = vmatmul.f32.gmra.mxu1 %v4705_v5  ;;  %1981 = vmatmul.f32.gmra.mxu3 %v5231_v0 }
 0x144   : > { %v5259_v13 = vpop.f32.mrf.mxu2 }
 0x146   : > { %v5261_v39 = vpop.f32.mrf.mxu3  ;;  %v5263_v0 = vpop.f32.mrf.mxu0 }
 0x148   : > { %v5265_v31 = vpop.f32.mrf.mxu1 }
 0x149   : > { %1861 = vmatmul.f32.gmra.mxu0 %v4713_v8  ;;  %1943 = vmatmul.f32.gmra.mxu2 %v5268_v15 }
 0x14b   : > { %1902 = vmatmul.f32.gmra.mxu1 %v4747_v36  ;;  %1984 = vmatmul.f32.gmra.mxu3 %v5277_v55  ;;  %v1770_v55 = vld [vmem:[%s6404_s3 + $0x210] sm:$0xff]  ;;  %v5329_v36 = vadd.f32 %v5022_v25, %v1434_v20  ;;  %v1768_v25 = vld [vmem:[%s6404_s3 + $0x200] sm:$0xff]  ;;  %v1378_v20 = vadd.f32 %v5024_v27, %v5088_v12 }
 0x14c   : > { %v5305_v57 = vpop.f32.mrf.mxu2  ;;  %2013 = vmatpush.msrb.mxu0 %v1770_v55  ;;  %v1801_v55 = vld [vmem:[%s6404_s3 + $0x308] sm:$0xff]  ;;  %v1816_v27 = vld [vmem:[%s6404_s3 + $0x380] sm:$0xff] }
 0x14d   : > { %6445 = vst [vmem:[#allocation13_spill] sm:$0xff] %v5329_v36  ;;  %2096 = vmatpush.msrb.mxu2 %v1801_v55  ;;  %2138 = vmatpush.msrb.mxu3 %v1816_v27  ;;  %v2204_v55 = vld [vmem:[%s6406_s5 + $0xf8] sm:$0xff] }
 0x14e   : > { %v5313_v46 = vpop.f32.mrf.mxu3  ;;  %v5315_v32 = vpop.f32.mrf.mxu0  ;;  %2014 = vmatpush.msrb.mxu0 %v1769_v61  ;;  %2346 = vmatpush.msra.mxu1 %v2204_v55  ;;  %v2234_v55 = vld [vmem:[%s6406_s5 + $0x1e8] sm:$0xff] }
 0x14f   : > { %2097 = vmatpush.msrb.mxu2 %v1800_v28  ;;  %2428 = vmatpush.msra.mxu3 %v2236_v38  ;;  %v2203_v38 = vld [vmem:[%s6406_s5 + $0xf0] sm:$0xff] }
 0x150   : > { %v5317_v15 = vpop.f32.mrf.mxu1  ;;  %2015 = vmatpush.msrb.mxu0 %v1768_v25  ;;  %v2219_v25 = vld [vmem:[%s6406_s5 + $0x170] sm:$0xff]  ;;  %2347 = vmatpush.msra.mxu1 %v2203_v38  ;;  %v2185_v38 = vld [vmem:[%s6406_s5 + $0x60] sm:$0xff] }
 0x151   : > { %1864 = vmatmul.f32.gmra.mxu0 %v4749_v37  ;;  %1946 = vmatmul.f32.gmra.mxu2 %v5320_v24 }
 0x152   : > { %2387 = vmatpush.msra.mxu2 %v2220_v2  ;;  %v5406_v2 = vadd.f32 %v5049_v43, %v1381_v21  ;;  %2429 = vmatpush.msra.mxu3 %v2235_v53  ;;  %v2218_v43 = vld [vmem:[%s6406_s5 + $0x168] sm:$0xff]  ;;  %v2217_v21 = vld [vmem:[%s6406_s5 + $0x160] sm:$0xff]  ;;  %v1441_v53 = vadd.f32 %v5121_v3, %v5097_v23 }
 0x153   : > { %1905 = vmatmul.f32.gmra.mxu1 %v4757_v49  ;;  %1987 = vmatmul.f32.gmra.mxu3 %v5329_v36  ;;  %v5366_v49 = vadd.f32 %v5026_v18, %v1378_v20  ;;  %v2188_v18 = vld [vmem:[%s6406_s5 + $0x78] sm:$0xff] }
 0x154   : > { %v5357_v47 = vpop.f32.mrf.mxu2  ;;  %2305 = vmatpush.msra.mxu0 %v2188_v18  ;;  %2388 = vmatpush.msra.mxu2 %v2219_v25  ;;  %6447 = vst [vmem:[#allocation15_spill] sm:$0xff] %v5406_v2  ;;  %v5415_v18 = vadd.f32 %v5081_v7, %v1439_v19  ;;  %v2186_v7 = vld [vmem:[%s6406_s5 + $0x68] sm:$0xff]  ;;  %v1383_v19 = vadd.f32 %v5083_v10, %v5088_v12 }
 0x155   : > { %v2202_v25 = vld [vmem:[%s6406_s5 + $0xe8] sm:$0xff]  ;;  %2430 = vmatpush.msra.mxu3 %v2234_v55  ;;  %v2216_v55 = vld [vmem:[%s6406_s5 + $0x158] sm:$0xff] }
 0x156   : > { %v5359_v61 = vpop.f32.mrf.mxu3  ;;  %v5361_v36 = vpop.f32.mrf.mxu0  ;;  %6448 = vst [vmem:[#allocation16_spill] sm:$0xff] %v5415_v18  ;;  %2306 = vmatpush.msra.mxu0 %v2187_v41  ;;  %2389 = vmatpush.msra.mxu2 %v2218_v43  ;;  %v5457_v23 = vadd.f32 %v5085_v11, %v1383_v19  ;;  %v2233_v43 = vld [vmem:[%s6406_s5 + $0x1e0] sm:$0xff] }
 0x157   : > { %2348 = vmatpush.msra.mxu1 %v2202_v25  ;;  %2431 = vmatpush.msra.mxu3 %v2233_v43  ;;  %v2201_v11 = vld [vmem:[%s6406_s5 + $0xe0] sm:$0xff]  ;;  %v2232_v25 = vld [vmem:[%s6406_s5 + $0x1d8] sm:$0xff]  ;;  %v2215_v43 = vld [vmem:[%s6406_s5 + $0x150] sm:$0xff] }
 0x158   : > { %v5363_v24 = vpop.f32.mrf.mxu1  ;;  %2307 = vmatpush.msra.mxu0 %v2186_v7  ;;  %2390 = vmatpush.msra.mxu2 %v2217_v21  ;;  %6449 = vst [vmem:[#allocation17_spill] sm:$0xff] %v5457_v23  ;;  %v5468_v7 = vadd.f32 %v5123_v58, %v1441_v53  ;;  %v2184_v58 = vld [vmem:[%s6406_s5 + $0x58] sm:$0xff] }
 0x159   : > { %1867 = vmatmul.f32.gmra.mxu0 %v4759_v50  ;;  %1949 = vmatmul.f32.gmra.mxu2 %v5366_v49  ;;  %v2200_v53 = vld [vmem:[%s6406_s5 + $0xd8] sm:$0xff] }
 0x15a   : > { %6450 = vst [vmem:[#allocation18_spill] sm:$0xff] %v5468_v7  ;;  %2308 = vmatpush.msra.mxu0 %v2185_v38  ;;  %2349 = vmatpush.msra.mxu1 %v2201_v11  ;;  %v2231_v11 = vld [vmem:[%s6406_s5 + $0x1d0] sm:$0xff] }
 0x15b   : > { %1908 = vmatmul.f32.gmra.mxu1 %v4778_v4  ;;  %1990 = vmatmul.f32.gmra.mxu3 %v5372_v35  ;;  %v3733_v35 = vld [vmem:[%s6403_s2] sm:$0xff] }
 0x15c   : > { %v5397_v28 = vpop.f32.mrf.mxu2  ;;  %v5452_v10 = vperm.slane %v3733_v35, 4  ;;  %v5459_v3 = vperm.slane %v3733_v35, 5  ;;  %v5488_v19 = vperm.slane %v3733_v35, 6  ;;  %2391 = vmatpush.msra.mxu2 %v2216_v55  ;;  %2309 = vmatpush.msra.mxu0 %v2184_v58 }
 0x15d   : > { %2432 = vmatpush.msra.mxu3 %v2232_v25  ;;  %2350 = vmatpush.msra.mxu1 %v2200_v53  ;;  %v2213_v25 = vld [vmem:[%s6406_s5 + $0x140] sm:$0xff] }
 0x15e   : > { %v5399_v20 = vpop.f32.mrf.mxu3  ;;  %v5401_v1 = vpop.f32.mrf.mxu0  ;;  %v1482_v21 = vadd.f32 %v5125_v59, %v5452_v10  ;;  %2392 = vmatpush.msra.mxu2 %v2215_v43  ;;  %v1484_v58 = vadd.f32 %v5171_v54, %v5452_v10 }
 0x15f   : > { %2433 = vmatpush.msra.mxu3 %v2231_v11 }
 0x160   : > { %v5403_v27 = vpop.f32.mrf.mxu1 }
 0x161   : > { %1870 = vmatmul.f32.gmra.mxu0 %v4786_v9  ;;  %1952 = vmatmul.f32.gmra.mxu2 %v5406_v2 }
 0x163   : > { %1911 = vmatmul.f32.gmra.mxu1 %v4812_v26  ;;  %1993 = vmatmul.f32.gmra.mxu3 %v5415_v18 }
 0x164   : > { %v5443_v2 = vpop.f32.mrf.mxu2 }
 0x166   : > { %v5445_v41 = vpop.f32.mrf.mxu3  ;;  %v5447_v18 = vpop.f32.mrf.mxu0 }
 0x168   : > { %v5454_v12 = vpop.f32.mrf.mxu1 }
 0x169   : > { %1873 = vmatmul.f32.gmra.mxu0 %v4820_v29  ;;  %1955 = vmatmul.f32.gmra.mxu2 %v5457_v23  ;;  %v1540_v23 = vadd.f32 %v5167_v34, %v5459_v3  ;;  %v2183_v34 = vld [vmem:[%s6406_s5 + $0x50] sm:$0xff] }
 0x16a   : > { %2310 = vmatpush.msra.mxu0 %v2183_v34  ;;  %v5546_v34 = vadd.f32 %v5173_v62, %v1484_v58  ;;  %v2197_v62 = vld [vmem:[%s6406_s5 + $0xc0] sm:$0xff]  ;;  %v2180_v58 = vld [vmem:[%s6406_s5 + $0x38] sm:$0xff] }
 0x16b   : > { %1914 = vmatmul.f32.gmra.mxu1 %v4845_v48  ;;  %1996 = vmatmul.f32.gmra.mxu3 %v5468_v7  ;;  %v5503_v7 = vadd.f32 %v5127_v60, %v1482_v21  ;;  %v5507_v9 = vadd.f32 %v5169_v33, %v1540_v23  ;;  %v2199_v60 = vld [vmem:[%s6406_s5 + $0xd0] sm:$0xff]  ;;  %v2214_v33 = vld [vmem:[%s6406_s5 + $0x148] sm:$0xff]  ;;  %v5525_v23 = vperm.slane %v3733_v35, 7  ;;  %v1542_v21 = vadd.f32 %v5213_v30, %v5459_v3 }
 0x16c   : > { %v5498_v48 = vpop.f32.mrf.mxu2  ;;  %2351 = vmatpush.msra.mxu1 %v2199_v60  ;;  %v2198_v35 = vld [vmem:[%s6406_s5 + $0xc8] sm:$0xff]  ;;  %2393 = vmatpush.msra.mxu2 %v2214_v33  ;;  %v2181_v33 = vld [vmem:[%s6406_s5 + $0x40] sm:$0xff] }
 0x16e   : > { %v5500_v59 = vpop.f32.mrf.mxu3  ;;  %v1597_v38 = vpop.f32.mrf.mxu0  ;;  %2352 = vmatpush.msra.mxu1 %v2198_v35  ;;  %2394 = vmatpush.msra.mxu2 %v2213_v25  ;;  %v2228_v35 = vld [vmem:[%s6406_s5 + $0x1b8] sm:$0xff]  ;;  %v1487_v25 = vadd.f32 %v5217_v6, %v5452_v10 }
 0x16f   : > { %v1598_v29 = vadd.f32 %v1597_v38, %v5488_v19 }
 0x170   : > { %v1626_v26 = vpop.f32.mrf.mxu1  ;;  %2353 = vmatpush.msra.mxu1 %v2197_v62  ;;  %v2179_v62 = vld [vmem:[%s6406_s5 + $0x30] sm:$0xff] }
 0x171   : > { %v5515_v55 = vadd.f32 %v1626_v26, %v1598_v29  ;;  %2016 = vmatmul.f32.vlgmr.msrb.gmra.mxu0 %v5503_v7  ;;  %v2182_v26 = vld [vmem:[%s6406_s5 + $0x48] sm:$0xff] }
 0x172   : > { %v2230_v29 = vld [vmem:[%s6406_s5 + $0x1c8] sm:$0xff]  ;;  %2311 = vmatpush.msra.mxu0 %v2182_v26  ;;  %v2229_v26 = vld [vmem:[%s6406_s5 + $0x1c0] sm:$0xff] }
 0x173   : > { %6451 = vst [vmem:[#allocation19_spill] sm:$0xff] %v5515_v55  ;;  %2057 = vmatmul.f32.vlgmr.msrb.gmra.mxu1 %v5507_v9  ;;  %2098 = vmatmul.f32.vlgmr.msrb.gmra.mxu2 %v5515_v55  ;;  %v5550_v55 = vadd.f32 %v5215_v40, %v1542_v21  ;;  %v2212_v40 = vld [vmem:[%s6406_s5 + $0x138] sm:$0xff] }
 0x174   : > { %v1655_v53 = vpop.f32.mrf.mxu2  ;;  %2434 = vmatpush.msra.mxu3 %v2230_v29  ;;  %2312 = vmatpush.msra.mxu0 %v2181_v33  ;;  %v2196_v21 = vld [vmem:[%s6406_s5 + $0xb8] sm:$0xff] }
 0x175   : > { %v1656_v54 = vadd.f32 %v1655_v53, %v5525_v23  ;;  %v2211_v53 = vld [vmem:[%s6406_s5 + $0x130] sm:$0xff]  ;;  %2395 = vmatpush.msra.mxu2 %v2212_v40  ;;  %2354 = vmatpush.msra.mxu1 %v2196_v21  ;;  %v1489_v21 = vadd.f32 %v5263_v0, %v5452_v10 }
 0x176   : > { %v1684_v43 = vpop.f32.mrf.mxu3  ;;  %v1599_v38 = vpop.f32.mrf.mxu0  ;;  %2435 = vmatpush.msra.mxu3 %v2229_v26  ;;  %2313 = vmatpush.msra.mxu0 %v2180_v58  ;;  %v2227_v40 = vld [vmem:[%s6406_s5 + $0x1b0] sm:$0xff] }
 0x177   : > { %v1600_v11 = vadd.f32 %v1599_v38, %v5488_v19  ;;  %v5552_v30 = vadd.f32 %v1684_v43, %v1656_v54  ;;  %v1545_v54 = vadd.f32 %v5259_v13, %v5459_v3  ;;  %2396 = vmatpush.msra.mxu2 %v2211_v53  ;;  %v2194_v53 = vld [vmem:[%s6406_s5 + $0xa8] sm:$0xff] }
 0x178   : > { %v1628_v60 = vpop.f32.mrf.mxu1  ;;  %2436 = vmatpush.msra.mxu3 %v2228_v35  ;;  %v2178_v35 = vld [vmem:[%s6406_s5 + $0x28] sm:$0xff]  ;;  %2314 = vmatpush.msra.mxu0 %v2179_v62 }
 0x179   : > { %v5560_v29 = vadd.f32 %v1628_v60, %v1600_v11  ;;  %2019 = vmatmul.f32.gmra.mxu0 %v5546_v34  ;;  %2139 = vmatmul.f32.vlgmr.msrb.gmra.mxu3 %v5552_v30  ;;  %v5590_v60 = vadd.f32 %v5219_v16, %v1487_v25  ;;  %v2195_v16 = vld [vmem:[%s6406_s5 + $0xb0] sm:$0xff]  ;;  %v2226_v25 = vld [vmem:[%s6406_s5 + $0x1a8] sm:$0xff] }
 0x17a   : > { %2437 = vmatpush.msra.mxu3 %v2227_v40  ;;  %2355 = vmatpush.msra.mxu1 %v2195_v16  ;;  %v2177_v16 = vld [vmem:[%s6406_s5 + $0x20] sm:$0xff] }
 0x17b   : > { %6452 = vst [vmem:[#allocation20_spill] sm:$0xff] %v5560_v29  ;;  %2060 = vmatmul.f32.gmra.mxu1 %v5550_v55  ;;  %2101 = vmatmul.f32.gmra.mxu2 %v5560_v29  ;;  %v5594_v29 = vadd.f32 %v5261_v39, %v1545_v54  ;;  %v2210_v39 = vld [vmem:[%s6406_s5 + $0x128] sm:$0xff]  ;;  %v2209_v54 = vld [vmem:[%s6406_s5 + $0x120] sm:$0xff] }
 0x17c   : > { %v1657_v43 = vpop.f32.mrf.mxu2  ;;  %2397 = vmatpush.msra.mxu2 %v2210_v39  ;;  %2315 = vmatpush.msra.mxu0 %v2178_v35  ;;  %v2225_v39 = vld [vmem:[%s6406_s5 + $0x1a0] sm:$0xff] }
 0x17d   : > { %v1658_v6 = vadd.f32 %v1657_v43, %v5525_v23  ;;  %v1547_v43 = vadd.f32 %v5305_v57, %v5459_v3  ;;  %2438 = vmatpush.msra.mxu3 %v2226_v25  ;;  %2356 = vmatpush.msra.mxu1 %v2194_v53  ;;  %v2176_v25 = vld [vmem:[%s6406_s5 + $0x18] sm:$0xff]  ;;  %v1492_v53 = vadd.f32 %v5315_v32, %v5452_v10  ;;  %v2175_v32 = vld [vmem:[%s6406_s5 + $0x10] sm:$0xff] }
 0x17e   : > { %v1686_v38 = vpop.f32.mrf.mxu3  ;;  %v1602_v11 = vpop.f32.mrf.mxu0  ;;  %2398 = vmatpush.msra.mxu2 %v2209_v54  ;;  %2316 = vmatpush.msra.mxu0 %v2177_v16  ;;  %v2192_v54 = vld [vmem:[%s6406_s5 + $0x98] sm:$0xff] }
 0x17f   : > { %v1603_v33 = vadd.f32 %v1602_v11, %v5488_v19  ;;  %v5596_v13 = vadd.f32 %v1686_v38, %v1658_v6  ;;  %v5638_v40 = vadd.f32 %v5313_v46, %v1547_v43  ;;  %2439 = vmatpush.msra.mxu3 %v2225_v39  ;;  %v2208_v46 = vld [vmem:[%s6406_s5 + $0x118] sm:$0xff]  ;;  %v2207_v43 = vld [vmem:[%s6406_s5 + $0x110] sm:$0xff] }
 0x180   : > { %v1631_v26 = vpop.f32.mrf.mxu1  ;;  %2399 = vmatpush.msra.mxu2 %v2208_v46  ;;  %2317 = vmatpush.msra.mxu0 %v2176_v25  ;;  %v2223_v25 = vld [vmem:[%s6406_s5 + $0x190] sm:$0xff] }
 0x181   : > { %v5604_v58 = vadd.f32 %v1631_v26, %v1603_v33  ;;  %2022 = vmatmul.f32.gmra.mxu0 %v5590_v60  ;;  %2142 = vmatmul.f32.gmra.mxu3 %v5596_v13  ;;  %v5634_v33 = vadd.f32 %v5265_v31, %v1489_v21  ;;  %v2193_v31 = vld [vmem:[%s6406_s5 + $0xa0] sm:$0xff]  ;;  %v2224_v21 = vld [vmem:[%s6406_s5 + $0x198] sm:$0xff] }
 0x182   : > { %2357 = vmatpush.msra.mxu1 %v2193_v31  ;;  %2440 = vmatpush.msra.mxu3 %v2224_v21  ;;  %v2174_v21 = vld [vmem:[%s6406_s5 + $0x8] sm:$0xff] }
 0x183   : > { %2063 = vmatmul.f32.gmra.mxu1 %v5594_v29  ;;  %2104 = vmatmul.f32.gmra.mxu2 %v5604_v58 }
 0x184   : > { %v1660_v6 = vpop.f32.mrf.mxu2  ;;  %2358 = vmatpush.msra.mxu1 %v2192_v54  ;;  %2400 = vmatpush.msra.mxu2 %v2207_v43  ;;  %v2173_v54 = vld [vmem:[%s6406_s5] sm:$0xff]  ;;  %v2222_v43 = vld [vmem:[%s6406_s5 + $0x188] sm:$0xff] }
 0x185   : > { %v1661_v0 = vadd.f32 %v1660_v6, %v5525_v23  ;;  %v1550_v6 = vadd.f32 %v5357_v47, %v5459_v3  ;;  %v5684_v47 = vadd.f32 %v5317_v15, %v1492_v53  ;;  %2318 = vmatpush.msra.mxu0 %v2175_v32  ;;  %2441 = vmatpush.msra.mxu3 %v2223_v25  ;;  %v2206_v53 = vld [vmem:[%s6406_s5 + $0x108] sm:$0xff]  ;;  %v2205_v32 = vld [vmem:[%s6406_s5 + $0x100] sm:$0xff] }
 0x186   : > { %v1689_v38 = vpop.f32.mrf.mxu3  ;;  %v1604_v11 = vpop.f32.mrf.mxu0  ;;  %2401 = vmatpush.msra.mxu2 %v2206_v53 }
 0x187   : > { %v1605_v26 = vadd.f32 %v1604_v11, %v5488_v19  ;;  %v5640_v57 = vadd.f32 %v1689_v38, %v1661_v0  ;;  %v2191_v38 = vld [vmem:[%s6406_s5 + $0x90] sm:$0xff]  ;;  %v5688_v31 = vadd.f32 %v5359_v61, %v1550_v6  ;;  %v2190_v61 = vld [vmem:[%s6406_s5 + $0x88] sm:$0xff]  ;;  %v1494_v6 = vadd.f32 %v5361_v36, %v5452_v10  ;;  %2319 = vmatpush.msra.mxu0 %v2174_v21 }
 0x188   : > { %v1633_v62 = vpop.f32.mrf.mxu1  ;;  %2359 = vmatpush.msra.mxu1 %v2191_v38  ;;  %v1552_v38 = vadd.f32 %v5397_v28, %v5459_v3  ;;  %2442 = vmatpush.msra.mxu3 %v2222_v43  ;;  %v1497_v43 = vadd.f32 %v5401_v1, %v5452_v10 }
 0x189   : > { %v5648_v35 = vadd.f32 %v1633_v62, %v1605_v26  ;;  %2025 = vmatmul.f32.gmra.mxu0 %v5634_v33  ;;  %2145 = vmatmul.f32.gmra.mxu3 %v5640_v57 }
 0x18a   : > { %2360 = vmatpush.msra.mxu1 %v2190_v61  ;;  %2320 = vmatpush.msra.mxu0 %v2173_v54  ;;  %v5732_v21 = vadd.f32 %v5399_v20, %v1552_v38  ;;  %v2221_v61 = vld [vmem:[%s6406_s5 + $0x180] sm:$0xff]  ;;  %v2252_v20 = vld [vmem:[%s6406_s5 + $0x278] sm:$0xff] }
 0x18b   : > { %2066 = vmatmul.f32.gmra.mxu1 %v5638_v40  ;;  %2107 = vmatmul.f32.gmra.mxu2 %v5648_v35  ;;  %v2300_v54 = vld [vmem:[%s6406_s5 + $0x3f8] sm:$0xff] }
 0x18c   : > { %v1662_v0 = vpop.f32.mrf.mxu2  ;;  %2402 = vmatpush.msra.mxu2 %v2205_v32  ;;  %2443 = vmatpush.msra.mxu3 %v2221_v61  ;;  %v1555_v32 = vadd.f32 %v5443_v2, %v5459_v3  ;;  %v2251_v2 = vld [vmem:[%s6406_s5 + $0x270] sm:$0xff] }
 0x18d   : > { %v1663_v11 = vadd.f32 %v1662_v0, %v5525_v23  ;;  %v2189_v0 = vld [vmem:[%s6406_s5 + $0x80] sm:$0xff]  ;;  %2469 = vmatpush.msrb.mxu0 %v2252_v20 }
 0x18e   : > { %v1691_v26 = vpop.f32.mrf.mxu3  ;;  %v1607_v62 = vpop.f32.mrf.mxu0  ;;  %2361 = vmatpush.msra.mxu1 %v2189_v0  ;;  %v2283_v0 = vld [vmem:[%s6406_s5 + $0x370] sm:$0xff]  ;;  %2592 = vmatpush.msrb.mxu3 %v2300_v54  ;;  %v2250_v54 = vld [vmem:[%s6406_s5 + $0x268] sm:$0xff] }
 0x18f   : > { %v1608_v16 = vadd.f32 %v1607_v62, %v5488_v19  ;;  %v5690_v46 = vadd.f32 %v1691_v26, %v1663_v11  ;;  %2470 = vmatpush.msrb.mxu0 %v2251_v2 }
 0x190   : > { %v1636_v39 = vpop.f32.mrf.mxu1 }
 0x191   : > { %v5698_v15 = vadd.f32 %v1636_v39, %v1608_v16  ;;  %2028 = vmatmul.f32.gmra.mxu0 %v5684_v47  ;;  %2148 = vmatmul.f32.gmra.mxu3 %v5690_v46  ;;  %v5728_v16 = vadd.f32 %v5363_v24, %v1494_v6  ;;  %v2284_v24 = vld [vmem:[%s6406_s5 + $0x378] sm:$0xff] }
 0x192   : > { %v2268_v6 = vld [vmem:[%s6406_s5 + $0x2f8] sm:$0xff]  ;;  %2551 = vmatpush.msrb.mxu2 %v2284_v24  ;;  %v2299_v24 = vld [vmem:[%s6406_s5 + $0x3f0] sm:$0xff]  ;;  %2471 = vmatpush.msrb.mxu0 %v2250_v54 }
 0x193   : > { %2069 = vmatmul.f32.gmra.mxu1 %v5688_v31  ;;  %2110 = vmatmul.f32.gmra.mxu2 %v5698_v15  ;;  %v2264_v54 = vld [vmem:[%s6406_s5 + $0x2d8] sm:$0xff] }
 0x194   : > { %v1665_v11 = vpop.f32.mrf.mxu2  ;;  %2510 = vmatpush.msrb.mxu1 %v2268_v6  ;;  %2552 = vmatpush.msrb.mxu2 %v2283_v0  ;;  %v1499_v6 = vadd.f32 %v5447_v18, %v5452_v10  ;;  %v2266_v0 = vld [vmem:[%s6406_s5 + $0x2e8] sm:$0xff] }
 0x195   : > { %v1666_v36 = vadd.f32 %v1665_v11, %v5525_v23  ;;  %2593 = vmatpush.msrb.mxu3 %v2299_v24  ;;  %v2297_v24 = vld [vmem:[%s6406_s5 + $0x3e0] sm:$0xff] }
 0x196   : > { %v1694_v26 = vpop.f32.mrf.mxu3  ;;  %v1609_v62 = vpop.f32.mrf.mxu0 }
 0x197   : > { %v1610_v39 = vadd.f32 %v1609_v62, %v5488_v19  ;;  %v5734_v28 = vadd.f32 %v1694_v26, %v1666_v36  ;;  %v5766_v26 = vadd.f32 %v5403_v27, %v1497_v43  ;;  %v2267_v27 = vld [vmem:[%s6406_s5 + $0x2f0] sm:$0xff]  ;;  %v2298_v43 = vld [vmem:[%s6406_s5 + $0x3e8] sm:$0xff] }
 0x198   : > { %v1638_v25 = vpop.f32.mrf.mxu1  ;;  %2511 = vmatpush.msrb.mxu1 %v2267_v27  ;;  %2594 = vmatpush.msrb.mxu3 %v2298_v43  ;;  %v2279_v43 = vld [vmem:[%s6406_s5 + $0x350] sm:$0xff] }
 0x199   : > { %v5739_v53 = vadd.f32 %v1638_v25, %v1610_v39  ;;  %2031 = vmatmul.f32.gmra.mxu0 %v5728_v16  ;;  %2151 = vmatmul.f32.gmra.mxu3 %v5734_v28  ;;  %v5770_v25 = vadd.f32 %v5445_v41, %v1555_v32  ;;  %v2282_v41 = vld [vmem:[%s6406_s5 + $0x368] sm:$0xff]  ;;  %v2281_v32 = vld [vmem:[%s6406_s5 + $0x360] sm:$0xff] }
 0x19a   : > { %2553 = vmatpush.msrb.mxu2 %v2282_v41  ;;  %2512 = vmatpush.msrb.mxu1 %v2266_v0  ;;  %v2296_v41 = vld [vmem:[%s6406_s5 + $0x3d8] sm:$0xff] }
 0x19b   : > { %2072 = vmatmul.f32.gmra.mxu1 %v5732_v21  ;;  %2113 = vmatmul.f32.gmra.mxu2 %v5739_v53 }
 0x19c   : > { %v1667_v38 = vpop.f32.mrf.mxu2  ;;  %2554 = vmatpush.msrb.mxu2 %v2281_v32  ;;  %2595 = vmatpush.msrb.mxu3 %v2297_v24  ;;  %v2277_v24 = vld [vmem:[%s6406_s5 + $0x340] sm:$0xff] }
 0x19d   : > { %v1668_v1 = vadd.f32 %v1667_v38, %v5525_v23  ;;  %v1557_v38 = vadd.f32 %v5498_v48, %v5459_v3  ;;  %v2249_v3 = vld [vmem:[%s6406_s5 + $0x260] sm:$0xff] }
 0x19e   : > { %v1696_v11 = vpop.f32.mrf.mxu3  ;;  %v1612_v36 = vpop.f32.mrf.mxu0  ;;  %2472 = vmatpush.msrb.mxu0 %v2249_v3  ;;  %2596 = vmatpush.msrb.mxu3 %v2296_v41  ;;  %v2262_v3 = vld [vmem:[%s6406_s5 + $0x2c8] sm:$0xff]  ;;  %v2293_v41 = vld [vmem:[%s6406_s5 + $0x3c0] sm:$0xff] }
 0x19f   : > { %v1613_v62 = vadd.f32 %v1612_v36, %v5488_v19  ;;  %v5772_v61 = vadd.f32 %v1696_v11, %v1668_v1  ;;  %v5810_v36 = vadd.f32 %v5454_v12, %v1499_v6  ;;  %v5814_v2 = vadd.f32 %v5500_v59, %v1557_v38  ;;  %v2265_v12 = vld [vmem:[%s6406_s5 + $0x2e0] sm:$0xff]  ;;  %v2248_v59 = vld [vmem:[%s6406_s5 + $0x258] sm:$0xff] }
 0x1a0   : > { %v1641_v39 = vpop.f32.mrf.mxu1  ;;  %2513 = vmatpush.msrb.mxu1 %v2265_v12  ;;  %2473 = vmatpush.msrb.mxu0 %v2248_v59  ;;  %v2245_v59 = vld [vmem:[%s6406_s5 + $0x240] sm:$0xff] }
 0x1a1   : > { %v5780_v20 = vadd.f32 %v1641_v39, %v1613_v62  ;;  %2034 = vmatmul.f32.gmra.mxu0 %v5766_v26  ;;  %2154 = vmatmul.f32.gmra.mxu3 %v5772_v61  ;;  %6453 = vst [vmem:[#allocation21_spill] sm:$0xff] %v5810_v36 }
 0x1a2   : > { %6454 = vst [vmem:[#allocation22_spill] sm:$0xff] %v5814_v2  ;;  %2514 = vmatpush.msrb.mxu1 %v2264_v54  ;;  %v2261_v54 = vld [vmem:[%s6406_s5 + $0x2c0] sm:$0xff] }
 0x1a3   : > { %2075 = vmatmul.f32.gmra.mxu1 %v5770_v25  ;;  %2116 = vmatmul.f32.gmra.mxu2 %v5780_v20 }
 0x1a4   : > { %v1670_v1 = vpop.f32.mrf.mxu2 }
 0x1a5   : > { %v1671_v18 = vadd.f32 %v1670_v1, %v5525_v23 }
 0x1a6   : > { %v1699_v10 = vpop.f32.mrf.mxu3  ;;  %v1614_v11 = vpop.f32.mrf.mxu0 }
 0x1a7   : > { %v1615_v62 = vadd.f32 %v1614_v11, %v5488_v19  ;;  %v5816_v48 = vadd.f32 %v1699_v10, %v1671_v18  ;;  %v2280_v19 = vld [vmem:[%s6406_s5 + $0x358] sm:$0xff]  ;;  %v2247_v10 = vld [vmem:[%s6406_s5 + $0x250] sm:$0xff] }
 0x1a8   : > { %v1643_v39 = vpop.f32.mrf.mxu1  ;;  %2555 = vmatpush.msrb.mxu2 %v2280_v19  ;;  %v2295_v11 = vld [vmem:[%s6406_s5 + $0x3d0] sm:$0xff]  ;;  %2474 = vmatpush.msrb.mxu0 %v2247_v10 }
 0x1a9   : > { %6455 = vst [vmem:[#allocation23_spill] sm:$0xff] %v5816_v48  ;;  %v5824_v27 = vadd.f32 %v1643_v39, %v1615_v62  ;;  %2037 = vmatmul.f32.gmra.mxu0 %v5810_v36  ;;  %2157 = vmatmul.f32.gmra.mxu3 %v5816_v48  ;;  %v2278_v62 = vld [vmem:[%s6406_s5 + $0x348] sm:$0xff] }
 0x1aa   : > { %2556 = vmatpush.msrb.mxu2 %v2279_v43  ;;  %2597 = vmatpush.msrb.mxu3 %v2295_v11  ;;  %v2246_v39 = vld [vmem:[%s6406_s5 + $0x248] sm:$0xff]  ;;  %v2276_v43 = vld [vmem:[%s6406_s5 + $0x338] sm:$0xff]  ;;  %v2243_v11 = vld [vmem:[%s6406_s5 + $0x230] sm:$0xff] }
 0x1ab   : > { %6456 = vst [vmem:[#allocation24_spill] sm:$0xff] %v5824_v27  ;;  %2078 = vmatmul.f32.gmra.mxu1 %v5814_v2  ;;  %2119 = vmatmul.f32.gmra.mxu2 %v5824_v27  ;;  %v6473_v27 = vld [vmem:[#allocation17_spill] sm:$0xff] }
 0x1ac   : > { %v1672_v6 = vpop.f32.mrf.mxu2  ;;  %2557 = vmatpush.msrb.mxu2 %v2278_v62  ;;  %2475 = vmatpush.msrb.mxu0 %v2246_v39  ;;  %v2259_v62 = vld [vmem:[%s6406_s5 + $0x2b0] sm:$0xff]  ;;  %v2274_v39 = vld [vmem:[%s6406_s5 + $0x328] sm:$0xff] }
 0x1ad   : > { %v1673_v0 = vadd.f32 %v1672_v6, %v5525_v23  ;;  %v2263_v23 = vld [vmem:[%s6406_s5 + $0x2d0] sm:$0xff]  ;;  %v2244_v6 = vld [vmem:[%s6406_s5 + $0x238] sm:$0xff] }
 0x1ae   : > { %v1701_v32 = vpop.f32.mrf.mxu3  ;;  %v5849_v38 = vpop.f32.mrf.mxu0  ;;  %2515 = vmatpush.msrb.mxu1 %v2263_v23  ;;  %2558 = vmatpush.msrb.mxu2 %v2277_v24  ;;  %v2291_v23 = vld [vmem:[%s6406_s5 + $0x3b0] sm:$0xff] }
 0x1af   : > { %v5853_v18 = vadd.f32 %v1701_v32, %v1673_v0  ;;  %2476 = vmatpush.msrb.mxu0 %v2245_v59  ;;  %v2260_v0 = vld [vmem:[%s6406_s5 + $0x2b8] sm:$0xff] }
 0x1b0   : > { %v5851_v1 = vpop.f32.mrf.mxu1  ;;  %2516 = vmatpush.msrb.mxu1 %v2262_v3  ;;  %2559 = vmatpush.msrb.mxu2 %v2276_v43  ;;  %v2258_v3 = vld [vmem:[%s6406_s5 + $0x2a8] sm:$0xff]  ;;  %v2257_v43 = vld [vmem:[%s6406_s5 + $0x2a0] sm:$0xff] }
 0x1b1   : > { %6457 = vst [vmem:[#allocation25_spill] sm:$0xff] %v5853_v18  ;;  %2321 = vmatmul.f32.vlgmr.msra.gmra.mxu0 %v4612_v63  ;;  %2160 = vmatmul.f32.gmra.mxu3 %v5853_v18  ;;  %v2294_v63 = vld [vmem:[%s6406_s5 + $0x3c8] sm:$0xff]  ;;  %v6470_v18 = vld [vmem:[#allocation7_spill] sm:$0xff] }
 0x1b2   : > { %2598 = vmatpush.msrb.mxu3 %v2294_v63  ;;  %2517 = vmatpush.msrb.mxu1 %v2261_v54  ;;  %v2242_v63 = vld [vmem:[%s6406_s5 + $0x228] sm:$0xff]  ;;  %v2289_v54 = vld [vmem:[%s6406_s5 + $0x3a0] sm:$0xff] }
 0x1b3   : > { %2362 = vmatmul.f32.vlgmr.msra.gmra.mxu1 %v4641_v17  ;;  %2403 = vmatmul.f32.vlgmr.msra.gmra.mxu2 %v5130_v44 }
 0x1b4   : > { %v5883_v17 = vpop.f32.mrf.mxu2  ;;  %2599 = vmatpush.msrb.mxu3 %v2293_v41  ;;  %2477 = vmatpush.msrb.mxu0 %v2244_v6  ;;  %v2241_v41 = vld [vmem:[%s6406_s5 + $0x220] sm:$0xff]  ;;  %v2272_v6 = vld [vmem:[%s6406_s5 + $0x318] sm:$0xff] }
 0x1b5   : > { %2518 = vmatpush.msrb.mxu1 %v2260_v0  ;;  %v6459_v0 = vld [vmem:[#allocation9_spill] sm:$0xff] }
 0x1b6   : > { %v5885_v12 = vpop.f32.mrf.mxu3  ;;  %v5887_v19 = vpop.f32.mrf.mxu0  ;;  %2478 = vmatpush.msrb.mxu0 %v2243_v11  ;;  %v6460_v11 = vld [vmem:[#allocation10_spill] sm:$0xff] }
 0x1b7   : > { %2519 = vmatpush.msrb.mxu1 %v2259_v62  ;;  %v2271_v62 = vld [vmem:[%s6406_s5 + $0x310] sm:$0xff] }
 0x1b8   : > { %v5889_v44 = vpop.f32.mrf.mxu1  ;;  %2479 = vmatpush.msrb.mxu0 %v2242_v63  ;;  %v2239_v63 = vld [vmem:[%s6406_s5 + $0x210] sm:$0xff] }
 0x1b9   : > { %2324 = vmatmul.f32.gmra.mxu0 %v4649_v22  ;;  %2444 = vmatmul.f32.vlgmr.msra.gmra.mxu3 %v5139_v52  ;;  %v2292_v22 = vld [vmem:[%s6406_s5 + $0x3b8] sm:$0xff] }
 0x1ba   : > { %2600 = vmatpush.msrb.mxu3 %v2292_v22  ;;  %2520 = vmatpush.msrb.mxu1 %v2258_v3  ;;  %v6458_v22 = vld [vmem:[#allocation3_spill] sm:$0xff] }
 0x1bb   : > { %2365 = vmatmul.f32.gmra.mxu1 %v4671_v42  ;;  %2406 = vmatmul.f32.gmra.mxu2 %v5176_v56  ;;  %v2275_v42 = vld [vmem:[%s6406_s5 + $0x330] sm:$0xff] }
 0x1bc   : > { %v5919_v52 = vpop.f32.mrf.mxu2  ;;  %2560 = vmatpush.msrb.mxu2 %v2275_v42  ;;  %2601 = vmatpush.msrb.mxu3 %v2291_v23  ;;  %v2240_v42 = vld [vmem:[%s6406_s5 + $0x218] sm:$0xff] }
 0x1bd   : > { %2480 = vmatpush.msrb.mxu0 %v2241_v41  ;;  %v2256_v23 = vld [vmem:[%s6406_s5 + $0x298] sm:$0xff]  ;;  %2521 = vmatpush.msrb.mxu1 %v2257_v43  ;;  %v2238_v43 = vld [vmem:[%s6406_s5 + $0x208] sm:$0xff] }
 0x1be   : > { %v5921_v32 = vpop.f32.mrf.mxu3  ;;  %v5923_v10 = vpop.f32.mrf.mxu0  ;;  %2561 = vmatpush.msrb.mxu2 %v2274_v39 }
 0x1bf   : > { %2481 = vmatpush.msrb.mxu0 %v2240_v42  ;;  %2522 = vmatpush.msrb.mxu1 %v2256_v23  ;;  %v6462_v42 = vld [vmem:[#allocation11_spill] sm:$0xff] }
 0x1c0   : > { %v5925_v56 = vpop.f32.mrf.mxu1  ;;  %v2253_v23 = vld [vmem:[%s6406_s5 + $0x280] sm:$0xff] }
 0x1c1   : > { %2327 = vmatmul.f32.gmra.mxu0 %v4679_v45  ;;  %2447 = vmatmul.f32.gmra.mxu3 %v5185_v51  ;;  %v2290_v45 = vld [vmem:[%s6406_s5 + $0x3a8] sm:$0xff] }
 0x1c2   : > { %2602 = vmatpush.msrb.mxu3 %v2290_v45  ;;  %v2255_v45 = vld [vmem:[%s6406_s5 + $0x290] sm:$0xff]  ;;  %2482 = vmatpush.msrb.mxu0 %v2239_v63  ;;  %v2285_v63 = vld [vmem:[%s6406_s5 + $0x380] sm:$0xff] }
 0x1c3   : > { %2368 = vmatmul.f32.gmra.mxu1 %v4705_v5  ;;  %2409 = vmatmul.f32.gmra.mxu2 %v5222_v14  ;;  %v2273_v5 = vld [vmem:[%s6406_s5 + $0x320] sm:$0xff] }
 0x1c4   : > { %v5955_v51 = vpop.f32.mrf.mxu2  ;;  %2562 = vmatpush.msrb.mxu2 %v2273_v5  ;;  %2603 = vmatpush.msrb.mxu3 %v2289_v54  ;;  %v2287_v54 = vld [vmem:[%s6406_s5 + $0x390] sm:$0xff] }
 0x1c5   : > { %2523 = vmatpush.msrb.mxu1 %v2255_v45  ;;  %2483 = vmatpush.msrb.mxu0 %v2238_v43 }
 0x1c6   : > { %v5957_v24 = vpop.f32.mrf.mxu3  ;;  %v5959_v59 = vpop.f32.mrf.mxu0  ;;  %2563 = vmatpush.msrb.mxu2 %v2272_v6  ;;  %v2254_v6 = vld [vmem:[%s6406_s5 + $0x288] sm:$0xff] }
 0x1c7   : > { %2524 = vmatpush.msrb.mxu1 %v2254_v6  ;;  %v6464_v6 = vld [vmem:[#allocation13_spill] sm:$0xff] }
 0x1c8   : > { %v5961_v14 = vpop.f32.mrf.mxu1  ;;  %2564 = vmatpush.msrb.mxu2 %v2271_v62  ;;  %v2269_v62 = vld [vmem:[%s6406_s5 + $0x300] sm:$0xff] }
 0x1c9   : > { %2330 = vmatmul.f32.gmra.mxu0 %v4713_v8  ;;  %2450 = vmatmul.f32.gmra.mxu3 %v6459_v0  ;;  %v2288_v8 = vld [vmem:[%s6406_s5 + $0x398] sm:$0xff]  ;;  %v6461_v0 = vld [vmem:[#allocation4_spill] sm:$0xff] }
 0x1ca   : > { %2604 = vmatpush.msrb.mxu3 %v2288_v8  ;;  %v2237_v8 = vld [vmem:[%s6406_s5 + $0x200] sm:$0xff]  ;;  %2525 = vmatpush.msrb.mxu1 %v2253_v23  ;;  %v6466_v23 = vld [vmem:[#allocation6_spill] sm:$0xff] }
 0x1cb   : > { %2371 = vmatmul.f32.gmra.mxu1 %v6458_v22  ;;  %2412 = vmatmul.f32.gmra.mxu2 %v6460_v11  ;;  %v2270_v22 = vld [vmem:[%s6406_s5 + $0x308] sm:$0xff] }
 0x1cc   : > { %v5991_v39 = vpop.f32.mrf.mxu2  ;;  %2605 = vmatpush.msrb.mxu3 %v2287_v54  ;;  %v6463_v11 = vld [vmem:[#allocation12_spill] sm:$0xff]  ;;  %2565 = vmatpush.msrb.mxu2 %v2270_v22 }
 0x1cd   : > { %2484 = vmatpush.msrb.mxu0 %v2237_v8 }
 0x1ce   : > { %v5999_v3 = vpop.f32.mrf.mxu3  ;;  %v6001_v5 = vpop.f32.mrf.mxu0  ;;  %2566 = vmatpush.msrb.mxu2 %v2269_v62  ;;  %v6467_v62 = vld [vmem:[#allocation14_spill] sm:$0xff] }
 0x1d0   : > { %v6003_v41 = vpop.f32.mrf.mxu1 }
 0x1d1   : > { %2333 = vmatmul.f32.gmra.mxu0 %v4749_v37  ;;  %2453 = vmatmul.f32.gmra.mxu3 %v6462_v42  ;;  %v2286_v37 = vld [vmem:[%s6406_s5 + $0x388] sm:$0xff] }
 0x1d2   : > { %2606 = vmatpush.msrb.mxu3 %v2286_v37 }
 0x1d3   : > { %2374 = vmatmul.f32.gmra.mxu1 %v6461_v0  ;;  %2415 = vmatmul.f32.gmra.mxu2 %v6463_v11  ;;  %v6465_v11 = vld [vmem:[#allocation5_spill] sm:$0xff] }
 0x1d4   : > { %v6036_v45 = vpop.f32.mrf.mxu2  ;;  %2607 = vmatpush.msrb.mxu3 %v2285_v63 }
 0x1d6   : > { %v6038_v54 = vpop.f32.mrf.mxu0  ;;  %v6040_v43 = vpop.f32.mrf.mxu3 }
 0x1d8   : > { %v6042_v0 = vpop.f32.mrf.mxu1 }
 0x1d9   : > { %2336 = vmatmul.f32.gmra.mxu0 %v4759_v50  ;;  %2456 = vmatmul.f32.gmra.mxu3 %v6464_v6  ;;  %v6468_v50 = vld [vmem:[#allocation15_spill] sm:$0xff] }
 0x1db   : > { %2377 = vmatmul.f32.gmra.mxu1 %v4778_v4  ;;  %2418 = vmatmul.f32.gmra.mxu2 %v5366_v49  ;;  %v6065_v49 = vld [vmem:[%s6405_s4] ss:$0 sm:$0xff] }
 0x1dc   : > { %v6048_v22 = vpop.f32.mrf.mxu2 }
 0x1de   : > { %v6050_v42 = vpop.f32.mrf.mxu0  ;;  %v6054_v37 = vpop.f32.mrf.mxu3 }
 0x1e0   : > { %v6052_v8 = vpop.f32.mrf.mxu1 }
 0x1e1   : > { %2339 = vmatmul.f32.gmra.mxu0 %v6465_v11  ;;  %2459 = vmatmul.f32.gmra.mxu3 %v6467_v62  ;;  %v1854_v11 = vadd.f32 %v6065_v49, %v5849_v38  ;;  %v6472_v62 = vld [vmem:[#allocation16_spill] sm:$0xff]  ;;  %v1857_v38 = vadd.f32 %v6065_v49, %v5887_v19 }
 0x1e3   : > { %2380 = vmatmul.f32.gmra.mxu1 %v6466_v23  ;;  %2421 = vmatmul.f32.gmra.mxu2 %v6468_v50  ;;  %v6471_v23 = vld [vmem:[#allocation8_spill] sm:$0xff]  ;;  %v1895_v48 = vadd.f32 %v5851_v1, %v1854_v11  ;;  %v1898_v11 = vadd.f32 %v5889_v44, %v1857_v38 }
 0x1e4   : > { %v6060_v4 = vpop.f32.mrf.mxu2 }
 0x1e5   : > { %v1939_v19 = vadd.f32 %v5919_v52, %v1898_v11 }
 0x1e6   : > { %v6067_v63 = vpop.f32.mrf.mxu0  ;;  %v6076_v50 = vpop.f32.mrf.mxu3 }
 0x1e7   : > { %v1980_v44 = vadd.f32 %v5921_v32, %v1939_v19  ;;  %v1863_v32 = vadd.f32 %v6065_v49, %v5959_v59 }
 0x1e8   : > { %v6069_v6 = vpop.f32.mrf.mxu1 }
 0x1e9   : > { %6469 = vst [vmem:[#allocation3_spill] sm:$0xff] %v6069_v6  ;;  %2342 = vmatmul.f32.gmra.mxu0 %v6470_v18  ;;  %2462 = vmatmul.f32.gmra.mxu3 %v6472_v62  ;;  %v1936_v18 = vadd.f32 %v5883_v17, %v1895_v48  ;;  %v6476_v62 = vld [vmem:[#allocation19_spill] sm:$0xff] }
 0x1eb   : > { %2383 = vmatmul.f32.gmra.mxu1 %v6471_v23  ;;  %2424 = vmatmul.f32.gmra.mxu2 %v6473_v27  ;;  %v6475_v23 = vld [vmem:[#allocation18_spill] sm:$0xff]  ;;  %v1977_v27 = vadd.f32 %v5885_v12, %v1936_v18 }
 0x1ec   : > { %v6080_v2 = vpop.f32.mrf.mxu2 }
 0x1ed   : > { %6474 = vst [vmem:[#allocation9_spill] sm:$0xff] %v6080_v2 }
 0x1ee   : > { %v2017_v36 = vpop.f32.mrf.mxu0  ;;  %v6091_v1 = vpop.f32.mrf.mxu3 }
 0x1ef   : > { %v2018_v2 = vadd.f32 %v2017_v36, %v1977_v27  ;;  %v6477_v36 = vld [vmem:[#allocation20_spill] sm:$0xff] }
 0x1f0   : > { %v2058_v6 = vpop.f32.mrf.mxu1 }
 0x1f1   : > { %2485 = vmatmul.f32.vlgmr.msrb.gmra.mxu0 %v5503_v7  ;;  %2465 = vmatmul.f32.gmra.mxu3 %v6475_v23  ;;  %v2059_v12 = vadd.f32 %v2058_v6, %v2018_v2 }
 0x1f3   : > { %2526 = vmatmul.f32.vlgmr.msrb.gmra.mxu1 %v5507_v9  ;;  %2567 = vmatmul.f32.vlgmr.msrb.gmra.mxu2 %v6476_v62  ;;  %v1860_v9 = vadd.f32 %v6065_v49, %v5923_v10 }
 0x1f5   : > { %v1901_v2 = vadd.f32 %v5925_v56, %v1860_v9 }
 0x1f6   : > { %v2020_v48 = vpop.f32.mrf.mxu0  ;;  %v2099_v17 = vpop.f32.mrf.mxu2 }
 0x1f7   : > { %v2100_v18 = vadd.f32 %v2099_v17, %v2059_v12  ;;  %v1942_v38 = vadd.f32 %v5955_v51, %v1901_v2  ;;  %v1904_v51 = vadd.f32 %v5961_v14, %v1863_v32 }
 0x1f8   : > { %v2061_v7 = vpop.f32.mrf.mxu1 }
 0x1f9   : > { %2488 = vmatmul.f32.gmra.mxu0 %v5546_v34  ;;  %2608 = vmatmul.f32.vlgmr.msrb.gmra.mxu3 %v5552_v30  ;;  %v1983_v56 = vadd.f32 %v5957_v24, %v1942_v38  ;;  %v1945_v59 = vadd.f32 %v5991_v39, %v1904_v51 }
 0x1fb   : > { %2529 = vmatmul.f32.gmra.mxu1 %v5550_v55  ;;  %2570 = vmatmul.f32.gmra.mxu2 %v6477_v36  ;;  %v2021_v55 = vadd.f32 %v2020_v48, %v1980_v44 }
 0x1fc   : > { %v2140_v34 = vpop.f32.mrf.mxu3 }
 0x1fd   : > { %v2141_v52 = vadd.f32 %v2140_v34, %v2100_v18  ;;  %v2062_v23 = vadd.f32 %v2061_v7, %v2021_v55 }
 0x1fe   : > { %v2023_v30 = vpop.f32.mrf.mxu0  ;;  %v2102_v10 = vpop.f32.mrf.mxu2 }
 0x1ff   : > { %2165 = vst.msk [vmem:[%s6111_s24] sm:$0xff] %vm2164_vm0, %v2141_v52  ;;  %v2103_v62 = vadd.f32 %v2102_v10, %v2062_v23  ;;  %v2024_v11 = vadd.f32 %v2023_v30, %v1983_v56 }
 0x200   : > { %v2064_v6 = vpop.f32.mrf.mxu1 }
 0x201   : > { %2491 = vmatmul.f32.gmra.mxu0 %v5590_v60  ;;  %2611 = vmatmul.f32.gmra.mxu3 %v5596_v13  ;;  %v2065_v13 = vadd.f32 %v2064_v6, %v2024_v11 }
 0x203   : > { %2532 = vmatmul.f32.gmra.mxu1 %v5594_v29  ;;  %2573 = vmatmul.f32.gmra.mxu2 %v5604_v58  ;;  %v1866_v29 = vadd.f32 %v6065_v49, %v6001_v5  ;;  %v1986_v58 = vadd.f32 %v5999_v3, %v1945_v59 }
 0x204   : > { %v2143_v27 = vpop.f32.mrf.mxu3 }
 0x205   : > { %v2144_v48 = vadd.f32 %v2143_v27, %v2103_v62  ;;  %v1907_v39 = vadd.f32 %v6003_v41, %v1866_v29  ;;  %v6479_v62 = vld [vmem:[#allocation9_spill] sm:$0xff] }
 0x206   : > { %v2026_v60 = vpop.f32.mrf.mxu0  ;;  %v2105_v17 = vpop.f32.mrf.mxu2 }
 0x207   : > { %2166 = vst.msk [vmem:[%s6111_s24 + $0x8] sm:$0xff] %vm2164_vm0, %v2144_v48  ;;  %v2106_v24 = vadd.f32 %v2105_v17, %v2065_v13  ;;  %v2027_v7 = vadd.f32 %v2026_v60, %v1986_v58  ;;  %v1948_v5 = vadd.f32 %v6036_v45, %v1907_v39  ;;  %v6484_v13 = vld [vmem:[#allocation25_spill] sm:$0xff] }
 0x208   : > { %v2067_v19 = vpop.f32.mrf.mxu1 }
 0x209   : > { %2494 = vmatmul.f32.gmra.mxu0 %v5634_v33  ;;  %2614 = vmatmul.f32.gmra.mxu3 %v5640_v57  ;;  %v2068_v57 = vadd.f32 %v2067_v19, %v2027_v7 }
 0x20b   : > { %2535 = vmatmul.f32.gmra.mxu1 %v5638_v40  ;;  %2576 = vmatmul.f32.gmra.mxu2 %v5648_v35  ;;  %v1869_v40 = vadd.f32 %v6065_v49, %v6038_v54  ;;  %v1989_v35 = vadd.f32 %v6040_v43, %v1948_v5 }
 0x20c   : > { %v2146_v14 = vpop.f32.mrf.mxu3 }
 0x20d   : > { %v2147_v9 = vadd.f32 %v2146_v14, %v2106_v24  ;;  %v1910_v45 = vadd.f32 %v6042_v0, %v1869_v40 }
 0x20e   : > { %v2029_v33 = vpop.f32.mrf.mxu0  ;;  %v2108_v12 = vpop.f32.mrf.mxu2 }
 0x20f   : > { %2167 = vst.msk [vmem:[%s6111_s24 + $0x10] sm:$0xff] %vm2164_vm0, %v2147_v9  ;;  %v2109_v3 = vadd.f32 %v2108_v12, %v2068_v57  ;;  %v2030_v44 = vadd.f32 %v2029_v33, %v1989_v35  ;;  %v1951_v54 = vadd.f32 %v6048_v22, %v1910_v45 }
 0x210   : > { %v2070_v36 = vpop.f32.mrf.mxu1 }
 0x211   : > { %2497 = vmatmul.f32.gmra.mxu0 %v5684_v47  ;;  %2617 = vmatmul.f32.gmra.mxu3 %v5690_v46  ;;  %v2071_v46 = vadd.f32 %v2070_v36, %v2030_v44 }
 0x213   : > { %2538 = vmatmul.f32.gmra.mxu1 %v5688_v31  ;;  %2579 = vmatmul.f32.gmra.mxu2 %v5698_v15  ;;  %v1872_v31 = vadd.f32 %v6065_v49, %v6050_v42  ;;  %v1992_v15 = vadd.f32 %v6054_v37, %v1951_v54 }
 0x214   : > { %v2149_v41 = vpop.f32.mrf.mxu3 }
 0x215   : > { %v2150_v18 = vadd.f32 %v2149_v41, %v2109_v3  ;;  %v1913_v22 = vadd.f32 %v6052_v8, %v1872_v31 }
 0x216   : > { %v2032_v47 = vpop.f32.mrf.mxu0  ;;  %v2111_v34 = vpop.f32.mrf.mxu2 }
 0x217   : > { %2168 = vst.msk [vmem:[%s6111_s24 + $0x18] sm:$0xff] %vm2164_vm0, %v2150_v18  ;;  %v2112_v43 = vadd.f32 %v2111_v34, %v2071_v46  ;;  %v2033_v55 = vadd.f32 %v2032_v47, %v1992_v15  ;;  %v1954_v42 = vadd.f32 %v6060_v4, %v1913_v22  ;;  %v6478_v4 = vld [vmem:[#allocation3_spill] sm:$0xff] }
 0x218   : > { %v2073_v2 = vpop.f32.mrf.mxu1 }
 0x219   : > { %2500 = vmatmul.f32.gmra.mxu0 %v5728_v16  ;;  %2620 = vmatmul.f32.gmra.mxu3 %v5734_v28  ;;  %v2074_v28 = vadd.f32 %v2073_v2, %v2033_v55 }
 0x21b   : > { %2541 = vmatmul.f32.gmra.mxu1 %v5732_v21  ;;  %2582 = vmatmul.f32.gmra.mxu2 %v5739_v53  ;;  %v1875_v21 = vadd.f32 %v6065_v49, %v6067_v63  ;;  %v1995_v53 = vadd.f32 %v6076_v50, %v1954_v42  ;;  %v6482_v63 = vld [vmem:[#allocation23_spill] sm:$0xff]  ;;  %v6483_v50 = vld [vmem:[#allocation24_spill] sm:$0xff] }
 0x21c   : > { %v2152_v0 = vpop.f32.mrf.mxu3 }
 0x21d   : > { %v2153_v52 = vadd.f32 %v2152_v0, %v2112_v43  ;;  %v1916_v6 = vadd.f32 %v6478_v4, %v1875_v21  ;;  %v6241_v4 = vld [vmem:[%s6237_s27 + $0x20] sm:$0xff] }
 0x21e   : > { %v2035_v16 = vpop.f32.mrf.mxu0  ;;  %v2114_v30 = vpop.f32.mrf.mxu2  ;;  %vm2645_vm1 = vcmp.ne.s32.totalorder %v6241_v4, 4294967196  ;;  %vm2653_vm12 = vcmp.eq.s32.totalorder %v6241_v4, 1 }
 0x21f   : > { %2169 = vst.msk [vmem:[%s6111_s24 + $0x20] sm:$0xff] %vm2164_vm0, %v2153_v52  ;;  %v2115_v8 = vadd.f32 %v2114_v30, %v2074_v28  ;;  %v2036_v38 = vadd.f32 %v2035_v16, %v1995_v53  ;;  %v1957_v49 = vadd.f32 %v6479_v62, %v1916_v6  ;;  %v6225_v52 = vld [vmem:[%s6407_s6] ss:$0 sm:$0xff] }
 0x220   : > { %v2076_v10 = vpop.f32.mrf.mxu1 }
 0x221   : > { %2503 = vmatmul.f32.gmra.mxu0 %v5766_v26  ;;  %2623 = vmatmul.f32.gmra.mxu3 %v5772_v61  ;;  %v2077_v61 = vadd.f32 %v2076_v10, %v2036_v38  ;;  %v1998_v27 = vadd.f32 %v6091_v1, %v1957_v49 }
 0x223   : > { %2544 = vmatmul.f32.gmra.mxu1 %v5770_v25  ;;  %2585 = vmatmul.f32.gmra.mxu2 %v5780_v20  ;;  %v6480_v25 = vld [vmem:[#allocation21_spill] sm:$0xff]  ;;  %v6481_v20 = vld [vmem:[#allocation22_spill] sm:$0xff] }
 0x224   : > { %v2155_v37 = vpop.f32.mrf.mxu3 }
 0x225   : > { %v2156_v32 = vadd.f32 %v2155_v37, %v2115_v8 }
 0x226   : > { %v2038_v26 = vpop.f32.mrf.mxu0  ;;  %v2117_v23 = vpop.f32.mrf.mxu2 }
 0x227   : > { %2170 = vst.msk [vmem:[%s6111_s24 + $0x28] sm:$0xff] %vm2164_vm0, %v2156_v32  ;;  %v2118_v51 = vadd.f32 %v2117_v23, %v2077_v61  ;;  %v2039_v48 = vadd.f32 %v2038_v26, %v1998_v27  ;;  %v3774_v23 = vmov 0.0  }
 0x228   : > { %v2079_v56 = vpop.f32.mrf.mxu1 }
 0x229   : > { %2506 = vmatmul.f32.gmra.mxu0 %v6480_v25  ;;  %2626 = vmatmul.f32.gmra.mxu3 %v6482_v63  ;;  %v2080_v29 = vadd.f32 %v2079_v56, %v2039_v48  ;;  %v3524_v56 = vsel %vm2645_vm1, 1.0, %v3774_v23  ;;  %v6251_v63 = vld [vmem:[%s6237_s27] sm:$0xff] }
 0x22a   : > { %v2819_v49 = vsel %vm2769_vm2, %v3524_v56, 0.0  ;;  %vm2641_vm3 = vcmp.ne.s32.totalorder %v6251_v63, 4294967196  ;;  %vm2649_vm5 = vcmp.eq.s32.totalorder %v6251_v63, 1 }
 0x22b   : > { %2547 = vmatmul.f32.gmra.mxu1 %v6481_v20  ;;  %2588 = vmatmul.f32.gmra.mxu2 %v6483_v50 }
 0x22c   : > { %v2158_v11 = vpop.f32.mrf.mxu3  ;;  %2820 = vadd.xlane.f32.xlu0 %v2819_v49 }
 0x22d   : > { %v2159_v60 = vadd.f32 %v2158_v11, %v2118_v51  ;;  %v6256_v11 = vld [vmem:[%s6237_s27 + $0x10] sm:$0xff] }
 0x22e   : > { %v2120_v17 = vpop.f32.mrf.mxu2  ;;  %v2322_v19 = vpop.f32.mrf.mxu0  ;;  %vm2643_vm4 = vcmp.ne.s32.totalorder %v6256_v11, 4294967196  ;;  %vm2651_vm10 = vcmp.eq.s32.totalorder %v6256_v11, 1 }
 0x22f   : > { %2171 = vst.msk [vmem:[%s6111_s24 + $0x30] sm:$0xff] %vm2164_vm0, %v2159_v60  ;;  %v2121_v58 = vadd.f32 %v2120_v17, %v2080_v29  ;;  %v2323_v16 = vadd.f32 %v6225_v52, %v2322_v19  ;;  %v3520_v60 = vsel %vm2641_vm3, 1.0, %v3774_v23 }
 0x230   : > { %v2363_v59 = vpop.f32.mrf.mxu1 }
 0x231   : > { %2629 = vmatmul.f32.gmra.mxu3 %v6484_v13  ;;  %v2364_v28 = vadd.f32 %v2363_v59, %v2323_v16  ;;  %v2807_v13 = vsel %vm2769_vm2, %v3520_v60, 0.0 }
 0x232   : > { %2808 = vadd.xlane.f32.xlu1 %v2807_v13 }
 0x234   : > { %v2161_v24 = vpop.f32.mrf.mxu3 }
 0x235   : > { %v2162_v14 = vadd.f32 %v2161_v24, %v2121_v58  ;;  %v3522_v58 = vsel %vm2643_vm4, 1.0, %v3774_v23 }
 0x236   : > { %v2325_v39 = vpop.f32.mrf.mxu0  ;;  %v2404_v7 = vpop.f32.mrf.mxu2 }
 0x237   : > { %2172 = vst.msk [vmem:[%s6111_s24 + $0x38] sm:$0xff] %vm2164_vm0, %v2162_v14  ;;  %v2405_v53 = vadd.f32 %v2404_v7, %v2364_v28  ;;  %v2326_v8 = vadd.f32 %v6225_v52, %v2325_v39  ;;  %v2813_v14 = vsel %vm2769_vm2, %v3522_v58, 0.0 }
 0x238   : > { %v2366_v9 = vpop.f32.mrf.mxu1  ;;  %2814 = vadd.xlane.f32.xlu2 %v2813_v14 }
 0x239   : > { %v2367_v25 = vadd.f32 %v2366_v9, %v2326_v8 }
 0x23c   : > { %v2445_v1 = vpop.f32.mrf.mxu3 }
 0x23d   : > { %v2446_v37 = vadd.f32 %v2445_v1, %v2405_v53 }
 0x23e   : > { %v2328_v33 = vpop.f32.mrf.mxu0  ;;  %v2407_v12 = vpop.f32.mrf.mxu2 }
 0x23f   : > { %v2408_v61 = vadd.f32 %v2407_v12, %v2367_v25  ;;  %v2329_v50 = vadd.f32 %v6225_v52, %v2328_v33 }
 0x240   : > { %v6182_v36 = vpop.f32.mrf.mxu1 }
 0x241   : > { %v2370_v39 = vadd.f32 %v6182_v36, %v2329_v50  ;;  %v6281_v36 = vld [vmem:[%s6237_s27 + $0x28] sm:$0xff] }
 0x242   : > { %vm2646_vm7 = vcmp.ne.s32.totalorder %v6281_v36, 4294967196  ;;  %vm2654_vm13 = vcmp.eq.s32.totalorder %v6281_v36, 1 }
 0x244   : > { %v2448_v5 = vpop.f32.mrf.mxu3 }
 0x245   : > { %v2449_v27 = vadd.f32 %v2448_v5, %v2408_v61  ;;  %v6274_v5 = vld [vmem:[%s6237_s27 + $0x8] sm:$0xff] }
 0x246   : > { %v6184_v40 = vpop.f32.mrf.mxu0  ;;  %v6186_v57 = vpop.f32.mrf.mxu2  ;;  %vm2642_vm6 = vcmp.ne.s32.totalorder %v6274_v5, 4294967196  ;;  %vm2650_vm8 = vcmp.eq.s32.totalorder %v6274_v5, 1 }
 0x247   : > { %v2411_v9 = vadd.f32 %v6186_v57, %v2370_v39  ;;  %v2332_v16 = vadd.f32 %v6225_v52, %v6184_v40  ;;  %v3521_v57 = vsel %vm2642_vm6, 1.0, %v3774_v23 }
 0x248   : > { %v6188_v35 = vpop.f32.mrf.mxu1  ;;  %v2810_v40 = vsel %vm2769_vm2, %v3521_v57, 0.0 }
 0x249   : > { %2811 = vadd.xlane.f32.xlu1 %v2810_v40 }
 0x24c   : > { %v6190_v3 = vpop.f32.mrf.mxu3 }
 0x24e   : > { %v6192_v41 = vpop.f32.mrf.mxu0  ;;  %v6194_v45 = vpop.f32.mrf.mxu2 }
 0x250   : > { %v6196_v44 = vpop.f32.mrf.mxu1 }
 0x254   : > { %v6198_v18 = vpop.f32.mrf.mxu3 }
 0x256   : > { %v6200_v47 = vpop.f32.mrf.mxu0  ;;  %v6202_v34 = vpop.f32.mrf.mxu2 }
 0x258   : > { %v6204_v2 = vpop.f32.mrf.mxu1 }
 0x25c   : > { %v6206_v54 = vpop.f32.mrf.mxu3 }
 0x25e   : > { %v6208_v31 = vpop.f32.mrf.mxu0  ;;  %v6210_v46 = vpop.f32.mrf.mxu2 }
 0x260   : > { %v6212_v15 = vpop.f32.mrf.mxu1 }
 0x264   : > { %v6214_v43 = vpop.f32.mrf.mxu3 }
 0x266   : > { %v6216_v0 = vpop.f32.mrf.mxu0  ;;  %v6218_v22 = vpop.f32.mrf.mxu2 }
 0x268   : > { %v6220_v55 = vpop.f32.mrf.mxu1 }
 0x26c   : > { %v6228_v30 = vpop.f32.mrf.mxu3 }
 0x26e   : > { %v6230_v10 = vpop.f32.mrf.mxu2  ;;  %v2486_v42 = vpop.f32.mrf.mxu0 }
 0x26f   : > { %v2487_v38 = vadd.f32 %v2486_v42, %v2446_v37  ;;  %v2452_v42 = vadd.f32 %v6190_v3, %v2411_v9  ;;  %v3525_v3 = vsel %vm2646_vm7, 1.0, %v3774_v23 }
 0x270   : > { %v2527_v21 = vpop.f32.mrf.mxu1  ;;  %v2822_v56 = vsel %vm2769_vm2, %v3525_v3, 0.0 }
 0x271   : > { %v2528_v20 = vadd.f32 %v2527_v21, %v2487_v38  ;;  %2823 = vadd.xlane.f32.xlu2 %v2822_v56 }
 0x274   : > { %v6243_v6 = vpop.f32.mrf.mxu3 }
 0x276   : > { %v2489_v32 = vpop.f32.mrf.mxu0  ;;  %v2568_v26 = vpop.f32.mrf.mxu2 }
 0x277   : > { %v2569_v51 = vadd.f32 %v2568_v26, %v2528_v20  ;;  %v2490_v17 = vadd.f32 %v2489_v32, %v2449_v27 }
 0x278   : > { %v2530_v62 = vpop.f32.mrf.mxu1 }
 0x279   : > { %v2531_v1 = vadd.f32 %v2530_v62, %v2490_v17  ;;  %v2373_v62 = vadd.f32 %v6188_v35, %v2332_v16 }
 0x27b   : > { %v2414_v61 = vadd.f32 %v6194_v45, %v2373_v62 }
 0x27c   : > { %v2609_v48 = vpop.f32.mrf.mxu3 }
 0x27d   : > { %v2610_v19 = vadd.f32 %v2609_v48, %v2569_v51  ;;  %v6299_v51 = vld [vmem:[%s6237_s27 + $0x18] sm:$0xff]  ;;  %v2335_v48 = vadd.f32 %v6225_v52, %v6192_v41  ;;  %v2455_v60 = vadd.f32 %v6198_v18, %v2414_v61 }
 0x27e   : > { %v2492_v59 = vpop.f32.mrf.mxu0  ;;  %v2571_v29 = vpop.f32.mrf.mxu2  ;;  %vm2644_vm9 = vcmp.ne.s32.totalorder %v6299_v51, 4294967196  ;;  %vm2652_vm11 = vcmp.eq.s32.totalorder %v6299_v51, 1 }
 0x27f   : > { %v2657_v7 = vsub.f32 0.0, %v2610_v19  ;;  %v2572_v21 = vadd.f32 %v2571_v29, %v2531_v1  ;;  %v2493_v8 = vadd.f32 %v2492_v59, %v2452_v42  ;;  %v3523_v45 = vsel %vm2644_vm9, 1.0, %v3774_v23 }
 0x280   : > { %v2533_v24 = vpop.f32.mrf.mxu1  ;;  %v2376_v18 = vadd.f32 %v6196_v44, %v2335_v48  ;;  %v2341_v48 = vadd.f32 %v6225_v52, %v6208_v31 }
 0x281   : > { %v6270_v33 = vsel %vm2649_vm5, %v2657_v7, %v2610_v19  ;;  %v2534_v20 = vadd.f32 %v2533_v24, %v2493_v8  ;;  %v2816_v24 = vsel %vm2769_vm2, %v3523_v45, 0.0 }
 0x282   : > { %v2681_v12 = vand.u32 2147483647, %v6270_v33  ;;  %2817 = vadd.xlane.f32.xlu1 %v2816_v24  ;;  %v2417_v9 = vadd.f32 %v6202_v34, %v2376_v18 }
 0x284   : > { %v2612_v28 = vpop.f32.mrf.mxu3  ;;  %v2689_v53 = vsub.f32 0.0, %v2681_v12 }
 0x285   : > { %v2613_v37 = vadd.f32 %v2612_v28, %v2572_v21  ;;  %v2338_v21 = vadd.f32 %v6225_v52, %v6200_v47  ;;  %v2458_v28 = vadd.f32 %v6206_v54, %v2417_v9  ;;  %v2673_v47 = vmax.f32 %v6270_v33, 0.0 }
 0x286   : > { %v2495_v38 = vpop.f32.mrf.mxu0  ;;  %v2574_v32 = vpop.f32.mrf.mxu2  ;;  %v2697_v26 = vmul.f32 1.442695, %v2689_v53 }
 0x287   : > { %v2658_v49 = vsub.f32 0.0, %v2613_v37  ;;  %v2575_v17 = vadd.f32 %v2574_v32, %v2534_v20  ;;  %v2496_v59 = vadd.f32 %v2495_v38, %v2455_v60 }
 0x288   : > { %v2536_v25 = vpop.f32.mrf.mxu1  ;;  %3701 = vpow2.f32 %v2697_v26  ;;  %v2379_v26 = vadd.f32 %v6204_v2, %v2338_v21 }
 0x289   : > { %v6295_v50 = vsel %vm2650_vm8, %v2658_v49, %v2613_v37  ;;  %v2537_v1 = vadd.f32 %v2536_v25, %v2496_v59 }
 0x28a   : > { %v2682_v27 = vand.u32 2147483647, %v6295_v50  ;;  %v2420_v49 = vadd.f32 %v6210_v46, %v2379_v26  ;;  %v2674_v63 = vmax.f32 %v6295_v50, 0.0 }
 0x28c   : > { %v2615_v35 = vpop.f32.mrf.mxu3  ;;  %v2690_v19 = vsub.f32 0.0, %v2682_v27  ;;  %v2461_v2 = vadd.f32 %v6214_v43, %v2420_v49  ;;  %v2382_v43 = vadd.f32 %v6212_v15, %v2341_v48 }
 0x28d   : > { %v2616_v29 = vadd.f32 %v2615_v35, %v2575_v17 }
 0x28e   : > { %v2498_v13 = vpop.f32.mrf.mxu0  ;;  %v2577_v58 = vpop.f32.mrf.mxu2  ;;  %v2699_v41 = vmul.f32 1.442695, %v2690_v19 }
 0x28f   : > { %v3702_v14 = vpop.eup %3701  ;;  %v2659_v39 = vsub.f32 0.0, %v2616_v29  ;;  %v2578_v53 = vadd.f32 %v2577_v58, %v2537_v1  ;;  %v2499_v8 = vadd.f32 %v2498_v13, %v2458_v28 }
 0x290   : > { %v2713_v7 = vadd.f32 1.0, %v3702_v14  ;;  %3703 = vpow2.f32 %v2699_v41  ;;  %v2539_v16 = vpop.f32.mrf.mxu1 }
 0x291   : > { %v6312_v12 = vsel %vm2651_vm10, %v2659_v39, %v2616_v29  ;;  %v2540_v25 = vadd.f32 %v2539_v16, %v2499_v8  ;;  %v2423_v39 = vadd.f32 %v6218_v22, %v2382_v43 }
 0x292   : > { %3705 = vlog2.f32 %v2713_v7  ;;  %v2683_v42 = vand.u32 2147483647, %v6312_v12  ;;  %v2675_v5 = vmax.f32 %v6312_v12, 0.0 }
 0x293   : > { %v2464_v15 = vadd.f32 %v6228_v30, %v2423_v39 }
 0x294   : > { %v2618_v57 = vpop.f32.mrf.mxu3  ;;  %v2691_v44 = vsub.f32 0.0, %v2683_v42  ;;  %v2344_v42 = vadd.f32 %v6225_v52, %v6216_v0 }
 0x295   : > { %v2619_v37 = vadd.f32 %v2618_v57, %v2578_v53 }
 0x296   : > { %v2580_v38 = vpop.f32.mrf.mxu2  ;;  %v3704_v32 = vpop.eup %3703  ;;  %v2701_v40 = vmul.f32 1.442695, %v2691_v44  ;;  %v2385_v52 = vadd.f32 %v6220_v55, %v2344_v42  ;;  %v6353_v55 = vld [vmem:[%s6237_s27 + $0x30] sm:$0xff] }
 0x297   : > { %v2501_v34 = vpop.f32.mrf.mxu0  ;;  %v2660_v56 = vsub.f32 0.0, %v2619_v37  ;;  %v2714_v62 = vadd.f32 1.0, %v3704_v32  ;;  %v2581_v60 = vadd.f32 %v2580_v38, %v2540_v25  ;;  %vm2655_vm14 = vcmp.eq.s32.totalorder %v6353_v55, 1 }
 0x298   : > { %v3706_v3 = vpop.eup %3705  ;;  %3707 = vpow2.f32 %v2701_v40  ;;  %v2542_v17 = vpop.f32.mrf.mxu1  ;;  %v2502_v46 = vadd.f32 %v2501_v34, %v2461_v2 }
 0x299   : > { %v2722_v54 = vmul.f32 0.6931472, %v3706_v3  ;;  %3709 = vlog2.f32 %v2714_v62  ;;  %v6322_v61 = vsel %vm2652_vm11, %v2660_v56, %v2619_v37  ;;  %v2426_v3 = vadd.f32 %v6230_v10, %v2385_v52 }
 0x29a   : > { %v2684_v27 = vand.u32 2147483647, %v6322_v61  ;;  %v2543_v7 = vadd.f32 %v2542_v17, %v2502_v46 }
 0x29b   : > { %v2737_v20 = vadd.f32 %v2722_v54, %v2673_v47  ;;  %v2467_v49 = vadd.f32 %v6243_v6, %v2426_v3 }
 0x29c   : > { %v2621_v35 = vpop.f32.mrf.mxu3  ;;  %v2692_v19 = vsub.f32 0.0, %v2684_v27 }
 0x29d   : > { %v2745_v33 = vsel %vm2641_vm3, %v2737_v20, 0.0  ;;  %v2622_v45 = vadd.f32 %v2621_v35, %v2581_v60  ;;  %vm2846_vm3 = vcmask 8200  }
 0x29e   : > { %v2583_v59 = vpop.f32.mrf.mxu2  ;;  %v2770_v29 = vsel %vm2769_vm2, %v2745_v33, 0.0  ;;  %v3708_v13 = vpop.eup %3707  ;;  %v2703_v58 = vmul.f32 1.442695, %v2692_v19 }
 0x29f   : > { %2771 = vadd.xlane.f32.xlu0 %v2770_v29  ;;  %v3710_v31 = vpop.eup %3709  ;;  %v2661_v24 = vsub.f32 0.0, %v2622_v45  ;;  %v2715_v14 = vadd.f32 1.0, %v3708_v13  ;;  %v2504_v41 = vpop.f32.mrf.mxu0  ;;  %v2584_v21 = vadd.f32 %v2583_v59, %v2543_v7  ;;  %v2640_v13 = vld [vmem:[%s6237_s27 + $0x38] sm:$0xff] }
 0x2a0   : > { %v2724_v18 = vmul.f32 0.6931472, %v3710_v31  ;;  %3711 = vpow2.f32 %v2703_v58  ;;  %v2505_v57 = vadd.f32 %v2504_v41, %v2464_v15  ;;  %v2545_v38 = vpop.f32.mrf.mxu1  ;;  %vm2648_vm15 = vcmp.ne.s32.totalorder %v2640_v13, 4294967196 }
 0x2a1   : > { %v6335_v9 = vsel %vm2653_vm12, %v2661_v24, %v2622_v45  ;;  %3713 = vlog2.f32 %v2715_v14  ;;  %v2676_v45 = vmax.f32 %v6322_v61, 0.0  ;;  %v3527_v61 = vsel %vm2648_vm15, 1.0, %v3774_v23 }
 0x2a2   : > { %v2685_v1 = vand.u32 2147483647, %v6335_v9  ;;  %v2738_v16 = vadd.f32 %v2724_v18, %v2674_v63  ;;  %v2546_v26 = vadd.f32 %v2545_v38, %v2505_v57  ;;  %vm2656_vm0 = vcmp.eq.s32.totalorder %v2640_v13, 1 }
 0x2a3   : > { %v2677_v15 = vmax.f32 %v6335_v9, 0.0 }
 0x2a4   : > { %v2693_v28 = vsub.f32 0.0, %v2685_v1  ;;  %v2624_v53 = vpop.f32.mrf.mxu3  ;;  %v2746_v50 = vsel %vm2642_vm6, %v2738_v16, 0.0 }
 0x2a5   : > { %v2625_v22 = vadd.f32 %v2624_v53, %v2584_v21  ;;  %v2773_v44 = vsel %vm2769_vm2, %v2746_v50, 0.0 }
 0x2a6   : > { %v3712_v8 = vpop.eup %3711  ;;  %v2705_v37 = vmul.f32 1.442695, %v2693_v28  ;;  %v2586_v32 = vpop.f32.mrf.mxu2 }
 0x2a7   : > { %2774 = vadd.xlane.f32.xlu0 %v2773_v44  ;;  %v3714_v0 = vpop.eup %3713  ;;  %v2662_v30 = vsub.f32 0.0, %v2625_v22  ;;  %v2716_v34 = vadd.f32 1.0, %v3712_v8  ;;  %v2507_v62 = vpop.f32.mrf.mxu0  ;;  %v2587_v25 = vadd.f32 %v2586_v32, %v2546_v26 }
 0x2a8   : > { %3715 = vpow2.f32 %v2705_v37  ;;  %v2726_v40 = vmul.f32 0.6931472, %v3714_v0  ;;  %v2508_v48 = vadd.f32 %v2507_v62, %v2467_v49  ;;  %v2548_v19 = vpop.f32.mrf.mxu1 }
 0x2a9   : > { %3717 = vlog2.f32 %v2716_v34  ;;  %v6348_v56 = vsel %vm2654_vm13, %v2662_v30, %v2625_v22 }
 0x2aa   : > { %v2739_v47 = vadd.f32 %v2726_v40, %v2675_v5  ;;  %v2686_v54 = vand.u32 2147483647, %v6348_v56  ;;  %v2549_v59 = vadd.f32 %v2548_v19, %v2508_v48  ;;  %v2678_v32 = vmax.f32 %v6348_v56, 0.0  ;;  %v2809_v48 = vpop.xlane.xlu1 %2808 }
 0x2ac   : > { %v2627_v20 = vpop.f32.mrf.mxu3  ;;  %v2747_v12 = vsel %vm2643_vm4, %v2739_v47, 0.0  ;;  %v2694_v27 = vsub.f32 0.0, %v2686_v54 }
 0x2ad   : > { %v2628_v10 = vadd.f32 %v2627_v20, %v2587_v25  ;;  %v2776_v2 = vsel %vm2769_vm2, %v2747_v12, 0.0  ;;  %v2828_v20 = vsel %vm2769_vm2, %v3527_v61, 0.0 }
 0x2ae   : > { %v3716_v60 = vpop.eup %3715  ;;  %2777 = vadd.xlane.f32.xlu2 %v2776_v2  ;;  %v2707_v17 = vmul.f32 1.442695, %v2694_v27  ;;  %v2589_v46 = vpop.f32.mrf.mxu2 }
 0x2af   : > { %v3718_v35 = vpop.eup %3717  ;;  %v2663_v6 = vsub.f32 0.0, %v2628_v10  ;;  %v2717_v33 = vadd.f32 1.0, %v3716_v60  ;;  %v2590_v43 = vadd.f32 %v2589_v46, %v2549_v59  ;;  %v2821_v27 = vpop.xlane.xlu0 %2820 }
 0x2b0   : > { %v2728_v11 = vmul.f32 0.6931472, %v3718_v35  ;;  %3719 = vpow2.f32 %v2707_v17 }
 0x2b1   : > { %3721 = vlog2.f32 %v2717_v33  ;;  %v2671_v29 = vsel %vm2655_vm14, %v2663_v6, %v2628_v10  ;;  %v2815_v10 = vpop.xlane.xlu2 %2814 }
 0x2b2   : > { %v2740_v58 = vadd.f32 %v2728_v11, %v2676_v45  ;;  %v2687_v31 = vand.u32 2147483647, %v2671_v29  ;;  %v2679_v3 = vmax.f32 %v2671_v29, 0.0 }
 0x2b4   : > { %v2630_v24 = vpop.f32.mrf.mxu3  ;;  %v2748_v14 = vsel %vm2644_vm9, %v2740_v58, 0.0  ;;  %v2695_v41 = vsub.f32 0.0, %v2687_v31 }
 0x2b5   : > { %v2631_v63 = vadd.f32 %v2630_v24, %v2590_v43  ;;  %v2779_v18 = vsel %vm2769_vm2, %v2748_v14, 0.0 }
 0x2b6   : > { %v3720_v39 = vpop.eup %3719  ;;  %2780 = vadd.xlane.f32.xlu0 %v2779_v18  ;;  %v2709_v7 = vmul.f32 1.442695, %v2695_v41 }
 0x2b7   : > { %v3722_v1 = vpop.eup %3721  ;;  %v2664_v16 = vsub.f32 0.0, %v2631_v63  ;;  %v2718_v42 = vadd.f32 1.0, %v3720_v39 }
 0x2b8   : > { %v2730_v21 = vmul.f32 0.6931472, %v3722_v1  ;;  %3723 = vpow2.f32 %v2709_v7 }
 0x2b9   : > { %3725 = vlog2.f32 %v2718_v42  ;;  %v2672_v51 = vsel %vm2656_vm0, %v2664_v16, %v2631_v63 }
 0x2ba   : > { %v2741_v28 = vadd.f32 %v2730_v21, %v2677_v15  ;;  %v2688_v53 = vand.u32 2147483647, %v2672_v51  ;;  %v2680_v49 = vmax.f32 %v2672_v51, 0.0 }
 0x2bc   : > { %v2749_v50 = vsel %vm2645_vm1, %v2741_v28, 0.0  ;;  %v2696_v57 = vsub.f32 0.0, %v2688_v53  ;;  %vm2647_vm1 = vcmp.ne.s32.totalorder %v6353_v55, 4294967196  ;;  %v2812_v60 = vpop.xlane.xlu1 %2811 }
 0x2bd   : > { %v2782_v22 = vsel %vm2769_vm2, %v2749_v50, 0.0  ;;  %v3526_v40 = vsel %vm2647_vm1, 1.0, %v3774_v23  ;;  %v2831_v33 = vadd.f32 %v2812_v60, %v2809_v48 }
 0x2be   : > { %v3724_v44 = vpop.eup %3723  ;;  %2783 = vadd.xlane.f32.xlu2 %v2782_v22  ;;  %v2711_v8 = vmul.f32 1.442695, %v2696_v57  ;;  %v2825_v62 = vsel %vm2769_vm2, %v3526_v40, 0.0 }
 0x2bf   : > { %v3726_v37 = vpop.eup %3725  ;;  %v2719_v38 = vadd.f32 1.0, %v3724_v44  ;;  %v2832_v45 = vadd.f32 %v2831_v33, %v2815_v10 }
 0x2c0   : > { %v2732_v9 = vmul.f32 0.6931472, %v3726_v37  ;;  %3727 = vpow2.f32 %v2711_v8 }
 0x2c1   : > { %3729 = vlog2.f32 %v2719_v38 }
 0x2c2   : > { %v2742_v0 = vadd.f32 %v2732_v9, %v2678_v32 }
 0x2c4   : > { %v2750_v52 = vsel %vm2646_vm7, %v2742_v0, 0.0 }
 0x2c5   : > { %v2785_v4 = vsel %vm2769_vm2, %v2750_v52, 0.0 }
 0x2c6   : > { %v3728_v30 = vpop.eup %3727  ;;  %2786 = vadd.xlane.f32.xlu1 %v2785_v4 }
 0x2c7   : > { %v3730_v34 = vpop.eup %3729  ;;  %v2720_v5 = vadd.f32 1.0, %v3728_v30 }
 0x2c8   : > { %v2734_v26 = vmul.f32 0.6931472, %v3730_v34 }
 0x2c9   : > { %3731 = vlog2.f32 %v2720_v5 }
 0x2ca   : > { %v2743_v56 = vadd.f32 %v2734_v26, %v2679_v3 }
 0x2cc   : > { %v2751_v47 = vsel %vm2647_vm1, %v2743_v56, 0.0 }
 0x2cd   : > { %v2788_v36 = vsel %vm2769_vm2, %v2751_v47, 0.0 }
 0x2ce   : > { %2826 = vadd.xlane.f32.xlu1 %v2825_v62  ;;  %2789 = vadd.xlane.f32.xlu0 %v2788_v36 }
 0x2cf   : > { %v3732_v54 = vpop.eup %3731 }
 0x2d0   : > { %v2736_v25 = vmul.f32 0.6931472, %v3732_v54 }
 0x2d2   : > { %v2744_v55 = vadd.f32 %v2736_v25, %v2680_v49 }
 0x2d4   : > { %v2752_v12 = vsel %vm2648_vm15, %v2744_v55, 0.0 }
 0x2d5   : > { %v2791_v23 = vsel %vm2769_vm2, %v2752_v12, 0.0  ;;  %vm2844_vm2 = vcmask 0  }
 0x2d6   : > { %2792 = vadd.xlane.f32.xlu2 %v2791_v23  ;;  %2829 = vadd.xlane.f32.xlu0 %v2828_v20 }
 0x2e4   : > { %v2824_v17 = vpop.xlane.xlu2 %2823 }
 0x2f5   : > { %v2818_v6 = vpop.xlane.xlu1 %2817 }
 0x2f6   : > { %v2833_v29 = vadd.f32 %v2832_v45, %v2818_v6 }
 0x2f8   : > { %v2834_v43 = vadd.f32 %v2833_v29, %v2821_v27 }
 0x2fa   : > { %v2835_v18 = vadd.f32 %v2834_v43, %v2824_v17 }
 0x312   : > { %v2772_v2 = vpop.xlane.xlu0 %2771 }
 0x31a   : > { %v2775_v35 = vpop.xlane.xlu0 %2774 }
 0x31b   : > { %v2794_v59 = vadd.f32 %v2775_v35, %v2772_v2 }
 0x321   : > { %v2778_v19 = vpop.xlane.xlu2 %2777 }
 0x322   : > { %v2795_v13 = vadd.f32 %v2794_v59, %v2778_v19 }
 0x329   : > { %v2781_v46 = vpop.xlane.xlu0 %2780 }
 0x32a   : > { %v2796_v24 = vadd.f32 %v2795_v13, %v2781_v46 }
 0x331   : > { %v2784_v58 = vpop.xlane.xlu2 %2783 }
 0x332   : > { %v2797_v14 = vadd.f32 %v2796_v24, %v2784_v58 }
 0x339   : > { %v2787_v11 = vpop.xlane.xlu1 %2786 }
 0x33a   : > { %v2798_v63 = vadd.f32 %v2797_v14, %v2787_v11 }
 0x341   : > { %v2790_v31 = vpop.xlane.xlu0 %2789  ;;  %v2827_v41 = vpop.xlane.xlu1 %2826 }
 0x342   : > { %v2836_v61 = vadd.f32 %v2835_v18, %v2827_v41  ;;  %v2799_v39 = vadd.f32 %v2798_v63, %v2790_v31 }
 0x349   : > { %v2793_v7 = vpop.xlane.xlu2 %2792  ;;  %v2830_v1 = vpop.xlane.xlu0 %2829 }
 0x34a   : > { %v2800_v16 = vadd.f32 %v2799_v39, %v2793_v7  ;;  %v2837_v42 = vadd.f32 %v2836_v61, %v2830_v1 }
 0x34c   : > { %v2801_v15 = vrot.slane %v2800_v16, 4  ;;  %v2838_v21 = vrot.slane %v2837_v42, 4 }
 0x34e   : > { %v2802_v51 = vadd.f32 %v2801_v15, %v2800_v16  ;;  %v2839_v28 = vadd.f32 %v2838_v21, %v2837_v42 }
 0x350   : > { %v2803_v53 = vrot.slane %v2802_v51, 2  ;;  %v2840_v50 = vrot.slane %v2839_v28, 2 }
 0x352   : > { %v2804_v57 = vadd.f32 %v2803_v53, %v2802_v51  ;;  %v2841_v22 = vadd.f32 %v2840_v50, %v2839_v28 }
 0x354   : > { %v2805_v44 = vrot.slane %v2804_v57, 1  ;;  %v2842_v8 = vrot.slane %v2841_v22, 1 }
 0x356   : > { %v2806_v37 = vadd.f32 %v2805_v44, %v2804_v57  ;;  %v2843_v38 = vadd.f32 %v2842_v8, %v2841_v22 }
 0x358   : > { %2845 = vst.msk [vmem:[%s427_s18] sm:$0x1] %vm2844_vm2, %v2806_v37 }
 0x359   : > { %2847 = vst.msk [vmem:[%s427_s18] sm:$0x1] %vm2846_vm3, %v2843_v38 }
 0x35a PF: > { %s20_s13 = sadd.s32 1, %s3772_s13   ;;  %s6485_s19 = sld [smem:[#allocation2_spill]] }
 0x35b   : > { %p17_p8 = scmp.ge.s32.totalorder %s20_s13, 6   ;;  %s6486_s30 = smov %s3764_s11 }
 0x35c   : > { %s6487_s10 = smov %s3768_s12  ;;  %s6488_s11 = smov %s6491_s14 }
 0x35d   :  { %19 = sbr.rel (!%p17_p8) target bundleno = 3 (0x3), region = 97 }
 0x360   : > { %s6489_s12 = smov %s6485_s19 }

</bundles_post_ra>
